<compile_context>
chip_gen: v6e
topology: v6e:2x2x1
jax: 0.10.0
libtpu: 0.0.40
codegen_flags: <defaults>
</compile_context>

<pallas_src>
import math
import functools

import jax
import jax.numpy as jnp
from jax.experimental import pallas as pl
from jax.experimental.pallas import tpu as pltpu

_BN_EPS = 1e-5
_LN_EPS = 1e-5


def _round_up(x, m):
    return ((x + m - 1) // m) * m


# --------------------------------------------------------------------------------------
# Grouper (plain-JAX stand-in for pointnet2_utils.QueryAndGroupPyramidAttention)
# --------------------------------------------------------------------------------------
def query_and_group(xyz, xyz_batch_cnt, new_xyz, new_xyz_r, new_xyz_batch_cnt,
                    features, nsample):
    # TODO(synk): exact CUDA ball-query tie-breaking of QueryAndGroupPyramidAttention is not
    #             reproduced; this picks the first `nsample` in-radius points in index order.
    point_batch = jnp.concatenate(
        [jnp.full((c,), b, jnp.int32) for b, c in enumerate(xyz_batch_cnt)])
    query_batch = jnp.concatenate(
        [jnp.full((c,), b, jnp.int32) for b, c in enumerate(new_xyz_batch_cnt)])
    d2 = jnp.sum((new_xyz[:, None, :] - xyz[None, :, :]) ** 2, axis=-1)           # (M, N)
    valid = (d2 < new_xyz_r ** 2) & (query_batch[:, None] == point_batch[None, :])
    rank = jnp.cumsum(valid.astype(jnp.int32), axis=1) - 1                         # (M, N)
    slot = jnp.arange(nsample)
    match = valid[:, None, :] & (rank[:, None, :] == slot[None, :, None])          # (M, ns, N)
    idx = jnp.argmax(match, axis=-1)                                               # (M, ns)
    has = jnp.any(match, axis=-1)
    idx = jnp.where(has, idx, idx[:, :1])                                          # pad w/ 1st hit
    empty_mask = ~jnp.any(valid, axis=1)
    grouped_xyz = xyz[idx] - new_xyz[:, None, :]                                   # (M, ns, 3)
    grouped_pts = features[idx]                                                    # (M, ns, C)
    # zero-fill empty balls, matching the pcdet QueryAndGroup convention
    grouped_xyz = jnp.where(empty_mask[:, None, None], 0.0, grouped_xyz)
    grouped_pts = jnp.where(empty_mask[:, None, None], 0.0, grouped_pts)
    grouped_features = jnp.concatenate([grouped_xyz, grouped_pts], axis=-1)        # (M, ns, 3+C)
    return grouped_xyz, grouped_features, empty_mask


# --------------------------------------------------------------------------------------
# Kernel 1: per-level attention pooling over the grouped neighborhood (fused projections)
# --------------------------------------------------------------------------------------
def _level_attention_kernel(gf_ref, wproj_ref, w2_ref, wcoef_ref, out_ref, *, ns):
    TM, D = out_ref.shape
    bn_scale = 1.0 / math.sqrt(1.0 + _BN_EPS)       # eval-mode BatchNorm1d (mean=0, var=1)

    gf = gf_ref[...]                                # (TM*ns, Cin_pad)

    # fused [pos | key | v1] projection: one wide MXU pass instead of three tiny ones
    fused = jnp.dot(gf, wproj_ref[...], preferred_element_type=jnp.float32)   # (TM*ns, 3D)
    pos = jnp.maximum(fused[:, :D], 0.0)
    key = jnp.maximum(fused[:, D:2 * D], 0.0)
    v1 = jnp.maximum(fused[:, 2 * D:] * bn_scale, 0.0)
    pk = pos * key

    pos3 = pos.reshape(TM, ns, D)
    key3 = key.reshape(TM, ns, D)
    pk3 = pk.reshape(TM, ns, D)

    # fused coefficient gates: one (3D,4D) block-diagonal matmul on the stacked means
    inv_ns = 1.0 / ns
    means = jnp.concatenate(
        [jnp.sum(pos3, axis=1), jnp.sum(key3, axis=1), jnp.sum(pk3, axis=1)],
        axis=-1) * inv_ns                                                        # (TM, 3D)
    coefs = jax.nn.sigmoid(jnp.dot(means, wcoef_ref[...],
                                   preferred_element_type=jnp.float32))          # (TM, 4D)
    v_coef = coefs[:, :D][:, None, :]
    q_coef = coefs[:, D:2 * D][:, None, :]
    k_coef = coefs[:, 2 * D:3 * D][:, None, :]
    qk_coef = coefs[:, 3 * D:][:, None, :]

    att_emb = (pos3 * q_coef + key3 * k_coef + pk3 * qk_coef).reshape(TM * ns, D)

    # fused second stage: block-diag [wv2 ; watt_exp] applied to [v1 | att_emb]
    second = jnp.dot(jnp.concatenate([v1, att_emb], axis=-1), w2_ref[...],
                     preferred_element_type=jnp.float32)                          # (TM*ns, 2D)
    val3 = jnp.maximum(second[:, :D] * bn_scale, 0.0).reshape(TM, ns, D)
    val3 = val3 + pos3 * v_coef
    logits = second[:, D:].reshape(TM, ns, D)

    # softmax over the neighborhood axis (per head, replicated per channel by watt_exp)
    logits = logits - jnp.max(logits, axis=1, keepdims=True)
    p = jnp.exp(logits)
    p = p * pl.reciprocal(jnp.sum(p, axis=1, keepdims=True), approx=True)

    out_ref[...] = jnp.sum(p * val3, axis=1)                                      # (TM, D)


def level_attention(gfeat, p, num_heads, head_dims, tm=256):
    """gfeat: (M, ns, Cin) grouped [xyz|features]. Returns attend_features (M, D).

    `tm` (rows per grid step, multiple of 8) is the main tuning knob; ~256-512 saturates
    v5e/v6e, use roughly half on v7x (64 MiB VMEM / TC).
    """
    M, ns, Cin = gfeat.shape
    D = num_heads * head_dims
    Cin_pad = _round_up(Cin, 8)
    TM = min(tm, _round_up(M, 8))
    M_pad = _round_up(M, TM)

    # wrapper-side: zero-pad rows/channels, flatten to 2D so the kernel does no gxyz duplicate
    gfeat_p = jnp.pad(gfeat, ((0, M_pad - M), (0, 0), (0, Cin_pad - Cin)))
    gfeat_flat = gfeat_p.reshape(M_pad * ns, Cin_pad)

    # fold attention_proj head->channel replication into a single (D, D) matrix
    expand = (jnp.arange(D)[None, :] // head_dims ==
              jnp.arange(num_heads)[:, None]).astype(jnp.float32)                # (H, D)
    watt_exp = jnp.dot(p['watt'], expand)                                        # (D, D)

    # fused weights (built once in the wrapper)
    wpos_pad = jnp.zeros((Cin_pad, D), jnp.float32).at[:3].set(p['wpos'])
    padrows = lambda w: jnp.pad(w, ((0, Cin_pad - Cin), (0, 0)))
    wproj = jnp.concatenate([wpos_pad, padrows(p['wkey']), padrows(p['wv1'])], axis=1)  # (Cin_pad,3D)
    zdd = jnp.zeros((D, D), jnp.float32)
    w2 = jnp.concatenate(
        [jnp.concatenate([p['wv2'], zdd], axis=1),
         jnp.concatenate([zdd, watt_exp], axis=1)], axis=0)                      # (2D, 2D)
    wcoef = jnp.concatenate(
        [jnp.concatenate([p['wv_coef'], p['wq_coef'], zdd, zdd], axis=1),
         jnp.concatenate([zdd, zdd, p['wk_coef'], zdd], axis=1),
         jnp.concatenate([zdd, zdd, zdd, p['wqk_coef']], axis=1)], axis=0)       # (3D, 4D)

    kernel = functools.partial(_level_attention_kernel, ns=ns)
    full = lambda i: (0, 0)
    out = pl.pallas_call(
        kernel,
        out_shape=jax.ShapeDtypeStruct((M_pad, D), jnp.float32),
        grid_spec=pltpu.PrefetchScalarGridSpec(
            num_scalar_prefetch=0,
            grid=(M_pad // TM,),
            in_specs=[
                pl.BlockSpec((TM * ns, Cin_pad), lambda i: (i, 0)),
                pl.BlockSpec((Cin_pad, 3 * D), full),
                pl.BlockSpec((2 * D, 2 * D), full),
                pl.BlockSpec((3 * D, 4 * D), full),
            ],
            out_specs=pl.BlockSpec((TM, D), lambda i: (i, 0)),
        ),
        compiler_params=pltpu.CompilerParams(
            dimension_semantics=("parallel",),
            vmem_limit_bytes=64 * 1024 * 1024),
    )(gfeat_flat, wproj, w2, wcoef)
    return out[:M]


# --------------------------------------------------------------------------------------
# Kernel 2: TransformerEncoderLayer (post-norm, nhead=4) + fused cls/reg sigmoid gating
# --------------------------------------------------------------------------------------
def _layer_norm(x, g, b):
    mu = jnp.mean(x, axis=-1, keepdims=True)
    var = jnp.mean((x - mu) ** 2, axis=-1, keepdims=True)
    return (x - mu) * jax.lax.rsqrt(var + _LN_EPS) * g + b


def _encoder_gate_kernel(x_ref, add_ref, w_in_ref, wo_ref, wff_ref, wg1_ref,
                         wg2_ref, vec_ref, bg2_ref, out_ref, *, nhead):
    TB, G, D = x_ref.shape
    dh = D // nhead
    scale = 1.0 / math.sqrt(dh)

    vecs = vec_ref[...]                    # rows: bo, b1, b2, ln1_g, ln1_b, ln2_g, ln2_b, b_g1
    x2 = x_ref[...].reshape(TB * G, D)

    # one fused QKV matmul; pos-embedding @ W_{q,k} and all in_proj biases folded into add_ref
    qkv = jnp.dot(x2, w_in_ref[...], preferred_element_type=jnp.float32)
    qkv = qkv.reshape(TB, G, 3 * D) + add_ref[...][None, :, :]                    # (TB, G, 3D)

    heads = []
    for h in range(nhead):                 # static unroll; each head is batched over TB
        qh = qkv[:, :, h * dh:(h + 1) * dh]
        kh = qkv[:, :, D + h * dh:D + (h + 1) * dh]
        vh = qkv[:, :, 2 * D + h * dh:2 * D + (h + 1) * dh]
        s = jnp.einsum('bqd,bkd->bqk', qh, kh,
                       preferred_element_type=jnp.float32) * scale               # (TB, G, G)
        s = s - jnp.max(s, axis=-1, keepdims=True)
        a = jnp.exp(s)
        a = a * pl.reciprocal(jnp.sum(a, axis=-1, keepdims=True), approx=True)
        heads.append(jnp.einsum('bqk,bkd->bqd', a, vh,
                                preferred_element_type=jnp.float32))
    attn = jnp.concatenate(heads, axis=-1).reshape(TB * G, D)
    attn = jnp.dot(attn, wo_ref[...], preferred_element_type=jnp.float32) + vecs[0:1, :]

    src = _layer_norm(x2 + attn, vecs[3:4, :], vecs[4:5, :])
    wff = wff_ref[...]
    ff = jnp.maximum(jnp.dot(src, wff[:, :D],
                             preferred_element_type=jnp.float32) + vecs[1:2, :], 0.0)
    ff = jnp.dot(ff, wff[:, D:], preferred_element_type=jnp.float32) + vecs[2:3, :]
    src = _layer_norm(src + ff, vecs[5:6, :], vecs[6:7, :])

    # fused cls/reg gates: [wc1|wr1] then block-diag [wc2, wr2] -> two matmuls for both gates
    h1 = jnp.maximum(jnp.dot(src, wg1_ref[...],
                             preferred_element_type=jnp.float32) + vecs[7:8, :], 0.0)
    gates = jax.nn.sigmoid(jnp.dot(h1, wg2_ref[...],
                                   preferred_element_type=jnp.float32) + bg2_ref[...])  # (TB*G, 2)
    cls = src * gates[:, 0:1]
    reg = src * gates[:, 1:2]
    out_ref[...] = jnp.concatenate([cls, reg], axis=-1).reshape(TB, G, 2 * D)


def encoder_gate(x, p, nhead=4, tb=64):
    """x: (BR, G, D). Returns (cls_features, reg_features), each (BR, G, D)."""
    BR, G, D = x.shape
    TB = min(tb, BR)
    BR_pad = _round_up(BR, TB)
    if BR_pad != BR:
        x = jnp.pad(x, ((0, BR_pad - BR), (0, 0), (0, 0)))

    w_in, b_in, pos = p['w_in'], p['b_in'], p['pos_emb']
    add_q = jnp.dot(pos, w_in[:, :D]) + b_in[:, :D]
    add_k = jnp.dot(pos, w_in[:, D:2 * D]) + b_in[:, D:2 * D]
    add_v = jnp.broadcast_to(b_in[:, 2 * D:], (G, D))
    qkv_add = jnp.concatenate([add_q, add_k, add_v], axis=1)                     # (G, 3D)

    wff = jnp.concatenate([p['w1'], p['w2']], axis=1)                            # (D, 2D)
    wg1 = jnp.concatenate([p['wc1'], p['wr1']], axis=1)                          # (D, D)
    half = D // 2
    zh = jnp.zeros((half, 1), jnp.float32)
    wg2 = jnp.concatenate(
        [jnp.concatenate([p['wc2'], zh], axis=0),
         jnp.concatenate([zh, p['wr2']], axis=0)], axis=1)                       # (D, 2)
    vecs = jnp.concatenate(
        [p['bo'], p['b1'], p['b2'], p['ln1_g'], p['ln1_b'], p['ln2_g'], p['ln2_b'],
         jnp.concatenate([p['bc1'], p['br1']], axis=1)], axis=0)                 # (8, D)
    bg2 = jnp.concatenate([p['bc2'], p['br2']], axis=1)                          # (1, 2)

    kernel = functools.partial(_encoder_gate_kernel, nhead=nhead)
    full = lambda b: (0, 0)
    out = pl.pallas_call(
        kernel,
        out_shape=jax.ShapeDtypeStruct((BR_pad, G, 2 * D), jnp.float32),
        grid_spec=pltpu.PrefetchScalarGridSpec(
            num_scalar_prefetch=0,
            grid=(BR_pad // TB,),
            in_specs=[
                pl.BlockSpec((TB, G, D), lambda b: (b, 0, 0)),
                pl.BlockSpec((G, 3 * D), full),
                pl.BlockSpec((D, 3 * D), full),
                pl.BlockSpec((D, D), full),
                pl.BlockSpec((D, 2 * D), full),
                pl.BlockSpec((D, D), full),
                pl.BlockSpec((D, 2), full),
                pl.BlockSpec((8, D), full),
                pl.BlockSpec((1, 2), full),
            ],
            out_specs=pl.BlockSpec((TB, G, 2 * D), lambda b: (b, 0, 0)),
        ),
        compiler_params=pltpu.CompilerParams(
            dimension_semantics=("parallel",),
            vmem_limit_bytes=64 * 1024 * 1024),
    )(x, qkv_add, w_in, p['wo'], wff, wg1, wg2, vecs, bg2)
    out = out[:BR]
    return out[..., :D], out[..., D:]


# --------------------------------------------------------------------------------------
# Parameter init (deterministic, shapes from PyramidModule.__init__) and full forward
# --------------------------------------------------------------------------------------
def _kaiming(key, shape, fan_in):
    return jax.random.normal(key, shape, jnp.float32) * math.sqrt(2.0 / fan_in)


def init_params(key, c_in, nsamples, grid_sizes, num_heads, head_dims):
    D = num_heads * head_dims
    params = []
    lvl_keys = jax.random.split(key, len(nsamples))
    for i, gs in enumerate(grid_sizes):
        G = gs ** 3
        ks = iter(jax.random.split(lvl_keys[i], 32))
        nxt = lambda: next(ks)
        p = {
            'wpos': _kaiming(nxt(), (3, D), 3),
            'wkey': _kaiming(nxt(), (c_in, D), c_in),
            'wv1': _kaiming(nxt(), (c_in, D), c_in),
            'wv2': _kaiming(nxt(), (D, D), D),
            'wv_coef': _kaiming(nxt(), (D, D), D),
            'wq_coef': _kaiming(nxt(), (D, D), D),
            'wk_coef': _kaiming(nxt(), (D, D), D),
            'wqk_coef': _kaiming(nxt(), (D, D), D),
            'watt': _kaiming(nxt(), (D, num_heads), D),
            'pos_emb': jnp.zeros((G, D), jnp.float32),                  # nn.Parameter(zeros)
            'w_in': jax.random.normal(nxt(), (D, 3 * D), jnp.float32) / math.sqrt(D),
            'b_in': jnp.zeros((1, 3 * D), jnp.float32),
            'wo': jax.random.normal(nxt(), (D, D), jnp.float32) / math.sqrt(D),
            'bo': jnp.zeros((1, D), jnp.float32),
            'ln1_g': jnp.ones((1, D), jnp.float32), 'ln1_b': jnp.zeros((1, D), jnp.float32),
            'w1': _kaiming(nxt(), (D, D), D), 'b1': jnp.zeros((1, D), jnp.float32),
            'w2': _kaiming(nxt(), (D, D), D), 'b2': jnp.zeros((1, D), jnp.float32),
            'ln2_g': jnp.ones((1, D), jnp.float32), 'ln2_b': jnp.zeros((1, D), jnp.float32),
            'wc1': _kaiming(nxt(), (D, D // 2), D), 'bc1': jnp.zeros((1, D // 2), jnp.float32),
            'wc2': _kaiming(nxt(), (D // 2, 1), D // 2), 'bc2': jnp.zeros((1, 1), jnp.float32),
            'wr1': _kaiming(nxt(), (D, D // 2), D), 'br1': jnp.zeros((1, D // 2), jnp.float32),
            'wr2': _kaiming(nxt(), (D // 2, 1), D // 2), 'br2': jnp.zeros((1, 1), jnp.float32),
        }
        params.append(p)
    return params


def pyramid_module_forward(xyz, xyz_batch_cnt, new_xyz_list, new_xyz_r_list,
                           new_xyz_batch_cnt_list, features, batch_size, num_rois,
                           params, nsamples, grid_sizes, num_heads, head_dims,
                           tr_mode='Normal'):
    # TODO(synk): tr_mode 'NoTr' / 'Residual' variants are not wired; demo uses 'Normal'.
    assert tr_mode == 'Normal'
    # NOTE: eval-mode BatchNorm with fresh running stats is assumed; fold trained stats into
    #       wv1/wv2 when loading a real checkpoint.
    D = num_heads * head_dims
    cls_list, reg_list = [], []
    for i in range(len(nsamples)):
        G = grid_sizes[i] ** 3
        new_xyz = new_xyz_list[i].reshape(-1, 3)
        new_xyz_r = new_xyz_r_list[i].reshape(-1, 1)
        _gxyz, gfeat, _empty = query_and_group(
            xyz, xyz_batch_cnt, new_xyz, new_xyz_r, new_xyz_batch_cnt_list[i],
            features, nsamples[i])
        attend = level_attention(gfeat, params[i], num_heads, head_dims)          # (M, D)
        x = attend.reshape(batch_size * num_rois, G, D)
        cls_f, reg_f = encoder_gate(x, params[i], nhead=4)
        cls_list.append(cls_f)
        reg_list.append(reg_f)
    return jnp.concatenate(cls_list, axis=1), jnp.concatenate(reg_list, axis=1)


# --------------------------------------------------------------------------------------
if __name__ == "__main__":
    key = jax.random.PRNGKey(0)
    B, num_rois, C = 2, 2, 4
    nsamples = (8, 16)
    grid_sizes = (2, 2)
    num_heads, head_dims = 4, 8
    D = num_heads * head_dims
    N_per_batch = 32
    N = B * N_per_batch

    k_xyz, k_feat, k_new, k_par = jax.random.split(key, 4)
    xyz = jax.random.uniform(k_xyz, (N, 3), jnp.float32)
    features = jax.random.normal(k_feat, (N, C), jnp.float32)
    xyz_batch_cnt = (N_per_batch, N_per_batch)

    new_xyz_list, new_xyz_r_list, new_xyz_batch_cnt_list = [], [], []
    radii = (0.75, 0.95)
    lvl_keys = jax.random.split(k_new, len(nsamples))
    for i, gs in enumerate(grid_sizes):
        nq = num_rois * gs ** 3
        new_xyz_list.append(jax.random.uniform(lvl_keys[i], (B, nq, 3), jnp.float32))
        new_xyz_r_list.append(jnp.full((B, nq, 1), radii[i], jnp.float32))
        new_xyz_batch_cnt_list.append((nq,) * B)

    params = init_params(k_par, C + 3, nsamples, grid_sizes, num_heads, head_dims)

    cls_f, reg_f = pyramid_module_forward(
        xyz, xyz_batch_cnt, new_xyz_list, new_xyz_r_list, new_xyz_batch_cnt_list,
        features, B, num_rois, params, nsamples, grid_sizes, num_heads, head_dims,
        tr_mode='Normal')
    jax.block_until_ready((cls_f, reg_f))

    total_G = sum(g ** 3 for g in grid_sizes)
    assert cls_f.shape == (B * num_rois, total_G, D), cls_f.shape
    assert reg_f.shape == (B * num_rois, total_G, D), reg_f.shape
    assert bool(jnp.all(jnp.isfinite(cls_f))) and bool(jnp.all(jnp.isfinite(reg_f)))
    print("KERNEL_OK")
</pallas_src>

<mosaic_0001>
module attributes {stable_mosaic.version = 11 : i64} {
  func.func @_level_attention_kernel(%arg0: i32, %arg1: memref<256x8xf32, #tpu.memory_space<vmem>>, %arg2: memref<8x96xf32, #tpu.memory_space<vmem>>, %arg3: memref<64x64xf32, #tpu.memory_space<vmem>>, %arg4: memref<96x128xf32, #tpu.memory_space<vmem>>, %arg5: memref<32x32xf32, #tpu.memory_space<vmem>>) attributes {dimension_semantics = [#tpu.dimension_semantics<parallel>], iteration_bounds = array<i64: 1>, scalar_prefetch = 0 : i64, scratch_operands = 0 : i64, tpu.core_type = #tpu.core_type<tc>, window_params = [{transform_indices = @transform_0, window_bounds = array<i64: 256, 8>}, {pipeline_mode = #tpu.pipeline_mode<synchronous>, transform_indices = @transform_1, window_bounds = array<i64: 8, 96>}, {pipeline_mode = #tpu.pipeline_mode<synchronous>, transform_indices = @transform_2, window_bounds = array<i64: 64, 64>}, {pipeline_mode = #tpu.pipeline_mode<synchronous>, transform_indices = @transform_3, window_bounds = array<i64: 96, 128>}, {transform_indices = @transform_4, window_bounds = array<i64: 32, 32>}]} {
    %c0 = arith.constant 0 : index
    %c0_0 = arith.constant 0 : index
    %0 = vector.load %arg1[%c0, %c0_0] : memref<256x8xf32, #tpu.memory_space<vmem>>, vector<256x8xf32>
    %c0_1 = arith.constant 0 : index
    %c0_2 = arith.constant 0 : index
    %1 = vector.load %arg2[%c0_1, %c0_2] : memref<8x96xf32, #tpu.memory_space<vmem>>, vector<8x96xf32>
    %cst = arith.constant dense<0.000000e+00> : vector<256x96xf32>
    %2 = tpu.matmul %0, %1, %cst {dimension_numbers = #tpu.dot_dimension_numbers<[1], [0], [0], [1], [0, 0, 1, 1], [], []>} : vector<256x8xf32>, vector<8x96xf32>, vector<256x96xf32> -> vector<256x96xf32>
    %3 = vector.extract_strided_slice %2 {offsets = [0, 0], sizes = [256, 32], strides = [1, 1]} : vector<256x96xf32> to vector<256x32xf32>
    %cst_3 = arith.constant 0.000000e+00 : f32
    %4 = vector.broadcast %cst_3 : f32 to vector<256x32xf32>
    %5 = arith.maximumf %3, %4 : vector<256x32xf32>
    %6 = vector.extract_strided_slice %2 {offsets = [0, 32], sizes = [256, 32], strides = [1, 1]} : vector<256x96xf32> to vector<256x32xf32>
    %cst_4 = arith.constant 0.000000e+00 : f32
    %7 = vector.broadcast %cst_4 : f32 to vector<256x32xf32>
    %8 = arith.maximumf %6, %7 : vector<256x32xf32>
    %9 = vector.extract_strided_slice %2 {offsets = [0, 64], sizes = [256, 32], strides = [1, 1]} : vector<256x96xf32> to vector<256x32xf32>
    %cst_5 = arith.constant 0.999994993 : f32
    %10 = vector.broadcast %cst_5 : f32 to vector<256x32xf32>
    %11 = arith.mulf %9, %10 : vector<256x32xf32>
    %cst_6 = arith.constant 0.000000e+00 : f32
    %12 = vector.broadcast %cst_6 : f32 to vector<256x32xf32>
    %13 = arith.maximumf %11, %12 : vector<256x32xf32>
    %14 = arith.mulf %5, %8 : vector<256x32xf32>
    %15 = vector.shape_cast %5 : vector<256x32xf32> to vector<32x8x32xf32>
    %16 = vector.shape_cast %8 : vector<256x32xf32> to vector<32x8x32xf32>
    %17 = vector.shape_cast %14 : vector<256x32xf32> to vector<32x8x32xf32>
    %cst_7 = arith.constant dense<0.000000e+00> : vector<32x32xf32>
    %18 = vector.multi_reduction <add>, %15, %cst_7 [1] : vector<32x8x32xf32> to vector<32x32xf32>
    %cst_8 = arith.constant dense<0.000000e+00> : vector<32x32xf32>
    %19 = vector.multi_reduction <add>, %16, %cst_8 [1] : vector<32x8x32xf32> to vector<32x32xf32>
    %cst_9 = arith.constant dense<0.000000e+00> : vector<32x32xf32>
    %20 = vector.multi_reduction <add>, %17, %cst_9 [1] : vector<32x8x32xf32> to vector<32x32xf32>
    %21 = tpu.concatenate %18, %19, %20 in 1 : vector<32x32xf32>, vector<32x32xf32>, vector<32x32xf32> -> vector<32x96xf32>
    %cst_10 = arith.constant 1.250000e-01 : f32
    %22 = vector.broadcast %cst_10 : f32 to vector<32x96xf32>
    %23 = arith.mulf %21, %22 : vector<32x96xf32>
    %c0_11 = arith.constant 0 : index
    %c0_12 = arith.constant 0 : index
    %24 = vector.load %arg4[%c0_11, %c0_12] : memref<96x128xf32, #tpu.memory_space<vmem>>, vector<96x128xf32>
    %cst_13 = arith.constant dense<0.000000e+00> : vector<32x128xf32>
    %25 = tpu.matmul %23, %24, %cst_13 {dimension_numbers = #tpu.dot_dimension_numbers<[1], [0], [0], [1], [0, 0, 1, 1], [], []>} : vector<32x96xf32>, vector<96x128xf32>, vector<32x128xf32> -> vector<32x128xf32>
    %26 = arith.negf %25 : vector<32x128xf32>
    %27 = math.exp %26 : vector<32x128xf32>
    %cst_14 = arith.constant 1.000000e+00 : f32
    %28 = vector.broadcast %cst_14 : f32 to vector<32x128xf32>
    %29 = arith.addf %28, %27 : vector<32x128xf32>
    %30 = arith.divf %28, %29 : vector<32x128xf32>
    %31 = vector.extract_strided_slice %30 {offsets = [0, 0], sizes = [32, 32], strides = [1, 1]} : vector<32x128xf32> to vector<32x32xf32>
    %32 = vector.shape_cast %31 : vector<32x32xf32> to vector<32x1x32xf32>
    %33 = vector.extract_strided_slice %30 {offsets = [0, 32], sizes = [32, 32], strides = [1, 1]} : vector<32x128xf32> to vector<32x32xf32>
    %34 = vector.shape_cast %33 : vector<32x32xf32> to vector<32x1x32xf32>
    %35 = vector.extract_strided_slice %30 {offsets = [0, 64], sizes = [32, 32], strides = [1, 1]} : vector<32x128xf32> to vector<32x32xf32>
    %36 = vector.shape_cast %35 : vector<32x32xf32> to vector<32x1x32xf32>
    %37 = vector.extract_strided_slice %30 {offsets = [0, 96], sizes = [32, 32], strides = [1, 1]} : vector<32x128xf32> to vector<32x32xf32>
    %38 = vector.shape_cast %37 : vector<32x32xf32> to vector<32x1x32xf32>
    %39 = vector.broadcast %34 : vector<32x1x32xf32> to vector<32x8x32xf32>
    %40 = arith.mulf %15, %39 : vector<32x8x32xf32>
    %41 = vector.broadcast %36 : vector<32x1x32xf32> to vector<32x8x32xf32>
    %42 = arith.mulf %16, %41 : vector<32x8x32xf32>
    %43 = arith.addf %40, %42 : vector<32x8x32xf32>
    %44 = vector.broadcast %38 : vector<32x1x32xf32> to vector<32x8x32xf32>
    %45 = arith.mulf %17, %44 : vector<32x8x32xf32>
    %46 = arith.addf %43, %45 : vector<32x8x32xf32>
    %47 = vector.shape_cast %46 : vector<32x8x32xf32> to vector<256x32xf32>
    %48 = tpu.concatenate %13, %47 in 1 : vector<256x32xf32>, vector<256x32xf32> -> vector<256x64xf32>
    %c0_15 = arith.constant 0 : index
    %c0_16 = arith.constant 0 : index
    %49 = vector.load %arg3[%c0_15, %c0_16] : memref<64x64xf32, #tpu.memory_space<vmem>>, vector<64x64xf32>
    %cst_17 = arith.constant dense<0.000000e+00> : vector<256x64xf32>
    %50 = tpu.matmul %48, %49, %cst_17 {dimension_numbers = #tpu.dot_dimension_numbers<[1], [0], [0], [1], [0, 0, 1, 1], [], []>} : vector<256x64xf32>, vector<64x64xf32>, vector<256x64xf32> -> vector<256x64xf32>
    %51 = vector.extract_strided_slice %50 {offsets = [0, 0], sizes = [256, 32], strides = [1, 1]} : vector<256x64xf32> to vector<256x32xf32>
    %cst_18 = arith.constant 0.999994993 : f32
    %52 = vector.broadcast %cst_18 : f32 to vector<256x32xf32>
    %53 = arith.mulf %51, %52 : vector<256x32xf32>
    %cst_19 = arith.constant 0.000000e+00 : f32
    %54 = vector.broadcast %cst_19 : f32 to vector<256x32xf32>
    %55 = arith.maximumf %53, %54 : vector<256x32xf32>
    %56 = vector.shape_cast %55 : vector<256x32xf32> to vector<32x8x32xf32>
    %57 = vector.broadcast %32 : vector<32x1x32xf32> to vector<32x8x32xf32>
    %58 = arith.mulf %15, %57 : vector<32x8x32xf32>
    %59 = arith.addf %56, %58 : vector<32x8x32xf32>
    %60 = vector.extract_strided_slice %50 {offsets = [0, 32], sizes = [256, 32], strides = [1, 1]} : vector<256x64xf32> to vector<256x32xf32>
    %61 = vector.shape_cast %60 : vector<256x32xf32> to vector<32x8x32xf32>
    %cst_20 = arith.constant dense<0xFF800000> : vector<32x32xf32>
    %62 = vector.multi_reduction <maximumf>, %61, %cst_20 [1] : vector<32x8x32xf32> to vector<32x32xf32>
    %63 = vector.shape_cast %62 : vector<32x32xf32> to vector<32x1x32xf32>
    %64 = vector.broadcast %63 : vector<32x1x32xf32> to vector<32x8x32xf32>
    %65 = arith.subf %61, %64 : vector<32x8x32xf32>
    %66 = math.exp %65 : vector<32x8x32xf32>
    %cst_21 = arith.constant dense<0.000000e+00> : vector<32x32xf32>
    %67 = vector.multi_reduction <add>, %66, %cst_21 [1] : vector<32x8x32xf32> to vector<32x32xf32>
    %68 = vector.shape_cast %67 : vector<32x32xf32> to vector<32x1x32xf32>
    %69 = tpu.reciprocal %68 {approx = true} : vector<32x1x32xf32> -> vector<32x1x32xf32>
    %70 = vector.broadcast %69 : vector<32x1x32xf32> to vector<32x8x32xf32>
    %71 = arith.mulf %66, %70 : vector<32x8x32xf32>
    %72 = arith.mulf %71, %59 : vector<32x8x32xf32>
    %cst_22 = arith.constant dense<0.000000e+00> : vector<32x32xf32>
    %73 = vector.multi_reduction <add>, %72, %cst_22 [1] : vector<32x8x32xf32> to vector<32x32xf32>
    %c0_23 = arith.constant 0 : index
    %c0_24 = arith.constant 0 : index
    %74 = vector.load %arg5[%c0_23, %c0_24] : memref<32x32xf32, #tpu.memory_space<vmem>>, vector<32x32xf32>
    tpu.vector_store %arg5[%c0_23, %c0_24], %73 {strides = array<i32>} : memref<32x32xf32, #tpu.memory_space<vmem>>, vector<32x32xf32>,
    return
  }
  func.func @transform_0(%arg0: i32) -> (i32, i32) {
    %c0_i32 = arith.constant 0 : i32
    %c0_i32_0 = arith.constant 0 : i32
    return %arg0, %c0_i32 : i32, i32
  }
  func.func @transform_1(%arg0: i32) -> (i32, i32) {
    %c0_i32 = arith.constant 0 : i32
    %c0_i32_0 = arith.constant 0 : i32
    %c0_i32_1 = arith.constant 0 : i32
    return %c0_i32, %c0_i32_0 : i32, i32
  }
  func.func @transform_2(%arg0: i32) -> (i32, i32) {
    %c0_i32 = arith.constant 0 : i32
    %c0_i32_0 = arith.constant 0 : i32
    %c0_i32_1 = arith.constant 0 : i32
    return %c0_i32, %c0_i32_0 : i32, i32
  }
  func.func @transform_3(%arg0: i32) -> (i32, i32) {
    %c0_i32 = arith.constant 0 : i32
    %c0_i32_0 = arith.constant 0 : i32
    %c0_i32_1 = arith.constant 0 : i32
    return %c0_i32, %c0_i32_0 : i32, i32
  }
  func.func @transform_4(%arg0: i32) -> (i32, i32) {
    %c0_i32 = arith.constant 0 : i32
    %c0_i32_0 = arith.constant 0 : i32
    return %arg0, %c0_i32 : i32, i32
  }
}

</mosaic_0001>

<bundles_post_ra>
// kernel: tpu_custom_call.1
= control target key start
LH: loop header
LB: loop body
LE: loop exit
PB: predicated region body
PF: predicated region fallthrough
CT: control target
= control target key end

     0   :  { %vm51_vm0 = vcmask 64512   ;;  %s7583_s0 = inlined_call_operand.vmem [shape: f32[256,8], index: 0, kind: input, shape index: {}]   ;;  %s7584_s1 = inlined_call_operand.vmem [shape: f32[8,96], index: 1, kind: input, shape index: {}]   ;;  %s7585_s2 = inlined_call_operand.vmem [shape: f32[64,64], index: 2, kind: input, shape index: {}]   ;;  %s7586_s3 = inlined_call_operand.vmem [shape: f32[96,128], index: 3, kind: input, shape index: {}]   ;;  %s7587_s4 = inlined_call_operand.hbm [shape: f32[32,32], index: 4, kind: output, shape index: {}]  }
   0x1   :  { %v50_v0 = vld [vmem:[%s7584_s1] sm:$0xff]  ;;  %v19_v2 = vld [vmem:[%s7583_s0 + $0x8] sm:$0xff]  ;;  %v20_v3 = vld [vmem:[%s7583_s0 + $0x10] sm:$0xff] }
   0x2   :  { %v18_v1 = vld [vmem:[%s7583_s0] sm:$0xff]  ;;  %4455 = vmatprep.subr.mxu0 %v50_v0  ;;  %v21_v4 = vld [vmem:[%s7583_s0 + $0x18] sm:$0xff]  ;;  %v23_v6 = vld [vmem:[%s7583_s0 + $0x28] sm:$0xff] }
   0x3   :  { %4457 = vmatprep.mubr.msk.f32.mxu0 %vm51_vm0, %v18_v1  ;;  %4456 = vmatpush3.msra.mxu0 %v50_v0  ;;  %v22_v5 = vld [vmem:[%s7583_s0 + $0x20] sm:$0xff]  ;;  %v24_v7 = vld [vmem:[%s7583_s0 + $0x30] sm:$0xff] }
   0x4   :  { %4458 = vmatmul.mubr.msk.f32.vlgmr.msra.gmra.mxu0 %vm51_vm0, %v19_v2 }
   0x5   :  { %4460 = vmatprep.mubr.msk.f32.mxu0 %vm51_vm0, %v20_v3 }
   0x8   :  { %4461 = vmatmul.mubr.msk.f32.gmra.mxu0 %vm51_vm0, %v21_v4 }
   0x9   :  { %4463 = vmatprep.mubr.msk.f32.mxu0 %vm51_vm0, %v22_v5 }
   0xc   :  { %4464 = vmatmul.mubr.msk.f32.gmra.mxu0 %vm51_vm0, %v23_v6 }
   0xd   :  { %9 = vsyncpa [#allocation3], 0  ;;  %4466 = vmatprep.mubr.msk.f32.mxu0 %vm51_vm0, %v24_v7  ;;  %v25_v8 = vld [vmem:[%s7583_s0 + $0x38] sm:$0xff]  ;;  %v26_v9 = vld [vmem:[%s7583_s0 + $0x40] sm:$0xff]  ;;  %s4772_s26 = smov 96   ;;  %vm629_vm1 = vcmask 261120  }
   0xe   :  { %v27_v10 = vld [vmem:[%s7583_s0 + $0x48] sm:$0xff]  ;;  %v28_v11 = vld [vmem:[%s7583_s0 + $0x50] sm:$0xff]  ;;  %v29_v12 = vld [vmem:[%s7583_s0 + $0x58] sm:$0xff]  ;;  %vm854_vm2 = vcmask 523520   ;;  %vm1335_vm3 = vcmask 1041409   ;;  %vm1337_vm4 = vcmask 1042434  }
   0xf   :  { %v30_v13 = vld [vmem:[%s7583_s0 + $0x60] sm:$0xff]  ;;  %v31_v14 = vld [vmem:[%s7583_s0 + $0x68] sm:$0xff]  ;;  %v32_v15 = vld [vmem:[%s7583_s0 + $0x70] sm:$0xff]  ;;  %vm1339_vm5 = vcmask 1043459   ;;  %vm1341_vm6 = vcmask 1044484   ;;  %vm1343_vm7 = vcmask 1045509  }
  0x10   :  { %4467 = vmatmul.mubr.msk.f32.gmra.mxu0 %vm51_vm0, %v25_v8  ;;  %v33_v16 = vld [vmem:[%s7583_s0 + $0x78] sm:$0xff]  ;;  %v34_v17 = vld [vmem:[%s7583_s0 + $0x80] sm:$0xff]  ;;  %v35_v18 = vld [vmem:[%s7583_s0 + $0x88] sm:$0xff]  ;;  %vm1345_vm8 = vcmask 1046534   ;;  %vm1347_vm9 = vcmask 1047559   ;;  %vm1514_vm10 = vcmask 523264  }
  0x11   :  { %4469 = vmatprep.mubr.msk.f32.mxu0 %vm51_vm0, %v26_v9  ;;  %v36_v19 = vld [vmem:[%s7583_s0 + $0x90] sm:$0xff]  ;;  %v37_v20 = vld [vmem:[%s7583_s0 + $0x98] sm:$0xff]  ;;  %v38_v21 = vld [vmem:[%s7583_s0 + $0xa0] sm:$0xff]  ;;  %vm1535_vm11 = vcmask 785408   ;;  %s4775_s23 = smov 32  }
  0x12   :  { %v39_v22 = vld [vmem:[%s7583_s0 + $0xa8] sm:$0xff]  ;;  %v40_v23 = vld [vmem:[%s7583_s0 + $0xb0] sm:$0xff]  ;;  %v41_v24 = vld [vmem:[%s7583_s0 + $0xb8] sm:$0xff] }
  0x13   :  { %v42_v25 = vld [vmem:[%s7583_s0 + $0xc0] sm:$0xff]  ;;  %v43_v26 = vld [vmem:[%s7583_s0 + $0xc8] sm:$0xff]  ;;  %v44_v27 = vld [vmem:[%s7583_s0 + $0xd0] sm:$0xff] }
  0x14   :  { %4470 = vmatmul.mubr.msk.f32.gmra.mxu0 %vm51_vm0, %v27_v10  ;;  %v45_v28 = vld [vmem:[%s7583_s0 + $0xd8] sm:$0xff]  ;;  %v46_v29 = vld [vmem:[%s7583_s0 + $0xe0] sm:$0xff]  ;;  %v47_v30 = vld [vmem:[%s7583_s0 + $0xe8] sm:$0xff] }
  0x15   :  { %4472 = vmatprep.mubr.msk.f32.mxu0 %vm51_vm0, %v28_v11  ;;  %v48_v31 = vld [vmem:[%s7583_s0 + $0xf0] sm:$0xff]  ;;  %v49_v32 = vld [vmem:[%s7583_s0 + $0xf8] sm:$0xff] }
  0x18   :  { %4473 = vmatmul.mubr.msk.f32.gmra.mxu0 %vm51_vm0, %v29_v12 }
  0x19   :  { %4475 = vmatprep.mubr.msk.f32.mxu0 %vm51_vm0, %v30_v13 }
  0x1c   :  { %4476 = vmatmul.mubr.msk.f32.gmra.mxu0 %vm51_vm0, %v31_v14 }
  0x1d   :  { %4478 = vmatprep.mubr.msk.f32.mxu0 %vm51_vm0, %v32_v15 }
  0x20   :  { %4479 = vmatmul.mubr.msk.f32.gmra.mxu0 %vm51_vm0, %v33_v16 }
  0x21   :  { %4481 = vmatprep.mubr.msk.f32.mxu0 %vm51_vm0, %v34_v17 }
  0x24   :  { %4482 = vmatmul.mubr.msk.f32.gmra.mxu0 %vm51_vm0, %v35_v18 }
  0x25   :  { %4484 = vmatprep.mubr.msk.f32.mxu0 %vm51_vm0, %v36_v19 }
  0x28   :  { %4485 = vmatmul.mubr.msk.f32.gmra.mxu0 %vm51_vm0, %v37_v20 }
  0x29   :  { %4487 = vmatprep.mubr.msk.f32.mxu0 %vm51_vm0, %v38_v21 }
  0x2c   :  { %4488 = vmatmul.mubr.msk.f32.gmra.mxu0 %vm51_vm0, %v39_v22 }
  0x2d   :  { %4490 = vmatprep.mubr.msk.f32.mxu0 %vm51_vm0, %v40_v23 }
  0x30   :  { %4491 = vmatmul.mubr.msk.f32.gmra.mxu0 %vm51_vm0, %v41_v24 }
  0x31   :  { %4493 = vmatprep.mubr.msk.f32.mxu0 %vm51_vm0, %v42_v25 }
  0x34   :  { %4494 = vmatmul.mubr.msk.f32.gmra.mxu0 %vm51_vm0, %v43_v26 }
  0x35   :  { %4496 = vmatprep.mubr.msk.f32.mxu0 %vm51_vm0, %v44_v27 }
  0x38   :  { %4497 = vmatmul.mubr.msk.f32.gmra.mxu0 %vm51_vm0, %v45_v28 }
  0x39   :  { %4499 = vmatprep.mubr.msk.f32.mxu0 %vm51_vm0, %v46_v29 }
  0x3c   :  { %4500 = vmatmul.mubr.msk.f32.gmra.mxu0 %vm51_vm0, %v47_v30 }
  0x3d   :  { %4502 = vmatprep.mubr.msk.f32.mxu0 %vm51_vm0, %v48_v31 }
  0x40   :  { %4503 = vmatmul.mubr.msk.f32.gmra.mxu0 %vm51_vm0, %v49_v32 }
  0xc4   :  { %v4935_v33 = vpop.f32.mrf.mxu0 }
  0xc5   :  { %7815 = vst [vmem:[#allocation5_spill] sm:$0xff] %v4935_v33  ;;  %v4938_v34 = vmax.f32 %v4935_v33, 0.0 }
  0xc6   :  { %v4940_v35 = vpop.f32.mrf.mxu0 }
  0xc7   :  { %7816 = vst [vmem:[#allocation6_spill] sm:$0xff] %v4938_v34  ;;  %7817 = vst [vmem:[#allocation7_spill] sm:$0xff] %v4940_v35  ;;  %503 = vrot.lane.b32.xlu0 %v4938_v34, %s4772_s26  ;;  %v4947_v37 = vmax.f32 %v4940_v35, 0.0 }
  0xc8   :  { %v4944_v36 = vpop.f32.mrf.mxu0 }
  0xc9   :  { %7818 = vst [vmem:[#allocation8_spill] sm:$0xff] %v4944_v36  ;;  %7819 = vst [vmem:[#allocation9_spill] sm:$0xff] %v4947_v37  ;;  %v4950_v38 = vmax.f32 %v4944_v36, 0.0 }
  0xca   :  { %v4952_v39 = vpop.f32.mrf.mxu0 }
  0xcb   :  { %7820 = vst [vmem:[#allocation10_spill] sm:$0xff] %v4950_v38  ;;  %7821 = vst [vmem:[#allocation11_spill] sm:$0xff] %v4952_v39  ;;  %501 = vrot.lane.b32.xlu0 %v4947_v37, %s4772_s26  ;;  %507 = vrot.lane.b32.xlu1 %v4950_v38, %s4772_s26  ;;  %v4961_v41 = vmax.f32 %v4952_v39, 0.0 }
  0xcc   :  { %v4958_v40 = vpop.f32.mrf.mxu0 }
  0xcd   :  { %7822 = vst [vmem:[#allocation12_spill] sm:$0xff] %v4958_v40  ;;  %7823 = vst [vmem:[#allocation13_spill] sm:$0xff] %v4961_v41  ;;  %v4970_v44 = vmax.f32 %v4958_v40, 0.0 }
  0xce   :  { %v4963_v42 = vpop.f32.mrf.mxu0 }
  0xcf   :  { %7824 = vst [vmem:[#allocation14_spill] sm:$0xff] %v4963_v42  ;;  %505 = vrot.lane.b32.xlu1 %v4961_v41, %s4772_s26  ;;  %7826 = vst [vmem:[#allocation16_spill] sm:$0xff] %v4970_v44  ;;  %v4979_v47 = vmax.f32 %v4963_v42, 0.0 }
  0xd0   :  { %v4967_v43 = vpop.f32.mrf.mxu0 }
  0xd1   :  { %7825 = vst [vmem:[#allocation15_spill] sm:$0xff] %v4967_v43  ;;  %7829 = vst [vmem:[#allocation19_spill] sm:$0xff] %v4979_v47  ;;  %v5019_v59 = vmax.f32 %v4967_v43, 0.0 }
  0xd2   :  { %v4972_v45 = vpop.f32.mrf.mxu0 }
  0xd3   :  { %7827 = vst [vmem:[#allocation17_spill] sm:$0xff] %v4972_v45  ;;  %511 = vrot.lane.b32.xlu1 %v4970_v44, %s4772_s26  ;;  %v4991_v51 = vmax.f32 %v4972_v45, 0.0  ;;  %7841 = vst [vmem:[#allocation31_spill] sm:$0xff] %v5019_v59 }
  0xd4   :  { %v4976_v46 = vpop.f32.mrf.mxu0 }
  0xd5   :  { %7828 = vst [vmem:[#allocation18_spill] sm:$0xff] %v4976_v46  ;;  %v4984_v49 = vmax.f32 %v4976_v46, 0.0  ;;  %7833 = vst [vmem:[#allocation23_spill] sm:$0xff] %v4991_v51 }
  0xd6   :  { %v4981_v48 = vpop.f32.mrf.mxu0 }
  0xd7   :  { %7830 = vst [vmem:[#allocation20_spill] sm:$0xff] %v4981_v48  ;;  %7831 = vst [vmem:[#allocation21_spill] sm:$0xff] %v4984_v49  ;;  %509 = vrot.lane.b32.xlu1 %v4979_v47, %s4772_s26  ;;  %519 = vrot.lane.b32.xlu0 %v4984_v49, %s4772_s26  ;;  %v5005_v55 = vmax.f32 %v4981_v48, 0.0 }
  0xd8   :  { %v4988_v50 = vpop.f32.mrf.mxu0 }
  0xd9   :  { %7832 = vst [vmem:[#allocation22_spill] sm:$0xff] %v4988_v50  ;;  %v4998_v53 = vmax.f32 %v4988_v50, 0.0  ;;  %7837 = vst [vmem:[#allocation27_spill] sm:$0xff] %v5005_v55 }
  0xda   :  { %v4995_v52 = vpop.f32.mrf.mxu0 }
  0xdb   :  { %7834 = vst [vmem:[#allocation24_spill] sm:$0xff] %v4995_v52  ;;  %7835 = vst [vmem:[#allocation25_spill] sm:$0xff] %v4998_v53  ;;  %513 = vrot.lane.b32.xlu1 %v4991_v51, %s4772_s26  ;;  %523 = vrot.lane.b32.xlu0 %v4998_v53, %s4772_s26  ;;  %v5012_v57 = vmax.f32 %v4995_v52, 0.0 }
  0xdc   :  { %v5002_v54 = vpop.f32.mrf.mxu0 }
  0xdd   :  { %7836 = vst [vmem:[#allocation26_spill] sm:$0xff] %v5002_v54  ;;  %7839 = vst [vmem:[#allocation29_spill] sm:$0xff] %v5012_v57  ;;  %v5030_v62 = vmax.f32 %v5002_v54, 0.0 }
  0xde   :  { %v5009_v56 = vpop.f32.mrf.mxu0 }
  0xdf   :  { %7838 = vst [vmem:[#allocation28_spill] sm:$0xff] %v5009_v56  ;;  %517 = vrot.lane.b32.xlu1 %v5005_v55, %s4772_s26  ;;  %521 = vrot.lane.b32.xlu0 %v5012_v57, %s4772_s26  ;;  %7844 = vst [vmem:[#allocation34_spill] sm:$0xff] %v5030_v62  ;;  %v5039_v1 = vmax.f32 %v5009_v56, 0.0 }
  0xe0   :  { %v5016_v58 = vpop.f32.mrf.mxu0 }
  0xe1   :  { %7840 = vst [vmem:[#allocation30_spill] sm:$0xff] %v5016_v58  ;;  %7847 = vst [vmem:[#allocation37_spill] sm:$0xff] %v5039_v1  ;;  %v5042_v2 = vmax.f32 %v5016_v58, 0.0 }
  0xe2   :  { %v5023_v60 = vpop.f32.mrf.mxu0 }
  0xe3   :  { %7842 = vst [vmem:[#allocation32_spill] sm:$0xff] %v5023_v60  ;;  %515 = vrot.lane.b32.xlu1 %v5019_v59, %s4772_s26  ;;  %527 = vrot.lane.b32.xlu0 %v5030_v62, %s4772_s26  ;;  %7848 = vst [vmem:[#allocation38_spill] sm:$0xff] %v5042_v2  ;;  %v5056_v6 = vmax.f32 %v5023_v60, 0.0 }
  0xe4   :  { %v5027_v61 = vpop.f32.mrf.mxu0 }
  0xe5   :  { %7843 = vst [vmem:[#allocation33_spill] sm:$0xff] %v5027_v61  ;;  %v5047_v4 = vmax.f32 %v5027_v61, 0.0  ;;  %7852 = vst [vmem:[#allocation42_spill] sm:$0xff] %v5056_v6  ;;  %v876_v61 = vsel %vm854_vm2, %v4950_v38, 0.0 }
  0xe6   :  { %v5032_v63 = vpop.f32.mrf.mxu0  ;;  %v877_v56 = vrot.slane %v876_v61, 4 }
  0xe7   :  { %7845 = vst [vmem:[#allocation35_spill] sm:$0xff] %v5032_v63  ;;  %7850 = vst [vmem:[#allocation40_spill] sm:$0xff] %v5047_v4  ;;  %525 = vrot.lane.b32.xlu0 %v5039_v1, %s4772_s26  ;;  %531 = vrot.lane.b32.xlu1 %v5042_v2, %s4772_s26  ;;  %v5061_v8 = vmax.f32 %v5032_v63, 0.0 }
  0xe8   :  { %v5036_v0 = vpop.f32.mrf.mxu0 }
  0xe9   :  { %7846 = vst [vmem:[#allocation36_spill] sm:$0xff] %v5036_v0  ;;  %7854 = vst [vmem:[#allocation44_spill] sm:$0xff] %v5061_v8  ;;  %v5064_v9 = vmax.f32 %v5036_v0, 0.0 }
  0xea   :  { %v5044_v3 = vpop.f32.mrf.mxu0 }
  0xeb   :  { %7849 = vst [vmem:[#allocation39_spill] sm:$0xff] %v5044_v3  ;;  %7855 = vst [vmem:[#allocation45_spill] sm:$0xff] %v5064_v9  ;;  %529 = vrot.lane.b32.xlu0 %v5056_v6, %s4772_s26  ;;  %535 = vrot.lane.b32.xlu1 %v5047_v4, %s4772_s26  ;;  %v5073_v11 = vmax.f32 %v5044_v3, 0.0  ;;  %v651_v3 = vsel %vm629_vm1, %v4950_v38, 0.0 }
  0xec   :  { %v5053_v5 = vpop.f32.mrf.mxu0 }
  0xed   :  { %7851 = vst [vmem:[#allocation41_spill] sm:$0xff] %v5053_v5  ;;  %7857 = vst [vmem:[#allocation47_spill] sm:$0xff] %v5073_v11  ;;  %v5086_v14 = vmax.f32 %v5053_v5, 0.0 }
  0xee   :  { %v5058_v7 = vpop.f32.mrf.mxu0 }
  0xef   :  { %7853 = vst [vmem:[#allocation43_spill] sm:$0xff] %v5058_v7  ;;  %533 = vrot.lane.b32.xlu0 %v5061_v8, %s4772_s26  ;;  %539 = vrot.lane.b32.xlu1 %v5064_v9, %s4772_s26  ;;  %7860 = vst [vmem:[#allocation50_spill] sm:$0xff] %v5086_v14  ;;  %v5089_v15 = vmax.f32 %v5058_v7, 0.0 }
  0xf0   :  { %v5070_v10 = vpop.f32.mrf.mxu0 }
  0xf1   :  { %7856 = vst [vmem:[#allocation46_spill] sm:$0xff] %v5070_v10  ;;  %7861 = vst [vmem:[#allocation51_spill] sm:$0xff] %v5089_v15  ;;  %v5122_v24 = vmax.f32 %v5070_v10, 0.0 }
  0xf2   :  { %v5079_v12 = vpop.f32.mrf.mxu0 }
  0xf3   :  { %7858 = vst [vmem:[#allocation48_spill] sm:$0xff] %v5079_v12  ;;  %537 = vrot.lane.b32.xlu0 %v5073_v11, %s4772_s26  ;;  %543 = vrot.lane.b32.xlu1 %v5086_v14, %s4772_s26  ;;  %v5096_v17 = vmax.f32 %v5079_v12, 0.0  ;;  %7870 = vst [vmem:[#allocation60_spill] sm:$0xff] %v5122_v24 }
  0xf4   :  { %v5083_v13 = vpop.f32.mrf.mxu0 }
  0xf5   :  { %7859 = vst [vmem:[#allocation49_spill] sm:$0xff] %v5083_v13  ;;  %7863 = vst [vmem:[#allocation53_spill] sm:$0xff] %v5096_v17  ;;  %v5099_v18 = vmax.f32 %v5083_v13, 0.0 }
  0xf6   :  { %v5093_v16 = vpop.f32.mrf.mxu0 }
  0xf7   :  { %7862 = vst [vmem:[#allocation52_spill] sm:$0xff] %v5093_v16  ;;  %7864 = vst [vmem:[#allocation54_spill] sm:$0xff] %v5099_v18  ;;  %541 = vrot.lane.b32.xlu1 %v5089_v15, %s4772_s26  ;;  %551 = vrot.lane.b32.xlu0 %v5099_v18, %s4772_s26  ;;  %v5108_v20 = vmax.f32 %v5093_v16, 0.0  ;;  %v855_v16 = vsel %vm854_vm2, %v4947_v37, 0.0 }
  0xf8   :  { %v5103_v19 = vpop.f32.mrf.mxu0 }
  0xf9   :  { %7865 = vst [vmem:[#allocation55_spill] sm:$0xff] %v5103_v19  ;;  %7866 = vst [vmem:[#allocation56_spill] sm:$0xff] %v5108_v20  ;;  %v5111_v21 = vmax.f32 %v5103_v19, 0.0  ;;  %v1530_v19 = vld [vmem:[%s7586_s3 + $0x38] sm:$0xff] }
  0xfa   :  { %v5115_v22 = vpop.f32.mrf.mxu0 }
  0xfb   :  { %7867 = vst [vmem:[#allocation57_spill] sm:$0xff] %v5111_v21  ;;  %545 = vrot.lane.b32.xlu1 %v5096_v17, %s4772_s26  ;;  %7868 = vst [vmem:[#allocation58_spill] sm:$0xff] %v5115_v22  ;;  %555 = vrot.lane.b32.xlu0 %v5111_v21, %s4772_s26  ;;  %v5125_v25 = vmax.f32 %v5115_v22, 0.0 }
  0xfc   :  { %v5119_v23 = vpop.f32.mrf.mxu0 }
  0xfd   :  { %7869 = vst [vmem:[#allocation59_spill] sm:$0xff] %v5119_v23  ;;  %7871 = vst [vmem:[#allocation61_spill] sm:$0xff] %v5125_v25  ;;  %v5136_v27 = vmax.f32 %v5119_v23, 0.0  ;;  %v1534_v23 = vld [vmem:[%s7586_s3 + $0x58] sm:$0xff] }
  0xfe   :  { %v5131_v26 = vpop.f32.mrf.mxu0  ;;  %4505 = vmatprep.subr.mxu0 %v1534_v23 }
  0xff   :  { %549 = vrot.lane.b32.xlu1 %v5108_v20, %s4772_s26  ;;  %553 = vrot.lane.b32.xlu0 %v5125_v25, %s4772_s26  ;;  %7872 = vst [vmem:[#allocation62_spill] sm:$0xff] %v5131_v26  ;;  %7873 = vst [vmem:[#allocation63_spill] sm:$0xff] %v5136_v27  ;;  %v5141_v29 = vmax.f32 %v5131_v26, 0.0  ;;  %v1532_v26 = vld [vmem:[%s7586_s3 + $0x48] sm:$0xff] }
 0x100   :  { %v5138_v28 = vpop.f32.mrf.mxu0  ;;  %4506 = vmatpush3.msra.mxu0 %v1534_v23  ;;  %v1529_v23 = vld [vmem:[%s7586_s3 + $0x30] sm:$0xff] }
 0x101   :  { %7874 = vst [vmem:[#allocation64_spill] sm:$0xff] %v5138_v28  ;;  %7875 = vst [vmem:[#allocation65_spill] sm:$0xff] %v5141_v29  ;;  %v5148_v31 = vmax.f32 %v5138_v28, 0.0  ;;  %v1533_v28 = vld [vmem:[%s7586_s3 + $0x50] sm:$0xff] }
 0x102   :  { %v5145_v30 = vpop.f32.mrf.mxu0  ;;  %4507 = vmatprep.subr.mxu0 %v1533_v28 }
 0x103   :  { %547 = vrot.lane.b32.xlu1 %v5122_v24, %s4772_s26  ;;  %559 = vrot.lane.b32.xlu0 %v5136_v27, %s4772_s26  ;;  %7876 = vst [vmem:[#allocation66_spill] sm:$0xff] %v5145_v30  ;;  %7877 = vst [vmem:[#allocation67_spill] sm:$0xff] %v5148_v31  ;;  %v5155_v32 = vmax.f32 %v5145_v30, 0.0  ;;  %v1531_v30 = vld [vmem:[%s7586_s3 + $0x40] sm:$0xff] }
 0x104   :  { %4508 = vmatpush3.msra.mxu0 %v1533_v28  ;;  %v1528_v28 = vld [vmem:[%s7586_s3 + $0x28] sm:$0xff] }
 0x105   :  { %7878 = vst [vmem:[#allocation68_spill] sm:$0xff] %v5155_v32  ;;  %4509 = vmatprep.subr.mxu0 %v1532_v26 }
 0x106   :  { %4510 = vmatpush3.msra.mxu0 %v1532_v26  ;;  %v1527_v26 = vld [vmem:[%s7586_s3 + $0x20] sm:$0xff] }
 0x107   :  { %557 = vrot.lane.b32.xlu0 %v5141_v29, %s4772_s26  ;;  %563 = vrot.lane.b32.xlu1 %v5148_v31, %s4772_s26 }
 0x108   :  { %4511 = vmatprep.subr.mxu0 %v1531_v30 }
 0x109   :  { %4512 = vmatpush3.msra.mxu0 %v1531_v30  ;;  %v1526_v30 = vld [vmem:[%s7586_s3 + $0x18] sm:$0xff] }
 0x10a   :  { %4513 = vmatprep.subr.mxu0 %v1530_v19 }
 0x10b   :  { %561 = vrot.lane.b32.xlu0 %v5155_v32, %s4772_s26  ;;  %4514 = vmatpush3.msra.mxu0 %v1530_v19  ;;  %v1525_v19 = vld [vmem:[%s7586_s3 + $0x10] sm:$0xff] }
 0x10c   :  { %4515 = vmatprep.subr.mxu0 %v1529_v23 }
 0x10d   :  { %4516 = vmatpush3.msra.mxu0 %v1529_v23  ;;  %v637_v23 = vsel %vm629_vm1, %v4938_v34, 0.0 }
 0x10e   :  { %4517 = vmatprep.subr.mxu0 %v1528_v28  ;;  %v638_v22 = vrot.slane %v637_v23, 4 }
 0x10f   :  { %4518 = vmatpush3.msra.mxu0 %v1528_v28  ;;  %v862_v28 = vsel %vm854_vm2, %v4938_v34, 0.0 }
 0x110   :  { %4519 = vmatprep.subr.mxu0 %v1527_v26  ;;  %v863_v13 = vrot.slane %v862_v28, 4 }
 0x111   :  { %4520 = vmatpush3.msra.mxu0 %v1527_v26  ;;  %v630_v26 = vsel %vm629_vm1, %v4947_v37, 0.0 }
 0x112   :  { %4521 = vmatprep.subr.mxu0 %v1526_v30  ;;  %v631_v10 = vrot.slane %v630_v26, 4  ;;  %v864_v12 = vadd.f32 %v863_v13, %v862_v28 }
 0x113   :  { %4522 = vmatpush3.msra.mxu0 %v1526_v30  ;;  %v639_v30 = vadd.f32 %v638_v22, %v637_v23  ;;  %v644_v23 = vsel %vm629_vm1, %v4961_v41, 0.0 }
 0x114   :  { %4523 = vmatprep.subr.mxu0 %v1525_v19  ;;  %v632_v0 = vadd.f32 %v631_v10, %v630_v26  ;;  %v865_v60 = vrot.slane %v864_v12, 2  ;;  %v652_v26 = vrot.slane %v651_v3, 4  ;;  %v645_v52 = vrot.slane %v644_v23, 4 }
 0x115   :  { %4524 = vmatpush3.msra.mxu0 %v1525_v19  ;;  %v856_v19 = vrot.slane %v855_v16, 4  ;;  %v640_v58 = vrot.slane %v639_v30, 2 }
 0x116   :  { %v5222_v46 = vadd.f32 %v865_v60, %v864_v12  ;;  %v5227_v43 = vadd.f32 %v652_v26, %v651_v3  ;;  %v646_v12 = vadd.f32 %v645_v52, %v644_v23  ;;  %v5244_v52 = vsel %vm629_vm1, %v4970_v44, 0.0 }
 0x117   :  { %v857_v54 = vadd.f32 %v856_v19, %v855_v16  ;;  %v5220_v50 = vadd.f32 %v640_v58, %v639_v30 }
 0x118   :  { %7883 = vst [vmem:[#allocation73_spill] sm:$0xff] %v5222_v46 }
 0x119   :  { %7882 = vst [vmem:[#allocation72_spill] sm:$0xff] %v5220_v50 }
 0x139   :  { %v504_v5 = vpop.permute.xlu0 %503 }
 0x13a   :  { %v5198_v7 = vmul.f32 %v504_v5, %v4938_v34  ;;  %v633_v34 = vrot.slane %v632_v0, 2 }
 0x13c   :  { %7879 = vst [vmem:[#allocation69_spill] sm:$0xff] %v5198_v7  ;;  %v1086_v63 = vsel %vm629_vm1, %v5198_v7, 0.0  ;;  %v869_v7 = vsel %vm854_vm2, %v4961_v41, 0.0  ;;  %v5229_v42 = vadd.f32 %v633_v34, %v632_v0 }
 0x13d   :  { %v502_v22 = vpop.permute.xlu0 %501  ;;  %v508_v13 = vpop.permute.xlu1 %507  ;;  %v1087_v5 = vrot.slane %v1086_v63, 4  ;;  %v870_v45 = vrot.slane %v869_v7, 4 }
 0x13e   :  { %v5209_v10 = vmul.f32 %v502_v22, %v4947_v37  ;;  %v5212_v28 = vmul.f32 %v508_v13, %v4950_v38  ;;  %v858_v13 = vrot.slane %v857_v54, 2  ;;  %7885 = vst [vmem:[#allocation75_spill] sm:$0xff] %v5229_v42 }
 0x13f   :  { %v1088_v38 = vadd.f32 %v1087_v5, %v1086_v63  ;;  %v871_v34 = vadd.f32 %v870_v45, %v869_v7  ;;  %v658_v45 = vsel %vm629_vm1, %v4979_v47, 0.0 }
 0x140   :  { %7880 = vst [vmem:[#allocation70_spill] sm:$0xff] %v5209_v10  ;;  %7881 = vst [vmem:[#allocation71_spill] sm:$0xff] %v5212_v28  ;;  %v1079_v16 = vsel %vm629_vm1, %v5209_v10, 0.0  ;;  %v1100_v19 = vsel %vm629_vm1, %v5212_v28, 0.0  ;;  %v5231_v28 = vadd.f32 %v877_v56, %v876_v61 }
 0x141   :  { %v1080_v22 = vrot.slane %v1079_v16, 4  ;;  %v506_v37 = vpop.permute.xlu1 %505  ;;  %v1101_v10 = vrot.slane %v1100_v19, 4  ;;  %v1089_v3 = vrot.slane %v1088_v38, 2  ;;  %v872_v60 = vrot.slane %v871_v34, 2 }
 0x142   :  { %v5225_v48 = vmul.f32 %v506_v37, %v4961_v41  ;;  %7886 = vst [vmem:[#allocation76_spill] sm:$0xff] %v5231_v28  ;;  %v5237_v37 = vadd.f32 %v858_v13, %v857_v54  ;;  %v647_v54 = vrot.slane %v646_v12, 2  ;;  %v5251_v13 = vsel %vm854_vm2, %v4970_v44, 0.0 }
 0x143   :  { %v1081_v40 = vadd.f32 %v1080_v22, %v1079_v16  ;;  %v1102_v0 = vadd.f32 %v1101_v10, %v1100_v19  ;;  %v1090_v19 = vadd.f32 %v1089_v3, %v1088_v38  ;;  %v5275_v33 = vadd.f32 %v872_v60, %v871_v34 }
 0x144   :  { %7884 = vst [vmem:[#allocation74_spill] sm:$0xff] %v5225_v48  ;;  %v1093_v58 = vsel %vm629_vm1, %v5225_v48, 0.0  ;;  %7887 = vst [vmem:[#allocation77_spill] sm:$0xff] %v5237_v37 }
 0x145   :  { %v1094_v30 = vrot.slane %v1093_v58, 4  ;;  %v1082_v5 = vrot.slane %v1081_v40, 2  ;;  %v512_v26 = vpop.permute.xlu1 %511  ;;  %v1103_v22 = vrot.slane %v1102_v0, 2  ;;  %v1091_v36 = vrot.slane %v1090_v19, 1  ;;  %7892 = vst [vmem:[#allocation82_spill] sm:$0xff] %v5275_v33 }
 0x146   :  { %v5247_v23 = vmul.f32 %v512_v26, %v4970_v44  ;;  %v5260_v26 = vsel %vm854_vm2, %v4979_v47, 0.0  ;;  %v659_v44 = vrot.slane %v658_v45, 4 }
 0x147   :  { %v1095_v56 = vadd.f32 %v1094_v30, %v1093_v58  ;;  %v1083_v58 = vadd.f32 %v1082_v5, %v1081_v40  ;;  %v5267_v40 = vadd.f32 %v647_v54, %v646_v12 }
 0x148   :  { %7888 = vst [vmem:[#allocation78_spill] sm:$0xff] %v5247_v23  ;;  %v1114_v30 = vsel %vm629_vm1, %v5247_v23, 0.0 }
 0x149   :  { %v1096_v7 = vrot.slane %v1095_v56, 2  ;;  %v510_v63 = vpop.permute.xlu1 %509  ;;  %v1115_v61 = vrot.slane %v1114_v30, 4  ;;  %v520_v38 = vpop.permute.xlu0 %519  ;;  %7890 = vst [vmem:[#allocation80_spill] sm:$0xff] %v5267_v40  ;;  %v1084_v39 = vrot.slane %v1083_v58, 1 }
 0x14a   :  { %v5265_v10 = vmul.f32 %v510_v63, %v4979_v47  ;;  %v5270_v23 = vmul.f32 %v520_v38, %v4984_v49  ;;  %v1104_v63 = vadd.f32 %v1103_v22, %v1102_v0  ;;  %v5286_v38 = vsel %vm629_vm1, %v4984_v49, 0.0 }
 0x14b   :  { %v1097_v3 = vadd.f32 %v1096_v7, %v1095_v56  ;;  %v1116_v5 = vadd.f32 %v1115_v61, %v1114_v30  ;;  %v5279_v56 = vadd.f32 %v659_v44, %v658_v45  ;;  %v1092_v22 = vadd.f32 %v1091_v36, %v1090_v19 }
 0x14c   :  { %7889 = vst [vmem:[#allocation79_spill] sm:$0xff] %v5265_v10  ;;  %7891 = vst [vmem:[#allocation81_spill] sm:$0xff] %v5270_v23  ;;  %v1107_v48 = vsel %vm629_vm1, %v5265_v10, 0.0  ;;  %v1142_v12 = vsel %vm629_vm1, %v5270_v23, 0.0  ;;  %v1085_v41 = vadd.f32 %v1084_v39, %v1083_v58 }
 0x14d   :  { %v514_v16 = vpop.permute.xlu1 %513  ;;  %v1108_v47 = vrot.slane %v1107_v48, 4  ;;  %v1117_v61 = vrot.slane %v1116_v5, 2  ;;  %v1143_v54 = vrot.slane %v1142_v12, 4  ;;  %v524_v30 = vpop.permute.xlu0 %523  ;;  %v1098_v60 = vrot.slane %v1097_v3, 1 }
 0x14e   :  { %v5282_v7 = vmul.f32 %v514_v16, %v4991_v51  ;;  %v5289_v0 = vmul.f32 %v524_v30, %v4998_v53  ;;  %v1105_v16 = vrot.slane %v1104_v63, 1 }
 0x14f   :  { %v1109_v34 = vadd.f32 %v1108_v47, %v1107_v48  ;;  %v1144_v44 = vadd.f32 %v1143_v54, %v1142_v12  ;;  %v1118_v37 = vadd.f32 %v1117_v61, %v1116_v5  ;;  %v1099_v39 = vadd.f32 %v1098_v60, %v1097_v3 }
 0x150   :  { %7893 = vst [vmem:[#allocation83_spill] sm:$0xff] %v5282_v7  ;;  %7894 = vst [vmem:[#allocation84_spill] sm:$0xff] %v5289_v0  ;;  %v1121_v45 = vsel %vm629_vm1, %v5282_v7, 0.0  ;;  %v1156_v46 = vsel %vm629_vm1, %v5289_v0, 0.0  ;;  %v1470_v54 = vsel %vm1335_vm3, %v1092_v22, %v1085_v41 }
 0x151   :  { %v518_v10 = vpop.permute.xlu1 %517  ;;  %v1110_v23 = vrot.slane %v1109_v34, 2  ;;  %v1122_v35 = vrot.slane %v1121_v45, 4  ;;  %v1145_v50 = vrot.slane %v1144_v44, 2  ;;  %v1157_v47 = vrot.slane %v1156_v46, 4  ;;  %v522_v36 = vpop.permute.xlu0 %521 }
 0x152   :  { %v5296_v48 = vmul.f32 %v518_v10, %v5005_v55  ;;  %v5299_v12 = vmul.f32 %v522_v36, %v5012_v57  ;;  %v1471_v22 = vsel %vm1337_vm4, %v1099_v39, %v1470_v54 }
 0x153   :  { %v1111_v19 = vadd.f32 %v1110_v23, %v1109_v34  ;;  %v1123_v58 = vadd.f32 %v1122_v35, %v1121_v45  ;;  %v1146_v30 = vadd.f32 %v1145_v50, %v1144_v44  ;;  %v1158_v7 = vadd.f32 %v1157_v47, %v1156_v46 }
 0x154   :  { %7895 = vst [vmem:[#allocation85_spill] sm:$0xff] %v5296_v48  ;;  %7896 = vst [vmem:[#allocation86_spill] sm:$0xff] %v5299_v12  ;;  %v1135_v5 = vsel %vm629_vm1, %v5296_v48, 0.0  ;;  %v1149_v3 = vsel %vm629_vm1, %v5299_v12, 0.0  ;;  %v1119_v23 = vrot.slane %v1118_v37, 1  ;;  %v1106_v44 = vadd.f32 %v1105_v16, %v1104_v63  ;;  %v1524_v63 = vld [vmem:[%s7586_s3 + $0x8] sm:$0xff] }
 0x155   :  { %v516_v61 = vpop.permute.xlu1 %515  ;;  %v1112_v0 = vrot.slane %v1111_v19, 1  ;;  %v1124_v28 = vrot.slane %v1123_v58, 2  ;;  %v1136_v10 = vrot.slane %v1135_v5, 4  ;;  %v1159_v35 = vrot.slane %v1158_v7, 2  ;;  %v528_v46 = vpop.permute.xlu0 %527  ;;  %4525 = vmatprep.subr.mxu0 %v1524_v63 }
 0x156   :  { %v1150_v60 = vrot.slane %v1149_v3, 4  ;;  %v5307_v34 = vmul.f32 %v516_v61, %v5019_v59  ;;  %v1147_v45 = vrot.slane %v1146_v30, 1  ;;  %v5313_v61 = vmul.f32 %v528_v46, %v5030_v62  ;;  %4526 = vmatpush3.msra.mxu0 %v1524_v63 }
 0x157   :  { %v1125_v41 = vadd.f32 %v1124_v28, %v1123_v58  ;;  %v1137_v50 = vadd.f32 %v1136_v10, %v1135_v5  ;;  %v1113_v47 = vadd.f32 %v1112_v0, %v1111_v19  ;;  %v1120_v40 = vadd.f32 %v1119_v23, %v1118_v37 }
 0x158   :  { %7897 = vst [vmem:[#allocation87_spill] sm:$0xff] %v5307_v34  ;;  %v1151_v36 = vadd.f32 %v1150_v60, %v1149_v3  ;;  %v1128_v48 = vsel %vm629_vm1, %v5307_v34, 0.0  ;;  %7898 = vst [vmem:[#allocation88_spill] sm:$0xff] %v5313_v61  ;;  %v5315_v28 = vadd.f32 %v1159_v35, %v1158_v7  ;;  %v1472_v5 = vsel %vm1339_vm5, %v1106_v44, %v1471_v22 }
 0x159   :  { %v1126_v12 = vrot.slane %v1125_v41, 1  ;;  %v1138_v42 = vrot.slane %v1137_v50, 2  ;;  %v1129_v33 = vrot.slane %v1128_v48, 4  ;;  %v1148_v0 = vadd.f32 %v1147_v45, %v1146_v30  ;;  %v526_v54 = vpop.permute.xlu0 %525  ;;  %v532_v10 = vpop.permute.xlu1 %531 }
 0x15a   :  { %v1152_v58 = vrot.slane %v1151_v36, 2  ;;  %v1170_v19 = vsel %vm629_vm1, %v5313_v61, 0.0  ;;  %v5324_v7 = vmul.f32 %v526_v54, %v5039_v1  ;;  %v1473_v23 = vsel %vm1341_vm6, %v1113_v47, %v1472_v5 }
 0x15b   :  { %v1139_v16 = vadd.f32 %v1138_v42, %v1137_v50  ;;  %v1130_v39 = vadd.f32 %v1129_v33, %v1128_v48  ;;  %v1171_v37 = vrot.slane %v1170_v19, 4  ;;  %v1523_v42 = vld [vmem:[%s7586_s3] sm:$0xff]  ;;  %v5331_v30 = vmul.f32 %v532_v10, %v5042_v2  ;;  %s4773_s3 = smov 64  }
 0x15c   :  { %v1153_v3 = vadd.f32 %v1152_v58, %v1151_v36  ;;  %7899 = vst [vmem:[#allocation89_spill] sm:$0xff] %v5324_v7  ;;  %v1127_v35 = vadd.f32 %v1126_v12, %v1125_v41  ;;  %4527 = vmatprep.subr.mxu0 %v1523_v42  ;;  %v1161_v60 = vrot.slane %v5315_v28, 1  ;;  %v1163_v46 = vsel %vm629_vm1, %v5324_v7, 0.0 }
 0x15d   :  { %v1140_v33 = vrot.slane %v1139_v16, 1  ;;  %v1131_v48 = vrot.slane %v1130_v39, 2  ;;  %7900 = vst [vmem:[#allocation90_spill] sm:$0xff] %v5331_v30  ;;  %v1172_v50 = vadd.f32 %v1171_v37, %v1170_v19  ;;  %4528 = vmatpush3.msra.mxu0 %v1523_v42  ;;  %v1164_v47 = vrot.slane %v1163_v46, 4  ;;  %v530_v58 = vpop.permute.xlu0 %529  ;;  %v536_v5 = vpop.permute.xlu1 %535 }
 0x15e   :  { %v1154_v45 = vrot.slane %v1153_v3, 1  ;;  %v1184_v36 = vsel %vm629_vm1, %v5331_v30, 0.0  ;;  %v5339_v12 = vmul.f32 %v530_v58, %v5056_v6  ;;  %v1474_v41 = vsel %vm1343_vm7, %v1120_v40, %v1473_v23 }
 0x15f   :  { %v1141_v22 = vadd.f32 %v1140_v33, %v1139_v16  ;;  %v1132_v44 = vadd.f32 %v1131_v48, %v1130_v39  ;;  %v1173_v63 = vrot.slane %v1172_v50, 2  ;;  %v1185_v54 = vrot.slane %v1184_v36, 4 }
 0x160   :  { %7901 = vst [vmem:[#allocation91_spill] sm:$0xff] %v5339_v12  ;;  %v1165_v19 = vadd.f32 %v1164_v47, %v1163_v46  ;;  %v5343_v10 = vmul.f32 %v536_v5, %v5047_v4  ;;  %v1475_v16 = vsel %vm1345_vm8, %v1127_v35, %v1474_v41  ;;  %v1155_v42 = vadd.f32 %v1154_v45, %v1153_v3 }
 0x161   :  { %v1133_v37 = vrot.slane %v1132_v44, 1  ;;  %v1477_v39 = vsel %vm1335_vm3, %v1148_v0, %v1141_v22  ;;  %v1186_v33 = vadd.f32 %v1185_v54, %v1184_v36  ;;  %v1177_v48 = vsel %vm629_vm1, %v5339_v12, 0.0  ;;  %v534_v40 = vpop.permute.xlu0 %533  ;;  %v540_v23 = vpop.permute.xlu1 %539 }
 0x162   :  { %7902 = vst [vmem:[#allocation92_spill] sm:$0xff] %v5343_v10  ;;  %v1166_v34 = vrot.slane %v1165_v19, 2  ;;  %v1178_v30 = vrot.slane %v1177_v48, 4  ;;  %v1198_v58 = vsel %vm629_vm1, %v5343_v10, 0.0  ;;  %v1174_v47 = vadd.f32 %v1173_v63, %v1172_v50 }
 0x163   :  { %v1134_v46 = vadd.f32 %v1133_v37, %v1132_v44  ;;  %v1187_v5 = vrot.slane %v1186_v33, 2  ;;  %v1199_v61 = vrot.slane %v1198_v58, 4  ;;  %v5352_v35 = vmul.f32 %v534_v40, %v5061_v8 }
 0x164   :  { %v1167_v0 = vadd.f32 %v1166_v34, %v1165_v19  ;;  %v1179_v3 = vadd.f32 %v1178_v30, %v1177_v48  ;;  %v5355_v45 = vmul.f32 %v540_v23, %v5064_v9  ;;  %v694_v36 = vrot.slane %v5286_v38, 4 }
 0x165   :  { %7903 = vst [vmem:[#allocation93_spill] sm:$0xff] %v5352_v35  ;;  %v1476_v22 = vsel %vm1347_vm9, %v1134_v46, %v1475_v16  ;;  %v918_v54 = vsel %vm854_vm2, %v4984_v49, 0.0  ;;  %v1188_v41 = vadd.f32 %v1187_v5, %v1186_v33  ;;  %v1191_v50 = vsel %vm629_vm1, %v5352_v35, 0.0  ;;  %v538_v19 = vpop.permute.xlu0 %537  ;;  %v544_v12 = vpop.permute.xlu1 %543 }
 0x166   :  { %7904 = vst [vmem:[#allocation94_spill] sm:$0xff] %v5355_v45  ;;  %1498 = vrot.lane.b32.xlu0 %v1476_v22, %s4773_s3  ;;  %v1168_v44 = vrot.slane %v1167_v0, 1  ;;  %v1180_v34 = vrot.slane %v1179_v3, 2  ;;  %v1192_v30 = vrot.slane %v1191_v50, 4  ;;  %v1212_v63 = vsel %vm629_vm1, %v5355_v45, 0.0 }
 0x167   :  { %v1175_v37 = vrot.slane %v1174_v47, 1  ;;  %v1200_v16 = vadd.f32 %v1199_v61, %v1198_v58  ;;  %v5367_v48 = vmul.f32 %v538_v19, %v5073_v11  ;;  %v1478_v33 = vsel %vm1337_vm4, %v1155_v42, %v1477_v39 }
 0x168   :  { %v1162_v40 = vadd.f32 %v1161_v60, %v5315_v28  ;;  %v1169_v23 = vadd.f32 %v1168_v44, %v1167_v0  ;;  %v1181_v46 = vadd.f32 %v1180_v34, %v1179_v3  ;;  %v1193_v5 = vadd.f32 %v1192_v30, %v1191_v50 }
 0x169   :  { %7905 = vst [vmem:[#allocation95_spill] sm:$0xff] %v5367_v48  ;;  %v919_v22 = vrot.slane %v918_v54, 4  ;;  %v1213_v10 = vrot.slane %v1212_v63, 4  ;;  %v1205_v35 = vsel %vm629_vm1, %v5367_v48, 0.0  ;;  %v1189_v45 = vrot.slane %v1188_v41, 1 }
 0x16a   :  { %v1182_v7 = vrot.slane %v1181_v46, 1  ;;  %v1206_v49 = vrot.slane %v1205_v35, 4  ;;  %v5374_v61 = vmul.f32 %v544_v12, %v5086_v14  ;;  %v1479_v58 = vsel %vm1339_vm5, %v1162_v40, %v1478_v33  ;;  %v542_v12 = vpop.permute.xlu1 %541 }
 0x16b   :  { %v5379_v28 = vsel %vm629_vm1, %v5005_v55, 0.0  ;;  %v1176_v60 = vadd.f32 %v1175_v37, %v1174_v47  ;;  %v1201_v39 = vrot.slane %v1200_v16, 2  ;;  %v1480_v42 = vsel %vm1341_vm6, %v1169_v23, %v1479_v58 }
 0x16c   :  { %7906 = vst [vmem:[#allocation96_spill] sm:$0xff] %v5374_v61  ;;  %v1194_v0 = vrot.slane %v1193_v5, 2  ;;  %v1207_v3 = vadd.f32 %v1206_v49, %v1205_v35  ;;  %v1226_v50 = vsel %vm629_vm1, %v5374_v61, 0.0  ;;  %v1183_v44 = vadd.f32 %v1182_v7, %v1181_v46 }
 0x16d   :  { %v1214_v34 = vadd.f32 %v1213_v10, %v1212_v63  ;;  %v1227_v30 = vrot.slane %v1226_v50, 4  ;;  %v1190_v19 = vadd.f32 %v1189_v45, %v1188_v41  ;;  %v1481_v33 = vsel %vm1343_vm7, %v1176_v60, %v1480_v42  ;;  %v552_v63 = vpop.permute.xlu0 %551 }
 0x16e   :  { %v5387_v40 = vsel %vm854_vm2, %v5005_v55, 0.0  ;;  %v1208_v47 = vrot.slane %v1207_v3, 2  ;;  %v5390_v37 = vmul.f32 %v542_v12, %v5089_v15  ;;  %v1482_v49 = vsel %vm1345_vm8, %v1183_v44, %v1481_v33 }
 0x16f   :  { %v5394_v35 = vadd.f32 %v694_v36, %v5286_v38  ;;  %v1202_v7 = vadd.f32 %v1201_v39, %v1200_v16  ;;  %v1228_v10 = vadd.f32 %v1227_v30, %v1226_v50  ;;  %v1483_v45 = vsel %vm1347_vm9, %v1190_v19, %v1482_v49  ;;  %v546_v39 = vpop.permute.xlu1 %545 }
 0x170   :  { %7907 = vst [vmem:[#allocation97_spill] sm:$0xff] %v5390_v37  ;;  %v5397_v41 = vadd.f32 %v919_v22, %v918_v54  ;;  %v1195_v23 = vadd.f32 %v1194_v0, %v1193_v5  ;;  %v1219_v46 = vsel %vm629_vm1, %v5390_v37, 0.0  ;;  %v5402_v58 = vmul.f32 %v552_v63, %v5099_v18  ;;  %1500 = vrot.lane.b32.xlu1 %v1483_v45, %s4773_s3 }
 0x171   :  { %v1215_v38 = vrot.slane %v1214_v34, 2  ;;  %v1209_v36 = vadd.f32 %v1208_v47, %v1207_v3  ;;  %v1220_v16 = vrot.slane %v1219_v46, 4  ;;  %v5409_v54 = vsel %vm629_vm1, %v4998_v53, 0.0  ;;  %v556_v12 = vpop.permute.xlu0 %555 }
 0x172   :  { %7908 = vst [vmem:[#allocation98_spill] sm:$0xff] %v5402_v58  ;;  %v1254_v5 = vsel %vm629_vm1, %v5402_v58, 0.0  ;;  %v5414_v22 = vmul.f32 %v546_v39, %v5096_v17  ;;  %v1203_v0 = vrot.slane %v1202_v7, 1  ;;  %v1229_v50 = vrot.slane %v1228_v10, 2 }
 0x173   :  { %v1221_v44 = vadd.f32 %v1220_v16, %v1219_v46  ;;  %v1255_v30 = vrot.slane %v1254_v5, 4  ;;  %v5418_v3 = vsel %vm854_vm2, %v4998_v53, 0.0  ;;  %v1196_v19 = vrot.slane %v1195_v23, 1  ;;  %v550_v42 = vpop.permute.xlu1 %549 }
 0x174   :  { %7909 = vst [vmem:[#allocation99_spill] sm:$0xff] %v5414_v22  ;;  %v1233_v33 = vsel %vm629_vm1, %v5414_v22, 0.0  ;;  %v5423_v47 = vmul.f32 %v556_v12, %v5111_v21  ;;  %v1216_v49 = vadd.f32 %v1215_v38, %v1214_v34  ;;  %v1210_v63 = vrot.slane %v1209_v36, 1 }
 0x175   :  { %v1222_v45 = vrot.slane %v1221_v44, 2  ;;  %v1234_v39 = vrot.slane %v1233_v33, 4  ;;  %v1256_v16 = vadd.f32 %v1255_v30, %v1254_v5  ;;  %v5429_v61 = vmul.f32 %v550_v42, %v5108_v20  ;;  %v554_v12 = vpop.permute.xlu0 %553 }
 0x176   :  { %7910 = vst [vmem:[#allocation100_spill] sm:$0xff] %v5423_v47  ;;  %v1268_v60 = vsel %vm629_vm1, %v5423_v47, 0.0  ;;  %v1204_v37 = vadd.f32 %v1203_v0, %v1202_v7  ;;  %v1230_v48 = vadd.f32 %v1229_v50, %v1228_v10  ;;  %v1197_v53 = vadd.f32 %v1196_v19, %v1195_v23 }
 0x177   :  { %7911 = vst [vmem:[#allocation101_spill] sm:$0xff] %v5429_v61  ;;  %v1223_v22 = vadd.f32 %v1222_v45, %v1221_v44  ;;  %v1235_v58 = vadd.f32 %v1234_v39, %v1233_v33  ;;  %v1269_v34 = vrot.slane %v1268_v60, 4  ;;  %v1247_v38 = vsel %vm629_vm1, %v5429_v61, 0.0  ;;  %v548_v17 = vpop.permute.xlu1 %547 }
 0x178   :  { %v5434_v55 = vmul.f32 %v554_v12, %v5125_v25  ;;  %v1217_v5 = vrot.slane %v1216_v49, 1  ;;  %v1211_v30 = vadd.f32 %v1210_v63, %v1209_v36  ;;  %v1248_v47 = vrot.slane %v1247_v38, 4 }
 0x179   :  { %v1236_v46 = vrot.slane %v1235_v58, 2  ;;  %v1257_v42 = vrot.slane %v1256_v16, 2  ;;  %v1270_v2 = vadd.f32 %v1269_v34, %v1268_v60  ;;  %v5439_v10 = vmul.f32 %v548_v17, %v5122_v24  ;;  %v560_v45 = vpop.permute.xlu0 %559 }
 0x17a   :  { %7912 = vst [vmem:[#allocation102_spill] sm:$0xff] %v5434_v55  ;;  %v1261_v7 = vsel %vm629_vm1, %v5434_v55, 0.0  ;;  %v1231_v0 = vrot.slane %v1230_v48, 1  ;;  %v1224_v50 = vrot.slane %v1223_v22, 1  ;;  %v1249_v44 = vadd.f32 %v1248_v47, %v1247_v38 }
 0x17b   :  { %7913 = vst [vmem:[#allocation103_spill] sm:$0xff] %v5439_v10  ;;  %v1484_v19 = vsel %vm1335_vm3, %v1204_v37, %v1197_v53  ;;  %v1237_v33 = vadd.f32 %v1236_v46, %v1235_v58  ;;  %v1262_v36 = vrot.slane %v1261_v7, 4  ;;  %v1240_v63 = vsel %vm629_vm1, %v5439_v10, 0.0 }
 0x17c   :  { %v1218_v60 = vadd.f32 %v1217_v5, %v1216_v49  ;;  %v1250_v39 = vrot.slane %v1249_v44, 2  ;;  %v1241_v12 = vrot.slane %v1240_v63, 4  ;;  %v1485_v34 = vsel %vm1337_vm4, %v1211_v30, %v1484_v19  ;;  %v564_v5 = vpop.permute.xlu1 %563 }
 0x17d   :  { %v1258_v17 = vadd.f32 %v1257_v42, %v1256_v16  ;;  %v1271_v55 = vrot.slane %v1270_v2, 2  ;;  %v1263_v61 = vadd.f32 %v1262_v36, %v1261_v7  ;;  %v5447_v23 = vmul.f32 %v560_v45, %v5136_v27  ;;  %v558_v49 = vpop.permute.xlu0 %557 }
 0x17e   :  { %v1232_v47 = vadd.f32 %v1231_v0, %v1230_v48  ;;  %v1225_v38 = vadd.f32 %v1224_v50, %v1223_v22  ;;  %v1251_v53 = vadd.f32 %v1250_v39, %v1249_v44  ;;  %v1242_v37 = vadd.f32 %v1241_v12, %v1240_v63 }
 0x17f   :  { %7914 = vst [vmem:[#allocation104_spill] sm:$0xff] %v5447_v23  ;;  %v1238_v58 = vrot.slane %v1237_v33, 1  ;;  %v1264_v46 = vrot.slane %v1263_v61, 2  ;;  %v1282_v10 = vsel %vm629_vm1, %v5447_v23, 0.0  ;;  %v1486_v24 = vsel %vm1339_vm5, %v1218_v60, %v1485_v34 }
 0x180   :  { %v1252_v30 = vrot.slane %v1251_v53, 1  ;;  %v1243_v16 = vrot.slane %v1242_v37, 2  ;;  %v1283_v42 = vrot.slane %v1282_v10, 4  ;;  %v5453_v7 = vmul.f32 %v558_v49, %v5141_v29 }
 0x181   :  { %v1259_v19 = vrot.slane %v1258_v17, 1  ;;  %v1272_v48 = vadd.f32 %v1271_v55, %v1270_v2  ;;  %v1265_v22 = vadd.f32 %v1264_v46, %v1263_v61  ;;  %v5456_v0 = vmul.f32 %v564_v5, %v5148_v31  ;;  %v562_v12 = vpop.permute.xlu0 %561 }
 0x182   :  { %7915 = vst [vmem:[#allocation105_spill] sm:$0xff] %v5453_v7  ;;  %v1244_v50 = vadd.f32 %v1243_v16, %v1242_v37  ;;  %v1284_v44 = vadd.f32 %v1283_v42, %v1282_v10  ;;  %v1275_v36 = vsel %vm629_vm1, %v5453_v7, 0.0  ;;  %v1487_v63 = vsel %vm1341_vm6, %v1225_v38, %v1486_v24 }
 0x183   :  { %7916 = vst [vmem:[#allocation106_spill] sm:$0xff] %v5456_v0  ;;  %v1266_v45 = vrot.slane %v1265_v22, 1  ;;  %v1276_v60 = vrot.slane %v1275_v36, 4  ;;  %v1296_v39 = vsel %vm629_vm1, %v5456_v0, 0.0  ;;  %v1239_v34 = vadd.f32 %v1238_v58, %v1237_v33 }
 0x184   :  { %v1253_v49 = vadd.f32 %v1252_v30, %v1251_v53  ;;  %v1285_v55 = vrot.slane %v1284_v44, 2  ;;  %v1297_v2 = vrot.slane %v1296_v39, 4  ;;  %v5464_v61 = vmul.f32 %v562_v12, %v5155_v32  ;;  %v7945_v32 = vld [vmem:[#allocation77_spill] sm:$0xff] }
 0x185   :  { %v7918_v10 = vrot.slane %v5379_v28, 4  ;;  %v1260_v46 = vadd.f32 %v1259_v19, %v1258_v17  ;;  %v1277_v5 = vadd.f32 %v1276_v60, %v1275_v36  ;;  %v1245_v24 = vrot.slane %v1244_v50, 1 }
 0x186   :  { %7917 = vst [vmem:[#allocation107_spill] sm:$0xff] %v5464_v61  ;;  %v1273_v38 = vrot.slane %v1272_v48, 1  ;;  %v1298_v16 = vadd.f32 %v1297_v2, %v1296_v39  ;;  %v1289_v42 = vsel %vm629_vm1, %v5464_v61, 0.0  ;;  %v1488_v33 = vsel %vm1343_vm7, %v1232_v47, %v1487_v63 }
 0x187   :  { %v688_v37 = vadd.f32 %v7918_v10, %v5379_v28  ;;  %v1267_v53 = vadd.f32 %v1266_v45, %v1265_v22  ;;  %v1278_v58 = vrot.slane %v1277_v5, 2  ;;  %v1290_v30 = vrot.slane %v1289_v42, 4 }
 0x188   :  { %v1246_v0 = vadd.f32 %v1245_v24, %v1244_v50  ;;  %v1491_v12 = vsel %vm1335_vm3, %v1260_v46, %v1253_v49  ;;  %v1286_v23 = vadd.f32 %v1285_v55, %v1284_v44  ;;  %v1299_v7 = vrot.slane %v1298_v16, 2 }
 0x189   :  { %v1489_v28 = vsel %vm1345_vm8, %v1239_v34, %v1488_v33  ;;  %v7919_v17 = vrot.slane %v5387_v40, 4  ;;  %v1279_v36 = vadd.f32 %v1278_v58, %v1277_v5  ;;  %v1291_v60 = vadd.f32 %v1290_v30, %v1289_v42 }
 0x18a   :  { %v1490_v39 = vsel %vm1347_vm9, %v1246_v0, %v1489_v28  ;;  %v7920_v47 = vrot.slane %v5394_v35, 2  ;;  %v708_v50 = vrot.slane %v5409_v54, 4  ;;  %v933_v44 = vrot.slane %v5418_v3, 4 }
 0x18b   :  { %v913_v19 = vadd.f32 %v7919_v17, %v5387_v40  ;;  %v1300_v63 = vadd.f32 %v1299_v7, %v1298_v16  ;;  %1502 = vrot.lane.b32.xlu0 %v1490_v39, %s4773_s3  ;;  %v7921_v45 = vrot.slane %v5397_v41, 2  ;;  %v1280_v34 = vrot.slane %v1279_v36, 1 }
 0x18c   :  { %v5481_v22 = vadd.f32 %v7920_v47, %v5394_v35  ;;  %v1292_v49 = vrot.slane %v1291_v60, 2  ;;  %v1492_v0 = vsel %vm1337_vm4, %v1267_v53, %v1491_v12  ;;  %v689_v55 = vrot.slane %v688_v37, 2 }
 0x18d   :  { %v5489_v40 = vadd.f32 %v7921_v45, %v5397_v41  ;;  %v700_v35 = vsel %vm629_vm1, %v5012_v57, 0.0  ;;  %v1274_v2 = vadd.f32 %v1273_v38, %v1272_v48  ;;  %v1287_v10 = vrot.slane %v1286_v23, 1 }
 0x18e   :  { %v914_v46 = vrot.slane %v913_v19, 2  ;;  %v749_v7 = vsel %vm629_vm1, %v5047_v4, 0.0  ;;  %v1281_v5 = vadd.f32 %v1280_v34, %v1279_v36  ;;  %v1293_v24 = vadd.f32 %v1292_v49, %v1291_v60 }
 0x18f   :  { %v925_v41 = vsel %vm854_vm2, %v5012_v57, 0.0  ;;  %v974_v16 = vsel %vm854_vm2, %v5047_v4, 0.0  ;;  %v1301_v42 = vrot.slane %v1300_v63, 1  ;;  %v1493_v33 = vsel %vm1339_vm5, %v1274_v2, %v1492_v0 }
 0x190   :  { %v5502_v53 = vadd.f32 %v708_v50, %v5409_v54  ;;  %v701_v48 = vrot.slane %v700_v35, 4  ;;  %v1294_v38 = vrot.slane %v1293_v24, 1  ;;  %v1494_v58 = vsel %vm1341_vm6, %v1281_v5, %v1493_v33 }
 0x191   :  { %v5505_v30 = vadd.f32 %v689_v55, %v688_v37  ;;  %v5508_v12 = vadd.f32 %v933_v44, %v5418_v3  ;;  %v750_v28 = vrot.slane %v749_v7, 4  ;;  %v1288_v17 = vadd.f32 %v1287_v10, %v1286_v23 }
 0x192   :  { %v5510_v36 = vadd.f32 %v914_v46, %v913_v19  ;;  %v926_v60 = vrot.slane %v925_v41, 4  ;;  %v975_v39 = vrot.slane %v974_v16, 4  ;;  %v1295_v47 = vadd.f32 %v1294_v38, %v1293_v24 }
 0x193   :  { %v742_v54 = vsel %vm629_vm1, %v5061_v8, 0.0  ;;  %v967_v50 = vsel %vm854_vm2, %v5061_v8, 0.0  ;;  %v1302_v45 = vadd.f32 %v1301_v42, %v1300_v63  ;;  %v1495_v37 = vsel %vm1343_vm7, %v1288_v17, %v1494_v58 }
 0x194   :  { %v7922_v3 = vrot.slane %v5260_v26, 4  ;;  %v702_v19 = vadd.f32 %v701_v48, %v700_v35  ;;  %v1496_v34 = vsel %vm1345_vm8, %v1295_v47, %v1495_v37  ;;  %v5527_v0 = vsel %vm629_vm1, %v5030_v62, 0.0 }
 0x195   :  { %v751_v55 = vadd.f32 %v750_v28, %v749_v7  ;;  %v1497_v63 = vsel %vm1347_vm9, %v1302_v45, %v1496_v34  ;;  %v968_v46 = vrot.slane %v967_v50, 4  ;;  %v927_v24 = vadd.f32 %v926_v60, %v925_v41 }
 0x196   :  { %v5520_v44 = vadd.f32 %v7922_v3, %v5260_v26  ;;  %v743_v26 = vrot.slane %v742_v54, 4  ;;  %1504 = vrot.lane.b32.xlu1 %v1497_v63, %s4773_s3  ;;  %v976_v42 = vadd.f32 %v975_v39, %v974_v16  ;;  %v703_v33 = vrot.slane %v702_v19, 2 }
 0x197   :  { %v5538_v7 = vsel %vm854_vm2, %v5030_v62, 0.0  ;;  %v763_v38 = vsel %vm629_vm1, %v5064_v9, 0.0  ;;  %v714_v58 = vsel %vm629_vm1, %v5039_v1, 0.0  ;;  %v939_v28 = vsel %vm854_vm2, %v5039_v1, 0.0 }
 0x198   :  { %v752_v17 = vrot.slane %v751_v55, 2  ;;  %v988_v41 = vsel %vm854_vm2, %v5064_v9, 0.0  ;;  %v744_v16 = vadd.f32 %v743_v26, %v742_v54  ;;  %v969_v60 = vadd.f32 %v968_v46, %v967_v50 }
 0x199   :  { %v805_v39 = vsel %vm629_vm1, %v5099_v18, 0.0  ;;  %v1030_v47 = vsel %vm854_vm2, %v5099_v18, 0.0  ;;  %v928_v45 = vrot.slane %v927_v24, 2  ;;  %v977_v3 = vrot.slane %v976_v42, 2 }
 0x19a   :  { %v764_v34 = vrot.slane %v763_v38, 4  ;;  %v715_v63 = vrot.slane %v714_v58, 4  ;;  %v940_v49 = vrot.slane %v939_v28, 4  ;;  %v989_v5 = vrot.slane %v988_v41, 4 }
 0x19b   :  { %v798_v10 = vsel %vm629_vm1, %v5108_v20, 0.0  ;;  %v756_v54 = vsel %vm629_vm1, %v5073_v11, 0.0  ;;  %v981_v50 = vsel %vm854_vm2, %v5073_v11, 0.0  ;;  %v806_v26 = vrot.slane %v805_v39, 4 }
 0x19c   :  { %v1031_v46 = vrot.slane %v1030_v47, 4  ;;  %v5559_v23 = vadd.f32 %v752_v17, %v751_v55  ;;  %v745_v35 = vrot.slane %v744_v16, 2  ;;  %v970_v37 = vrot.slane %v969_v60, 2 }
 0x19d   :  { %v1023_v2 = vsel %vm854_vm2, %v5108_v20, 0.0  ;;  %v5563_v48 = vadd.f32 %v703_v33, %v702_v19  ;;  %v5565_v61 = vadd.f32 %v977_v3, %v976_v42  ;;  %v5567_v9 = vadd.f32 %v764_v34, %v763_v38 }
 0x19e   :  { %v799_v4 = vrot.slane %v798_v10, 4  ;;  %v5569_v18 = vadd.f32 %v928_v45, %v927_v24  ;;  %v5571_v8 = vadd.f32 %v989_v5, %v988_v41  ;;  %v757_v11 = vrot.slane %v756_v54, 4 }
 0x19f   :  { %7923 = vst [vmem:[#allocation108_spill] sm:$0xff] %v5565_v61  ;;  %v982_v62 = vrot.slane %v981_v50, 4  ;;  %v5573_v55 = vadd.f32 %v715_v63, %v714_v58  ;;  %v807_v17 = vadd.f32 %v806_v26, %v805_v39  ;;  %v1032_v1 = vadd.f32 %v1031_v46, %v1030_v47 }
 0x1a0   :  { %7924 = vst [vmem:[#allocation109_spill] sm:$0xff] %v5571_v8  ;;  %v1024_v57 = vrot.slane %v1023_v2, 4  ;;  %v5575_v31 = vadd.f32 %v940_v49, %v939_v28  ;;  %v5578_v42 = vadd.f32 %v745_v35, %v744_v16  ;;  %v5580_v33 = vadd.f32 %v970_v37, %v969_v60 }
 0x1a1   :  { %v800_v38 = vadd.f32 %v799_v4, %v798_v10  ;;  %v819_v58 = vsel %vm629_vm1, %v5111_v21, 0.0  ;;  %v758_v39 = vadd.f32 %v757_v11, %v756_v54  ;;  %v983_v47 = vadd.f32 %v982_v62, %v981_v50 }
 0x1a2   :  { %7925 = vst [vmem:[#allocation110_spill] sm:$0xff] %v5580_v33  ;;  %v1044_v49 = vsel %vm854_vm2, %v5111_v21, 0.0  ;;  %v770_v35 = vsel %vm629_vm1, %v5089_v15, 0.0  ;;  %v808_v28 = vrot.slane %v807_v17, 2  ;;  %v1033_v16 = vrot.slane %v1032_v1, 2 }
 0x1a3   :  { %v1025_v60 = vadd.f32 %v1024_v57, %v1023_v2  ;;  %v995_v10 = vsel %vm854_vm2, %v5089_v15, 0.0  ;;  %v820_v37 = vrot.slane %v819_v58, 4  ;;  %v5597_v62 = vsel %vm629_vm1, %v5086_v14, 0.0 }
 0x1a4   :  { %v801_v11 = vrot.slane %v800_v38, 2  ;;  %v1045_v3 = vrot.slane %v1044_v49, 4  ;;  %v812_v34 = vsel %vm629_vm1, %v5125_v25, 0.0  ;;  %v759_v63 = vrot.slane %v758_v39, 2 }
 0x1a5   :  { %v984_v54 = vrot.slane %v983_v47, 2  ;;  %v5603_v57 = vsel %vm854_vm2, %v5086_v14, 0.0  ;;  %v771_v2 = vrot.slane %v770_v35, 4  ;;  %v996_v50 = vrot.slane %v995_v10, 4 }
 0x1a6   :  { %v5605_v26 = vadd.f32 %v808_v28, %v807_v17  ;;  %v5607_v46 = vadd.f32 %v1033_v16, %v1032_v1  ;;  %v1026_v24 = vrot.slane %v1025_v60, 2  ;;  %v5609_v4 = vadd.f32 %v820_v37, %v819_v58 }
 0x1a7   :  { %v813_v41 = vrot.slane %v812_v34, 4  ;;  %v1037_v5 = vsel %vm854_vm2, %v5125_v25, 0.0  ;;  %v672_v19 = vsel %vm629_vm1, %v4991_v51, 0.0  ;;  %v5617_v21 = vadd.f32 %v801_v11, %v800_v38 }
 0x1a8   :  { %7926 = vst [vmem:[#allocation111_spill] sm:$0xff] %v5605_v26  ;;  %7927 = vst [vmem:[#allocation112_spill] sm:$0xff] %v5607_v46  ;;  %v5619_v17 = vadd.f32 %v1045_v3, %v1044_v49  ;;  %v5621_v1 = vadd.f32 %v759_v63, %v758_v39  ;;  %v5623_v28 = vadd.f32 %v984_v54, %v983_v47  ;;  %v897_v16 = vsel %vm854_vm2, %v4991_v51, 0.0 }
 0x1a9   :  { %7928 = vst [vmem:[#allocation113_spill] sm:$0xff] %v5609_v4  ;;  %7929 = vst [vmem:[#allocation114_spill] sm:$0xff] %v5617_v21  ;;  %v5625_v58 = vadd.f32 %v771_v2, %v770_v35  ;;  %v5629_v37 = vadd.f32 %v996_v50, %v995_v10  ;;  %v5631_v15 = vadd.f32 %v1026_v24, %v1025_v60  ;;  %v1038_v45 = vrot.slane %v1037_v5, 4 }
 0x1aa   :  { %7930 = vst [vmem:[#allocation115_spill] sm:$0xff] %v5619_v17  ;;  %v673_v25 = vrot.slane %v672_v19, 4  ;;  %v5636_v11 = vadd.f32 %v813_v41, %v812_v34  ;;  %v679_v10 = vsel %vm629_vm1, %v5019_v59, 0.0  ;;  %v898_v3 = vrot.slane %v897_v16, 4 }
 0x1ab   :  { %7931 = vst [vmem:[#allocation116_spill] sm:$0xff] %v5631_v15  ;;  %v5644_v24 = vsel %vm629_vm1, %v5136_v27, 0.0  ;;  %v5648_v60 = vsel %vm854_vm2, %v5136_v27, 0.0  ;;  %v661_v63 = vrot.slane %v5279_v56, 2  ;;  %v7934_v41 = vrot.slane %v5244_v52, 4  ;;  %v7941_v15 = vld [vmem:[#allocation76_spill] sm:$0xff] }
 0x1ac   :  { %7932 = vst [vmem:[#allocation117_spill] sm:$0xff] %v5644_v24  ;;  %7933 = vst [vmem:[#allocation118_spill] sm:$0xff] %v5648_v60  ;;  %v5655_v2 = vadd.f32 %v1038_v45, %v1037_v5  ;;  %v674_v50 = vadd.f32 %v673_v25, %v672_v19  ;;  %v904_v49 = vsel %vm854_vm2, %v5019_v59, 0.0  ;;  %v815_v35 = vrot.slane %v5636_v11, 2  ;;  %v7937_v45 = vld [vmem:[#allocation80_spill] sm:$0xff] }
 0x1ad   :  { %v667_v34 = vadd.f32 %v7934_v41, %v5244_v52  ;;  %v680_v39 = vrot.slane %v679_v10, 4  ;;  %v886_v38 = vrot.slane %v5520_v44, 2  ;;  %v7935_v47 = vrot.slane %v5251_v13, 4 }
 0x1ae   :  { %v7936_v5 = vrot.slane %v5227_v43, 2  ;;  %v899_v19 = vadd.f32 %v898_v3, %v897_v16  ;;  %v649_v41 = vrot.slane %v7937_v45, 1  ;;  %v662_v54 = vadd.f32 %v661_v63, %v5279_v56  ;;  %v7939_v56 = vld [vmem:[#allocation75_spill] sm:$0xff] }
 0x1af   :  { %v892_v14 = vadd.f32 %v7935_v47, %v5251_v13  ;;  %v668_v20 = vrot.slane %v667_v34, 2  ;;  %v905_v59 = vrot.slane %v904_v49, 4  ;;  %v5674_v13 = vsel %vm629_vm1, %v5141_v29, 0.0 }
 0x1b0   :  { %v655_v25 = vadd.f32 %v7936_v5, %v5227_v43  ;;  %v5678_v47 = vsel %vm854_vm2, %v5141_v29, 0.0  ;;  %v675_v52 = vrot.slane %v674_v50, 2  ;;  %v681_v27 = vadd.f32 %v680_v39, %v679_v10  ;;  %v7938_v43 = vld [vmem:[#allocation82_spill] sm:$0xff]  ;;  %v7943_v10 = vld [vmem:[#allocation72_spill] sm:$0xff] }
 0x1b1   :  { %v874_v16 = vrot.slane %v7938_v43, 1  ;;  %v887_v3 = vadd.f32 %v886_v38, %v5520_v44  ;;  %v893_v5 = vrot.slane %v892_v14, 2  ;;  %v7940_v63 = vrot.slane %v7939_v56, 1 }
 0x1b2   :  { %v656_v51 = vrot.slane %v655_v25, 1  ;;  %v7942_v17 = vrot.slane %v7941_v15, 2  ;;  %v900_v26 = vrot.slane %v899_v19, 2  ;;  %v650_v29 = vadd.f32 %v649_v41, %v7937_v45 }
 0x1b3   :  { %v636_v46 = vadd.f32 %v7940_v63, %v7939_v56  ;;  %v663_v21 = vrot.slane %v662_v54, 1  ;;  %v669_v60 = vadd.f32 %v668_v20, %v667_v34  ;;  %v906_v39 = vadd.f32 %v905_v59, %v904_v49  ;;  %v7947_v63 = vld [vmem:[#allocation73_spill] sm:$0xff] }
 0x1b4   :  { %v880_v4 = vadd.f32 %v7942_v17, %v7941_v15  ;;  %v7944_v24 = vrot.slane %v7943_v10, 1  ;;  %v676_v38 = vadd.f32 %v675_v52, %v674_v50  ;;  %v7946_v61 = vrot.slane %v7945_v32, 1 }
 0x1b5   :  { %v7948_v33 = vrot.slane %v7947_v63, 1  ;;  %v682_v15 = vrot.slane %v681_v27, 2  ;;  %v875_v17 = vadd.f32 %v874_v16, %v7938_v43  ;;  %v888_v45 = vrot.slane %v887_v3, 1 }
 0x1b6   :  { %v643_v44 = vadd.f32 %v7944_v24, %v7943_v10  ;;  %v861_v56 = vadd.f32 %v7946_v61, %v7945_v32  ;;  %v894_v41 = vadd.f32 %v893_v5, %v892_v14  ;;  %v657_v20 = vadd.f32 %v656_v51, %v655_v25 }
 0x1b7   :  { %v868_v8 = vadd.f32 %v7948_v33, %v7947_v63  ;;  %v881_v59 = vrot.slane %v880_v4, 1  ;;  %v901_v49 = vadd.f32 %v900_v26, %v899_v19  ;;  %v664_v24 = vadd.f32 %v663_v21, %v662_v54  ;;  %v7949_v63 = vld [vmem:[#allocation38_spill] sm:$0xff] }
 0x1b8   :  { %v1336_v34 = vsel %vm1335_vm3, %v643_v44, %v636_v46  ;;  %v670_v50 = vrot.slane %v669_v60, 1  ;;  %v907_v52 = vrot.slane %v906_v39, 2  ;;  %v677_v32 = vrot.slane %v676_v38, 1 }
 0x1b9   :  { %v1338_v10 = vsel %vm1337_vm4, %v650_v29, %v1336_v34  ;;  %v1406_v61 = vsel %vm1335_vm3, %v868_v8, %v861_v56  ;;  %v728_v33 = vsel %vm629_vm1, %v5056_v6, 0.0  ;;  %v735_v43 = vsel %vm629_vm1, %v7949_v63, 0.0 }
 0x1ba   :  { %v683_v14 = vadd.f32 %v682_v15, %v681_v27  ;;  %v889_v51 = vadd.f32 %v888_v45, %v887_v3  ;;  %v895_v25 = vrot.slane %v894_v41, 1  ;;  %v1407_v26 = vsel %vm1337_vm4, %v875_v17, %v1406_v61 }
 0x1bb   :  { %v5708_v21 = vadd.f32 %v815_v35, %v5636_v11  ;;  %v882_v46 = vadd.f32 %v881_v59, %v880_v4  ;;  %v902_v54 = vrot.slane %v901_v49, 1  ;;  %v1340_v29 = vsel %vm1339_vm5, %v657_v20, %v1338_v10 }
 0x1bc   :  { %v908_v19 = vadd.f32 %v907_v52, %v906_v39  ;;  %v729_v8 = vrot.slane %v728_v33, 4  ;;  %v736_v16 = vrot.slane %v735_v43, 4  ;;  %v953_v5 = vsel %vm854_vm2, %v5056_v6, 0.0 }
 0x1bd   :  { %v827_v44 = vrot.slane %v5674_v13, 4  ;;  %v678_v27 = vadd.f32 %v677_v32, %v676_v38  ;;  %v1342_v3 = vsel %vm1341_vm6, %v664_v24, %v1340_v29  ;;  %v1408_v56 = vsel %vm1339_vm5, %v882_v46, %v1407_v26 }
 0x1be   :  { %v671_v15 = vadd.f32 %v670_v50, %v669_v60  ;;  %v684_v11 = vrot.slane %v683_v14, 1  ;;  %v896_v35 = vadd.f32 %v895_v25, %v894_v41  ;;  %v1409_v4 = vsel %vm1341_vm6, %v889_v51, %v1408_v56 }
 0x1bf   :  { %v903_v17 = vadd.f32 %v902_v54, %v901_v49  ;;  %v717_v39 = vrot.slane %v5573_v55, 2  ;;  %v7950_v45 = vrot.slane %v5527_v0, 4  ;;  %v954_v59 = vrot.slane %v953_v5, 4 }
 0x1c0   :  { %v909_v34 = vrot.slane %v908_v19, 1  ;;  %v1344_v38 = vsel %vm1343_vm7, %v671_v15, %v1342_v3  ;;  %v730_v52 = vadd.f32 %v729_v8, %v728_v33  ;;  %v737_v24 = vadd.f32 %v736_v16, %v735_v43 }
 0x1c1   :  { %v723_v20 = vadd.f32 %v7950_v45, %v5527_v0  ;;  %v7951_v60 = vrot.slane %v5655_v2, 2  ;;  %v1052_v41 = vrot.slane %v5678_v47, 4  ;;  %v1346_v49 = vsel %vm1345_vm8, %v678_v27, %v1344_v38 }
 0x1c2   :  { %v7952_v10 = vrot.slane %v5502_v53, 2  ;;  %v1410_v0 = vsel %vm1343_vm7, %v896_v35, %v1409_v4  ;;  %v942_v61 = vrot.slane %v5575_v31, 2  ;;  %v7953_v33 = vrot.slane %v5538_v7, 4 }
 0x1c3   :  { %v5725_v50 = vadd.f32 %v7951_v60, %v5655_v2  ;;  %v960_v2 = vsel %vm854_vm2, %v7949_v63, 0.0  ;;  %v1411_v51 = vsel %vm1345_vm8, %v903_v17, %v1410_v0  ;;  %v718_v25 = vadd.f32 %v717_v39, %v5573_v55 }
 0x1c4   :  { %v711_v32 = vadd.f32 %v7952_v10, %v5502_v53  ;;  %v948_v43 = vadd.f32 %v7953_v33, %v5538_v7  ;;  %v724_v26 = vrot.slane %v723_v20, 2  ;;  %v955_v46 = vadd.f32 %v954_v59, %v953_v5 }
 0x1c5   :  { %v685_v54 = vadd.f32 %v684_v11, %v683_v14  ;;  %v910_v29 = vadd.f32 %v909_v34, %v908_v19  ;;  %v731_v53 = vrot.slane %v730_v52, 2  ;;  %v738_v8 = vrot.slane %v737_v24, 2 }
 0x1c6   :  { %v7954_v16 = vrot.slane %v5505_v30, 1  ;;  %v705_v3 = vrot.slane %v5563_v48, 1  ;;  %v712_v7 = vrot.slane %v711_v32, 1  ;;  %v961_v56 = vrot.slane %v960_v2, 4 }
 0x1c7   :  { %v1348_v15 = vsel %vm1347_vm9, %v685_v54, %v1346_v49  ;;  %v1412_v35 = vsel %vm1347_vm9, %v910_v29, %v1411_v51  ;;  %v943_v55 = vadd.f32 %v942_v61, %v5575_v31  ;;  %v949_v4 = vrot.slane %v948_v43, 2  ;;  %v7959_v54 = vld [vmem:[#allocation53_spill] sm:$0xff] }
 0x1c8   :  { %v692_v27 = vadd.f32 %v7954_v16, %v5505_v30  ;;  %v719_v5 = vrot.slane %v718_v25, 1  ;;  %v725_v14 = vadd.f32 %v724_v26, %v723_v20  ;;  %v930_v19 = vrot.slane %v5569_v18, 1 }
 0x1c9   :  { %v956_v11 = vrot.slane %v955_v46, 2  ;;  %v7955_v17 = vrot.slane %v5481_v22, 1  ;;  %v732_v39 = vadd.f32 %v731_v53, %v730_v52  ;;  %v739_v45 = vadd.f32 %v738_v8, %v737_v24  ;;  %v7960_v8 = vld [vmem:[#allocation60_spill] sm:$0xff] }
 0x1ca   :  { %v7956_v59 = vrot.slane %v5508_v12, 2  ;;  %v706_v38 = vadd.f32 %v705_v3, %v5563_v48  ;;  %v713_v31 = vadd.f32 %v712_v7, %v711_v32  ;;  %v7957_v20 = vrot.slane %v5510_v36, 1 }
 0x1cb   :  { %v699_v30 = vadd.f32 %v7955_v17, %v5481_v22  ;;  %v962_v49 = vadd.f32 %v961_v56, %v960_v2  ;;  %v1510_v10 = vsel %vm629_vm1, %v1348_v15, %v1412_v35  ;;  %v7958_v22 = vrot.slane %v5489_v40, 1 }
 0x1cc   :  { %v936_v34 = vadd.f32 %v7956_v59, %v5508_v12  ;;  %v917_v60 = vadd.f32 %v7957_v20, %v5510_v36  ;;  %v944_v24 = vrot.slane %v943_v55, 1  ;;  %v950_v0 = vadd.f32 %v949_v4, %v948_v43 }
 0x1cd   :  { %v924_v52 = vadd.f32 %v7958_v22, %v5489_v40  ;;  %v720_v61 = vadd.f32 %v719_v5, %v718_v25  ;;  %v726_v33 = vrot.slane %v725_v14, 1  ;;  %v931_v12 = vadd.f32 %v930_v19, %v5569_v18 }
 0x1ce   :  { %v957_v51 = vadd.f32 %v956_v11, %v955_v46  ;;  %v733_v48 = vrot.slane %v732_v39, 1  ;;  %v740_v32 = vrot.slane %v739_v45, 1  ;;  %v937_v26 = vrot.slane %v936_v34, 1 }
 0x1cf   :  { %v784_v36 = vsel %vm629_vm1, %v7959_v54, 0.0  ;;  %v963_v2 = vrot.slane %v962_v49, 2  ;;  %v1349_v29 = vsel %vm1335_vm3, %v699_v30, %v692_v27  ;;  %v1413_v53 = vsel %vm1335_vm3, %v924_v52, %v917_v60 }
 0x1d0   :  { %v791_v40 = vsel %vm629_vm1, %v7960_v8, 0.0  ;;  %v945_v43 = vadd.f32 %v944_v24, %v943_v55  ;;  %v951_v25 = vrot.slane %v950_v0, 1  ;;  %v1009_v18 = vsel %vm854_vm2, %v7959_v54, 0.0 }
 0x1d1   :  { %v1016_v46 = vsel %vm854_vm2, %v7960_v8, 0.0  ;;  %v958_v16 = vrot.slane %v957_v51, 1  ;;  %v1350_v3 = vsel %vm1337_vm4, %v706_v38, %v1349_v29  ;;  %v1414_v7 = vsel %vm1337_vm4, %v931_v12, %v1413_v53 }
 0x1d2   :  { %v785_v56 = vrot.slane %v784_v36, 4  ;;  %v727_v27 = vadd.f32 %v726_v33, %v725_v14  ;;  %v734_v15 = vadd.f32 %v733_v48, %v732_v39  ;;  %v938_v35 = vadd.f32 %v937_v26, %v936_v34 }
 0x1d3   :  { %v792_v4 = vrot.slane %v791_v40, 4  ;;  %v741_v5 = vadd.f32 %v740_v32, %v739_v45  ;;  %v964_v19 = vadd.f32 %v963_v2, %v962_v49  ;;  %v1010_v55 = vrot.slane %v1009_v18, 4 }
 0x1d4   :  { %v1017_v11 = vrot.slane %v1016_v46, 4  ;;  %v952_v17 = vadd.f32 %v951_v25, %v950_v0  ;;  %v1351_v30 = vsel %vm1339_vm5, %v713_v31, %v1350_v3  ;;  %v1415_v59 = vsel %vm1339_vm5, %v938_v35, %v1414_v7 }
 0x1d5   :  { %v7961_v20 = vrot.slane %v5597_v62, 4  ;;  %v959_v22 = vadd.f32 %v958_v16, %v957_v51  ;;  %v1352_v14 = vsel %vm1341_vm6, %v720_v61, %v1351_v30  ;;  %v1416_v39 = vsel %vm1341_vm6, %v945_v43, %v1415_v59  ;;  %v7968_v59 = vld [vmem:[#allocation110_spill] sm:$0xff] }
 0x1d6   :  { %v786_v34 = vadd.f32 %v785_v56, %v784_v36  ;;  %v793_v49 = vadd.f32 %v792_v4, %v791_v40  ;;  %v7962_v31 = vrot.slane %v5603_v57, 4  ;;  %v965_v0 = vrot.slane %v964_v19, 1 }
 0x1d7   :  { %v779_v38 = vadd.f32 %v7961_v20, %v5597_v62  ;;  %v1011_v33 = vadd.f32 %v1010_v55, %v1009_v18  ;;  %v1018_v12 = vadd.f32 %v1017_v11, %v1016_v46  ;;  %v1353_v62 = vsel %vm1343_vm7, %v727_v27, %v1352_v14  ;;  %v7970_v20 = vld [vmem:[#allocation108_spill] sm:$0xff] }
 0x1d8   :  { %v1499_v60 = vpop.permute.xlu0 %1498  ;;  %v1004_v52 = vadd.f32 %v7962_v31, %v5603_v57  ;;  %v7963_v61 = vrot.slane %v5578_v42, 1  ;;  %v773_v48 = vrot.slane %v5625_v58, 2  ;;  %v1417_v26 = vsel %vm1343_vm7, %v952_v17, %v1416_v39 }
 0x1d9   :  { %v1515_v45 = vsel %vm1514_vm10, %v1510_v10, %v1499_v60  ;;  %v780_v32 = vrot.slane %v779_v38, 2  ;;  %v1354_v10 = vsel %vm1345_vm8, %v734_v15, %v1353_v62  ;;  %v761_v57 = vrot.slane %v5621_v1, 1 }
 0x1da   :  { %v1519_v24 = vmul.f32 0.125, %v1515_v45  ;;  %v748_v51 = vadd.f32 %v7963_v61, %v5578_v42  ;;  %v787_v36 = vrot.slane %v786_v34, 2  ;;  %v1418_v2 = vsel %vm1345_vm8, %v959_v22, %v1417_v26 }
 0x1db   :  { %v794_v29 = vrot.slane %v793_v49, 2  ;;  %v998_v53 = vrot.slane %v5629_v37, 2  ;;  %v1005_v40 = vrot.slane %v1004_v52, 2  ;;  %v966_v43 = vadd.f32 %v965_v0, %v964_v19  ;;  %v7966_v19 = vld [vmem:[#allocation109_spill] sm:$0xff] }
 0x1dc   :  { %4529 = vmatprep.mubr.msk.f32.mxu0 %vm1535_vm11, %v1519_v24  ;;  %v7964_v42 = vrot.slane %v5559_v23, 1  ;;  %v1012_v18 = vrot.slane %v1011_v33, 2  ;;  %v1019_v46 = vrot.slane %v1018_v12, 2  ;;  %v1355_v16 = vsel %vm1347_vm9, %v741_v5, %v1354_v10 }
 0x1dd   :  { %v7965_v3 = vrot.slane %v5567_v9, 2  ;;  %v774_v56 = vadd.f32 %v773_v48, %v5625_v58  ;;  %v781_v27 = vadd.f32 %v780_v32, %v779_v38  ;;  %v1419_v15 = vsel %vm1347_vm9, %v966_v43, %v1418_v2 }
 0x1de   :  { %v755_v25 = vadd.f32 %v7964_v42, %v5559_v23  ;;  %v788_v35 = vadd.f32 %v787_v36, %v786_v34  ;;  %v986_v4 = vrot.slane %v5623_v28, 1  ;;  %v7967_v55 = vrot.slane %v7966_v19, 2 }
 0x1df   :  { %v767_v7 = vadd.f32 %v7965_v3, %v5567_v9  ;;  %v762_v11 = vadd.f32 %v761_v57, %v5621_v1  ;;  %v795_v17 = vadd.f32 %v794_v29, %v793_v49  ;;  %v999_v5 = vadd.f32 %v998_v53, %v5629_v37  ;;  %v7972_v53 = vld [vmem:[#allocation68_spill] sm:$0xff] }
 0x1e0   :  { %v992_v23 = vadd.f32 %v7967_v55, %v7966_v19  ;;  %v1006_v30 = vadd.f32 %v1005_v40, %v1004_v52  ;;  %v7969_v9 = vrot.slane %v7968_v59, 1  ;;  %v7971_v38 = vrot.slane %v7970_v20, 1  ;;  %v7976_v55 = vld [vmem:[#allocation118_spill] sm:$0xff] }
 0x1e1   :  { %v1013_v22 = vadd.f32 %v1012_v18, %v1011_v33  ;;  %v1020_v14 = vadd.f32 %v1019_v46, %v1018_v12  ;;  %v1511_v39 = vsel %vm629_vm1, %v1355_v16, %v1419_v15  ;;  %v768_v45 = vrot.slane %v767_v7, 1  ;;  %v7973_v46 = vld [vmem:[#allocation67_spill] sm:$0xff] }
 0x1e2   :  { %v973_v58 = vadd.f32 %v7969_v9, %v7968_v59  ;;  %v980_v60 = vadd.f32 %v7971_v38, %v7970_v20  ;;  %v1501_v34 = vpop.permute.xlu1 %1500  ;;  %v775_v31 = vrot.slane %v774_v56, 1  ;;  %v782_v1 = vrot.slane %v781_v27, 1  ;;  %v7980_v59 = vld [vmem:[#allocation111_spill] sm:$0xff] }
 0x1e3   :  { %v1516_v49 = vsel %vm1514_vm10, %v1511_v39, %v1501_v34  ;;  %v789_v37 = vrot.slane %v788_v35, 1  ;;  %v987_v52 = vadd.f32 %v986_v4, %v5623_v28  ;;  %v993_v24 = vrot.slane %v992_v23, 1  ;;  %v7984_v34 = vld [vmem:[#allocation115_spill] sm:$0xff] }
 0x1e4   :  { %v1520_v0 = vmul.f32 0.125, %v1516_v49  ;;  %v796_v62 = vrot.slane %v795_v17, 1  ;;  %v1000_v61 = vrot.slane %v999_v5, 1  ;;  %v1007_v48 = vrot.slane %v1006_v30, 1 }
 0x1e5   :  { %v1014_v32 = vrot.slane %v1013_v22, 1  ;;  %v1021_v10 = vrot.slane %v1020_v14, 1  ;;  %v1356_v33 = vsel %vm1335_vm3, %v755_v25, %v748_v51  ;;  %v1420_v12 = vsel %vm1335_vm3, %v980_v60, %v973_v58  ;;  %v7982_v60 = vld [vmem:[#allocation113_spill] sm:$0xff] }
 0x1e6   :  { %v828_v26 = vadd.f32 %v827_v44, %v5674_v13  ;;  %v1053_v57 = vadd.f32 %v1052_v41, %v5678_v47  ;;  %4530 = vmatmul.mubr.msk.f32.vlgmr.msra.gmra.mxu0 %vm1535_vm11, %v1520_v0  ;;  %v769_v28 = vadd.f32 %v768_v45, %v767_v7  ;;  %v776_v36 = vadd.f32 %v775_v31, %v774_v56 }
 0x1e7   :  { %v783_v2 = vadd.f32 %v782_v1, %v781_v27  ;;  %v994_v29 = vadd.f32 %v993_v24, %v992_v23  ;;  %v840_v40 = vsel %vm629_vm1, %v7972_v53, 0.0  ;;  %v1065_v51 = vsel %vm854_vm2, %v7972_v53, 0.0 }
 0x1e8   :  { %v790_v43 = vadd.f32 %v789_v37, %v788_v35  ;;  %v5835_v42 = vadd.f32 %v796_v62, %v795_v17  ;;  %v1357_v13 = vsel %vm1337_vm4, %v762_v11, %v1356_v33  ;;  %v1421_v44 = vsel %vm1337_vm4, %v987_v52, %v1420_v12  ;;  %v7974_v35 = vld [vmem:[#allocation117_spill] sm:$0xff]  ;;  %v7978_v17 = vld [vmem:[#allocation114_spill] sm:$0xff]  ;;  %v7986_v62 = vld [vmem:[#allocation116_spill] sm:$0xff] }
 0x1e9   :  { %v1001_v47 = vadd.f32 %v1000_v61, %v999_v5  ;;  %v1008_v41 = vadd.f32 %v1007_v48, %v1006_v30  ;;  %v1015_v25 = vadd.f32 %v1014_v32, %v1013_v22  ;;  %v5839_v18 = vadd.f32 %v1021_v10, %v1020_v14  ;;  %v7988_v32 = vld [vmem:[#allocation112_spill] sm:$0xff] }
 0x1ea   :  { %v847_v16 = vsel %vm629_vm1, %v7973_v46, 0.0  ;;  %v1072_v3 = vsel %vm854_vm2, %v7973_v46, 0.0  ;;  %v841_v7 = vrot.slane %v840_v40, 4  ;;  %v1066_v56 = vrot.slane %v1065_v51, 4 }
 0x1eb   :  { %v1358_v27 = vsel %vm1339_vm5, %v769_v28, %v1357_v13  ;;  %v1422_v15 = vsel %vm1339_vm5, %v994_v29, %v1421_v44  ;;  %v7975_v4 = vrot.slane %v7974_v35, 4  ;;  %v7977_v23 = vrot.slane %v7976_v55, 4 }
 0x1ec   :  { %v7979_v5 = vrot.slane %v7978_v17, 1  ;;  %v7981_v9 = vrot.slane %v7980_v59, 1  ;;  %v829_v20 = vrot.slane %v828_v26, 2  ;;  %v1054_v38 = vrot.slane %v1053_v57, 2 }
 0x1ed   :  { %v835_v19 = vadd.f32 %v7975_v4, %v7974_v35  ;;  %v1060_v11 = vadd.f32 %v7977_v23, %v7976_v55  ;;  %v7983_v22 = vrot.slane %v7982_v60, 2  ;;  %v848_v39 = vrot.slane %v847_v16, 4 }
 0x1ee   :  { %v804_v30 = vadd.f32 %v7979_v5, %v7978_v17  ;;  %v811_v58 = vadd.f32 %v7981_v9, %v7980_v59  ;;  %v7985_v45 = vrot.slane %v7984_v34, 2  ;;  %v1073_v1 = vrot.slane %v1072_v3, 4 }
 0x1ef   :  { %v823_v14 = vadd.f32 %v7983_v22, %v7982_v60  ;;  %v817_v49 = vrot.slane %v5708_v21, 1  ;;  %v1042_v37 = vrot.slane %v5725_v50, 1  ;;  %v842_v52 = vadd.f32 %v841_v7, %v840_v40 }
 0x1f0   :  { %v1048_v31 = vadd.f32 %v7985_v45, %v7984_v34  ;;  %v1067_v24 = vadd.f32 %v1066_v56, %v1065_v51  ;;  %v836_v0 = vrot.slane %v835_v19, 2  ;;  %v7987_v61 = vrot.slane %v7986_v62, 1 }
 0x1f1   :  { %v7989_v10 = vrot.slane %v7988_v32, 1  ;;  %v1061_v12 = vrot.slane %v1060_v11, 2  ;;  %v1359_v28 = vsel %vm1341_vm6, %v776_v36, %v1358_v27  ;;  %v1423_v29 = vsel %vm1341_vm6, %v1001_v47, %v1422_v15 }
 0x1f2   :  { %v1029_v48 = vadd.f32 %v7987_v61, %v7986_v62  ;;  %v830_v13 = vadd.f32 %v829_v20, %v828_v26  ;;  %v1055_v44 = vadd.f32 %v1054_v38, %v1053_v57  ;;  %v824_v35 = vrot.slane %v823_v14, 1 }
 0x1f3   :  { %v1036_v33 = vadd.f32 %v7989_v10, %v7988_v32  ;;  %v849_v4 = vadd.f32 %v848_v39, %v847_v16  ;;  %v1049_v40 = vrot.slane %v1048_v31, 1  ;;  %v1074_v51 = vadd.f32 %v1073_v1, %v1072_v3 }
 0x1f4   :  { %v818_v7 = vadd.f32 %v817_v49, %v5708_v21  ;;  %v1043_v56 = vadd.f32 %v1042_v37, %v5725_v50  ;;  %v843_v55 = vrot.slane %v842_v52, 2  ;;  %v1068_v23 = vrot.slane %v1067_v24, 2 }
 0x1f5   :  { %v837_v17 = vadd.f32 %v836_v0, %v835_v19  ;;  %v1062_v5 = vadd.f32 %v1061_v12, %v1060_v11  ;;  %v1363_v59 = vsel %vm1335_vm3, %v811_v58, %v804_v30  ;;  %v1427_v36 = vsel %vm1335_vm3, %v1036_v33, %v1029_v48 }
 0x1f6   :  { %v1360_v47 = vsel %vm1343_vm7, %v783_v2, %v1359_v28  ;;  %v1424_v26 = vsel %vm1343_vm7, %v1008_v41, %v1423_v29  ;;  %v831_v57 = vrot.slane %v830_v13, 1  ;;  %v1056_v16 = vrot.slane %v1055_v44, 1 }
 0x1f7   :  { %v825_v27 = vadd.f32 %v824_v35, %v823_v14  ;;  %v850_v3 = vrot.slane %v849_v4, 2  ;;  %v1050_v15 = vadd.f32 %v1049_v40, %v1048_v31  ;;  %v1075_v21 = vrot.slane %v1074_v51, 2 }
 0x1f8   :  { %v1364_v50 = vsel %vm1337_vm4, %v818_v7, %v1363_v59  ;;  %v1428_v9 = vsel %vm1337_vm4, %v1043_v56, %v1427_v36  ;;  %v844_v19 = vadd.f32 %v843_v55, %v842_v52  ;;  %v1069_v11 = vadd.f32 %v1068_v23, %v1067_v24 }
 0x1f9   :  { %v1361_v30 = vsel %vm1345_vm8, %v790_v43, %v1360_v47  ;;  %v1425_v58 = vsel %vm1345_vm8, %v1015_v25, %v1424_v26  ;;  %v838_v20 = vrot.slane %v837_v17, 1  ;;  %v1063_v2 = vrot.slane %v1062_v5, 1 }
 0x1fa   :  { %v832_v38 = vadd.f32 %v831_v57, %v830_v13  ;;  %v1057_v41 = vadd.f32 %v1056_v16, %v1055_v44  ;;  %v851_v60 = vadd.f32 %v850_v3, %v849_v4  ;;  %v1076_v22 = vadd.f32 %v1075_v21, %v1074_v51 }
 0x1fb   :  { %v1365_v14 = vsel %vm1339_vm5, %v825_v27, %v1364_v50  ;;  %v1429_v39 = vsel %vm1339_vm5, %v1050_v15, %v1428_v9  ;;  %v1362_v34 = vsel %vm1347_vm9, %v5835_v42, %v1361_v30  ;;  %v1426_v45 = vsel %vm1347_vm9, %v5839_v18, %v1425_v58 }
 0x1fc   :  { %v845_v31 = vrot.slane %v844_v19, 1  ;;  %v1070_v43 = vrot.slane %v1069_v11, 1  ;;  %v839_v1 = vadd.f32 %v838_v20, %v837_v17  ;;  %v1064_v25 = vadd.f32 %v1063_v2, %v1062_v5 }
 0x1fd   :  { %v1366_v49 = vsel %vm1341_vm6, %v832_v38, %v1365_v14  ;;  %v1430_v37 = vsel %vm1341_vm6, %v1057_v41, %v1429_v39  ;;  %v1512_v52 = vsel %vm629_vm1, %v1362_v34, %v1426_v45  ;;  %v1503_v24 = vpop.permute.xlu0 %1502  ;;  %v852_v0 = vrot.slane %v851_v60, 1 }
 0x1fe   :  { %v1077_v62 = vrot.slane %v1076_v22, 1  ;;  %v1517_v61 = vsel %vm1514_vm10, %v1512_v52, %v1503_v24  ;;  %v846_v48 = vadd.f32 %v845_v31, %v844_v19  ;;  %v1071_v42 = vadd.f32 %v1070_v43, %v1069_v11 }
 0x1ff   :  { %v1521_v32 = vmul.f32 0.125, %v1517_v61  ;;  %v1367_v18 = vsel %vm1343_vm7, %v839_v1, %v1366_v49  ;;  %v1431_v10 = vsel %vm1343_vm7, %v1064_v25, %v1430_v37  ;;  %v853_v33 = vadd.f32 %v852_v0, %v851_v60 }
 0x200   :  { %v1078_v12 = vadd.f32 %v1077_v62, %v1076_v22  ;;  %v1368_v28 = vsel %vm1345_vm8, %v846_v48, %v1367_v18  ;;  %v1432_v29 = vsel %vm1345_vm8, %v1071_v42, %v1431_v10  ;;  %v4774_v47 = vmov 1966171168  }
 0x201   :  { %4532 = vmatprep.mubr.msk.f32.mxu0 %vm1535_vm11, %v1521_v32  ;;  %v1369_v13 = vsel %vm1347_vm9, %v853_v33, %v1368_v28  ;;  %v1663_v26 = vunpack.c.l.s4 %v4774_v47  ;;  %v1665_v57 = vlaneseq }
 0x202   :  { %v1433_v44 = vsel %vm1347_vm9, %v1078_v12, %v1432_v29 }
 0x203   :  { %v1513_v4 = vsel %vm629_vm1, %v1369_v13, %v1433_v44  ;;  %v1664_v16 = vunpack.c.0.s8 %v1663_v26  ;;  %v1666_v27 = vshrl.u32 %v1665_v57, 7 }
 0x205   :  { %v5905_v3 = vsub.s32 %v1664_v16, %v1666_v27  ;;  %v5908_v50 = vsub.s32 0, %v1666_v27 }
 0x208   :  { %v1505_v35 = vpop.permute.xlu1 %1504 }
 0x209   :  { %v1518_v40 = vsel %vm1514_vm10, %v1513_v4, %v1505_v35 }
 0x20a   :  { %v1522_v51 = vmul.f32 0.125, %v1518_v40 }
 0x20c   :  { %4533 = vmatmul.mubr.msk.f32.gmra.mxu0 %vm1535_vm11, %v1522_v51 }
 0x2a6   :  { %v4531_v7 = vpop.f32.mrf.mxu0 }
 0x2a7   :  { %v4331_v56 = vmul.f32 -1.442695, %v4531_v7 }
 0x2a8   :  { %v1614_v55 = vpop.f32.mrf.mxu0 }
 0x2a9   :  { %4606 = vpow2.f32 %v4331_v56  ;;  %v4330_v23 = vmul.f32 -1.442695, %v1614_v55 }
 0x2ab   :  { %4608 = vpow2.f32 %v4330_v23 }
 0x2b6   :  { %v4607_v17 = vpop.eup %4606 }
 0x2b7   :  { %v1646_v5 = vadd.f32 1.0, %v4607_v17 }
 0x2b8   :  { %v4609_v59 = vpop.eup %4608 }
 0x2b9   :  { %4610 = vrcp.f32 %v1646_v5  ;;  %v1645_v36 = vadd.f32 1.0, %v4609_v59 }
 0x2bb   :  { %4612 = vrcp.f32 %v1645_v36 }
 0x2c6   :  { %v4611_v15 = vpop.eup %4610 }
 0x2c7   :  { %v1717_v21 = vrot.slane %v4611_v15, %v5905_v3  ;;  %v1710_v58 = vcombine.high %v4611_v15, %v4611_v15 }
 0x2c8   :  { %v4613_v9 = vpop.eup %4612 }
 0x2c9   :  { %v1733_v19 = vrot.slane %v1717_v21, %v5905_v3  ;;  %v1725_v11 = vcombine.high %v1717_v21, %v1717_v21  ;;  %v1668_v30 = vrot.slane %v4613_v9, %v5905_v3  ;;  %v1724_v39 = vrot.slane %v1710_v58, %v5905_v3 }
 0x2ca   :  { %v1661_v25 = vcombine.high %v4613_v9, %v4613_v9 }
 0x2cb   :  { %v5913_v20 = vrot.slane %v1733_v19, %v5908_v50  ;;  %v1747_v2 = vrot.slane %v1725_v11, %v5905_v3  ;;  %v1684_v38 = vrot.slane %v1668_v30, %v5905_v3  ;;  %v1755_v14 = vcombine.high %v1733_v19, %v1733_v19 }
 0x2cc   :  { %v4534_v41 = vpop.f32.mrf.mxu0  ;;  %v1740_v1 = vrot.slane %v1724_v39, %v5905_v3  ;;  %v1676_v37 = vcombine.high %v1668_v30, %v1668_v30  ;;  %v5948_v52 = vrot.slane %v1661_v25, %v5905_v3  ;;  %v1726_v18 = vcombine.high %v1724_v39, %v1724_v39 }
 0x2cd   :  { %7990 = vst [vmem:[#allocation80_spill] sm:$0xff] %v5913_v20  ;;  %v4333_v60 = vmul.f32 -1.442695, %v4534_v41  ;;  %2289 = vrot.lane.b32.xlu1 %v5913_v20, %s4775_s23  ;;  %2001 = vrot.lane.b32.xlu0 %v5913_v20, %s4772_s26  ;;  %v5923_v45 = vrot.slane %v1747_v2, %v5908_v50  ;;  %v5926_v31 = vrot.slane %v1684_v38, %v5908_v50  ;;  %v8051_v20 = vld [vmem:[#allocation31_spill] sm:$0xff] }
 0x2ce   :  { %v1624_v22 = vpop.f32.mrf.mxu0  ;;  %v5933_v43 = vrot.slane %v1755_v14, %v5908_v50  ;;  %v5941_v49 = vrot.slane %v1740_v1, %v5908_v50  ;;  %v1706_v24 = vcombine.high %v1684_v38, %v1684_v38  ;;  %v5951_v0 = vrot.slane %v1676_v37, %v5905_v3 }
 0x2cf   :  { %4614 = vpow2.f32 %v4333_v60  ;;  %v4332_v34 = vmul.f32 -1.442695, %v1624_v22  ;;  %7991 = vst [vmem:[#allocation82_spill] sm:$0xff] %v5923_v45  ;;  %7992 = vst [vmem:[#allocation75_spill] sm:$0xff] %v5926_v31  ;;  %v1757_v42 = vcombine.high %v1747_v2, %v1747_v2  ;;  %v1691_v32 = vrot.slane %v5948_v52, %v5905_v3 }
 0x2d0   :  { %7993 = vst [vmem:[#allocation76_spill] sm:$0xff] %v5933_v43  ;;  %7994 = vst [vmem:[#allocation72_spill] sm:$0xff] %v5941_v49  ;;  %v5960_v33 = vrot.slane %v1706_v24, %v5908_v50  ;;  %v5964_v12 = vrot.slane %v5951_v0, %v5908_v50  ;;  %v5977_v13 = vrot.slane %v1726_v18, %v5905_v3 }
 0x2d1   :  { %4616 = vpow2.f32 %v4332_v34  ;;  %2003 = vrot.lane.b32.xlu1 %v5923_v45, %s4772_s26  ;;  %1985 = vrot.lane.b32.xlu0 %v5926_v31, %s4772_s26  ;;  %v5971_v28 = vrot.slane %v1757_v42, %v5908_v50  ;;  %v5974_v29 = vrot.slane %v1691_v32, %v5908_v50  ;;  %v1756_v44 = vcombine.high %v1740_v1, %v1740_v1 }
 0x2d2   :  { %7995 = vst [vmem:[#allocation77_spill] sm:$0xff] %v5960_v33  ;;  %7996 = vst [vmem:[#allocation73_spill] sm:$0xff] %v5964_v12  ;;  %v5985_v35 = vrot.slane %v5977_v13, %v5908_v50  ;;  %v1707_v40 = vcombine.high %v1691_v32, %v1691_v32  ;;  %v1708_v18 = vcombine.high %v5951_v0, %v5951_v0 }
 0x2d3   :  { %7997 = vst [vmem:[#allocation109_spill] sm:$0xff] %v5971_v28  ;;  %7998 = vst [vmem:[#allocation110_spill] sm:$0xff] %v5974_v29  ;;  %v5988_v4 = vrot.slane %v1756_v44, %v5908_v50 }
 0x2d4   :  { %7999 = vst [vmem:[#allocation108_spill] sm:$0xff] %v5985_v35  ;;  %v5995_v51 = vrot.slane %v1707_v40, %v5908_v50 }
 0x2d5   :  { %2291 = vrot.lane.b32.xlu1 %v5923_v45, %s4775_s23  ;;  %2005 = vrot.lane.b32.xlu0 %v5933_v43, %s4772_s26  ;;  %8000 = vst [vmem:[#allocation117_spill] sm:$0xff] %v5988_v4 }
 0x2d6   :  { %8001 = vst [vmem:[#allocation118_spill] sm:$0xff] %v5995_v51 }
 0x2d9   :  { %2293 = vrot.lane.b32.xlu1 %v5933_v43, %s4775_s23  ;;  %2009 = vrot.lane.b32.xlu0 %v5941_v49, %s4772_s26 }
 0x2dc   :  { %v4615_v62 = vpop.eup %4614 }
 0x2dd   :  { %v1648_v61 = vadd.f32 1.0, %v4615_v62  ;;  %2297 = vrot.lane.b32.xlu1 %v5941_v49, %s4775_s23  ;;  %2273 = vrot.lane.b32.xlu0 %v5926_v31, %s4775_s23  ;;  %v8044_v49 = vld [vmem:[#allocation16_spill] sm:$0xff] }
 0x2de   :  { %v4617_v48 = vpop.eup %4616 }
 0x2df   :  { %4618 = vrcp.f32 %v1648_v61  ;;  %v1647_v10 = vadd.f32 1.0, %v4617_v48 }
 0x2e1   :  { %4620 = vrcp.f32 %v1647_v10  ;;  %1989 = vrot.lane.b32.xlu0 %v5960_v33, %s4772_s26  ;;  %1987 = vrot.lane.b32.xlu1 %v5964_v12, %s4772_s26  ;;  %v1677_v10 = vcombine.high %v5948_v52, %v5948_v52 }
 0x2e5   :  { %2007 = vrot.lane.b32.xlu1 %v5971_v28, %s4772_s26  ;;  %1993 = vrot.lane.b32.xlu0 %v5974_v29, %s4772_s26 }
 0x2e9   :  { %2011 = vrot.lane.b32.xlu1 %v5985_v35, %s4772_s26  ;;  %2013 = vrot.lane.b32.xlu0 %v5988_v4, %s4772_s26 }
 0x2ec   :  { %v4619_v7 = vpop.eup %4618 }
 0x2ed   :  { %2275 = vrot.lane.b32.xlu1 %v5964_v12, %s4775_s23  ;;  %1997 = vrot.lane.b32.xlu0 %v5995_v51, %s4772_s26  ;;  %v1815_v56 = vrot.slane %v4619_v7, %v5905_v3  ;;  %v1808_v55 = vcombine.high %v4619_v7, %v4619_v7  ;;  %v6077_v7 = vrot.slane %v1708_v18, %v5908_v50 }
 0x2ee   :  { %v4621_v23 = vpop.eup %4620 }
 0x2ef   :  { %v1831_v17 = vrot.slane %v1815_v56, %v5905_v3  ;;  %v1766_v5 = vrot.slane %v4621_v23, %v5905_v3  ;;  %v1822_v59 = vrot.slane %v1808_v55, %v5905_v3  ;;  %v1759_v36 = vcombine.high %v4621_v23, %v4621_v23  ;;  %8015 = vst [vmem:[#allocation126_spill] sm:$0xff] %v6077_v7 }
 0x2f0   :  { %v1823_v47 = vcombine.high %v1815_v56, %v1815_v56  ;;  %v1705_v56 = vrot.slane %v1677_v10, %v5905_v3  ;;  %v1758_v23 = vcombine.high %v5977_v13, %v5977_v13  ;;  %v8028_v10 = vld [vmem:[#allocation17_spill] sm:$0xff] }
 0x2f1   :  { %2277 = vrot.lane.b32.xlu1 %v5960_v33, %s4775_s23  ;;  %v6008_v26 = vrot.slane %v1831_v17, %v5908_v50  ;;  %v1782_v57 = vrot.slane %v1766_v5, %v5905_v3  ;;  %v1824_v16 = vcombine.high %v1822_v59, %v1822_v59  ;;  %v1773_v27 = vrot.slane %v1759_v36, %v5905_v3 }
 0x2f2   :  { %v1845_v15 = vrot.slane %v1823_v47, %v5905_v3  ;;  %v1774_v21 = vcombine.high %v1766_v5, %v1766_v5  ;;  %v1853_v19 = vcombine.high %v1831_v17, %v1831_v17  ;;  %v1838_v34 = vrot.slane %v1822_v59, %v5905_v3  ;;  %v8020_v59 = vld [vmem:[#allocation7_spill] sm:$0xff]  ;;  %v8022_v47 = vld [vmem:[#allocation5_spill] sm:$0xff] }
 0x2f3   :  { %8002 = vst [vmem:[#allocation114_spill] sm:$0xff] %v6008_v26  ;;  %2033 = vrot.lane.b32.xlu0 %v6008_v26, %s4772_s26  ;;  %v1852_v9 = vrot.slane %v1824_v16, %v5905_v3  ;;  %v1775_v11 = vcombine.high %v1773_v27, %v1773_v27  ;;  %v6019_v30 = vrot.slane %v1782_v57, %v5908_v50  ;;  %v405_v36 = vmul.f32 0.999995, %v8020_v59 }
 0x2f4   :  { %v6022_v58 = vrot.slane %v1845_v15, %v5908_v50  ;;  %v1796_v2 = vrot.slane %v1774_v21, %v5905_v3  ;;  %v1855_v38 = vcombine.high %v1845_v15, %v1845_v15  ;;  %v6041_v25 = vrot.slane %v1853_v19, %v5908_v50  ;;  %v8023_v15 = vld [vmem:[#allocation11_spill] sm:$0xff] }
 0x2f5   :  { %2281 = vrot.lane.b32.xlu1 %v5974_v29, %s4775_s23  ;;  %8003 = vst [vmem:[#allocation111_spill] sm:$0xff] %v6019_v30  ;;  %v6026_v41 = vrot.slane %v1852_v9, %v5908_v50  ;;  %v1803_v39 = vrot.slane %v1775_v11, %v5905_v3  ;;  %v1856_v1 = vcombine.high %v1852_v9, %v1852_v9  ;;  %v437_v16 = vmax.f32 %v405_v36, 0.0  ;;  %v8024_v9 = vld [vmem:[#allocation8_spill] sm:$0xff]  ;;  %v8031_v36 = vld [vmem:[#allocation18_spill] sm:$0xff] }
 0x2f6   :  { %8004 = vst [vmem:[#allocation113_spill] sm:$0xff] %v6022_v58  ;;  %v6031_v60 = vrot.slane %v1796_v2, %v5908_v50  ;;  %v1806_v22 = vcombine.high %v1796_v2, %v1796_v2  ;;  %v6034_v14 = vrot.slane %v1855_v38, %v5908_v50  ;;  %8008 = vst [vmem:[#allocation119_spill] sm:$0xff] %v6041_v25  ;;  %v407_v21 = vmul.f32 0.999995, %v8023_v15 }
 0x2f7   :  { %8005 = vst [vmem:[#allocation115_spill] sm:$0xff] %v6026_v41  ;;  %2017 = vrot.lane.b32.xlu0 %v6019_v30, %s4772_s26  ;;  %v6047_v24 = vrot.slane %v1803_v39, %v5908_v50  ;;  %v1807_v62 = vcombine.high %v1803_v39, %v1803_v39  ;;  %v6050_v61 = vrot.slane %v1856_v1, %v5908_v50  ;;  %v408_v19 = vmul.f32 0.999995, %v8024_v9  ;;  %v8027_v1 = vld [vmem:[#allocation12_spill] sm:$0xff] }
 0x2f8   :  { %8006 = vst [vmem:[#allocation116_spill] sm:$0xff] %v6031_v60  ;;  %8007 = vst [vmem:[#allocation112_spill] sm:$0xff] %v6034_v14  ;;  %v6044_v37 = vrot.slane %v1806_v22, %v5908_v50  ;;  %v6060_v42 = vrot.slane %v1838_v34, %v5908_v50  ;;  %v1804_v32 = vcombine.high %v1782_v57, %v1782_v57  ;;  %v406_v57 = vmul.f32 0.999995, %v8022_v47  ;;  %v8025_v22 = vld [vmem:[#allocation14_spill] sm:$0xff] }
 0x2f9   :  { %2295 = vrot.lane.b32.xlu1 %v5971_v28, %s4775_s23  ;;  %8010 = vst [vmem:[#allocation121_spill] sm:$0xff] %v6047_v24  ;;  %8011 = vst [vmem:[#allocation122_spill] sm:$0xff] %v6050_v61  ;;  %v6055_v48 = vrot.slane %v1807_v62, %v5908_v50  ;;  %v1789_v40 = vrot.slane %v1773_v27, %v5905_v3  ;;  %v1854_v0 = vcombine.high %v1838_v34, %v1838_v34 }
 0x2fa   :  { %8009 = vst [vmem:[#allocation120_spill] sm:$0xff] %v6044_v37  ;;  %8013 = vst [vmem:[#allocation124_spill] sm:$0xff] %v6060_v42  ;;  %v6071_v44 = vrot.slane %v1804_v32, %v5908_v50  ;;  %v6088_v55 = vrot.slane %v1705_v56, %v5908_v50  ;;  %v6100_v5 = vrot.slane %v1758_v23, %v5908_v50  ;;  %v438_v27 = vmax.f32 %v406_v57, 0.0 }
 0x2fb   :  { %2037 = vrot.lane.b32.xlu0 %v6041_v25, %s4772_s26  ;;  %8012 = vst [vmem:[#allocation123_spill] sm:$0xff] %v6055_v48  ;;  %v6083_v52 = vrot.slane %v1789_v40, %v5908_v50  ;;  %v6095_v3 = vrot.slane %v1854_v0, %v5908_v50  ;;  %v1805_v17 = vcombine.high %v1789_v40, %v1789_v40  ;;  %v439_v11 = vmax.f32 %v407_v21, 0.0  ;;  %v8033_v21 = vld [vmem:[#allocation22_spill] sm:$0xff] }
 0x2fc   :  { %8014 = vst [vmem:[#allocation125_spill] sm:$0xff] %v6071_v44  ;;  %8017 = vst [vmem:[#allocation128_spill] sm:$0xff] %v6088_v55  ;;  %v1709_v2 = vcombine.high %v1705_v56, %v1705_v56  ;;  %v440_v38 = vmax.f32 %v408_v19, 0.0  ;;  %v409_v39 = vmul.f32 0.999995, %v8025_v22  ;;  %v8029_v56 = vld [vmem:[#allocation15_spill] sm:$0xff] }
 0x2fd   :  { %2299 = vrot.lane.b32.xlu1 %v5985_v35, %s4775_s23  ;;  %8016 = vst [vmem:[#allocation127_spill] sm:$0xff] %v6083_v52  ;;  %8018 = vst [vmem:[#allocation129_spill] sm:$0xff] %v6095_v3  ;;  %v6106_v13 = vrot.slane %v1805_v17, %v5908_v50  ;;  %v410_v62 = vmul.f32 0.999995, %v8027_v1  ;;  %v411_v40 = vmul.f32 0.999995, %v8028_v10 }
 0x2fe   :  { %8019 = vst [vmem:[#allocation130_spill] sm:$0xff] %v6100_v5  ;;  %v6127_v34 = vrot.slane %v1709_v2, %v5908_v50  ;;  %v441_v32 = vmax.f32 %v409_v39, 0.0  ;;  %v412_v0 = vmul.f32 0.999995, %v8029_v56  ;;  %v8030_v17 = vld [vmem:[#allocation20_spill] sm:$0xff]  ;;  %v8034_v22 = vld [vmem:[#allocation27_spill] sm:$0xff] }
 0x2ff   :  { %2041 = vrot.lane.b32.xlu0 %v6060_v42, %s4772_s26  ;;  %8021 = vst [vmem:[#allocation7_spill] sm:$0xff] %v6106_v13  ;;  %v442_v18 = vmax.f32 %v410_v62, 0.0  ;;  %v443_v50 = vmax.f32 %v411_v40, 0.0  ;;  %v413_v59 = vmul.f32 0.999995, %v8030_v17  ;;  %v8036_v56 = vld [vmem:[#allocation29_spill] sm:$0xff] }
 0x300   :  { %8026 = vst [vmem:[#allocation5_spill] sm:$0xff] %v6127_v34  ;;  %v444_v23 = vmax.f32 %v412_v0, 0.0  ;;  %v414_v47 = vmul.f32 0.999995, %v8031_v36  ;;  %v416_v9 = vmul.f32 0.999995, %v8033_v21 }
 0x301   :  { %2301 = vrot.lane.b32.xlu1 %v5988_v4, %s4775_s23  ;;  %v445_v57 = vmax.f32 %v413_v59, 0.0  ;;  %v8037_v17 = vld [vmem:[#allocation37_spill] sm:$0xff] }
 0x303   :  { %2021 = vrot.lane.b32.xlu0 %v6071_v44, %s4772_s26 }
 0x305   :  { %1991 = vrot.lane.b32.xlu1 %v6077_v7, %s4772_s26 }
 0x307   :  { %2025 = vrot.lane.b32.xlu0 %v6083_v52, %s4772_s26 }
 0x309   :  { %1995 = vrot.lane.b32.xlu1 %v6088_v55, %s4772_s26 }
 0x30b   :  { %2045 = vrot.lane.b32.xlu0 %v6095_v3, %s4772_s26 }
 0x30d   :  { %2015 = vrot.lane.b32.xlu1 %v6100_v5, %s4772_s26 }
 0x30f   :  { %2029 = vrot.lane.b32.xlu0 %v6106_v13, %s4772_s26 }
 0x311   :  { %2279 = vrot.lane.b32.xlu1 %v6077_v7, %s4775_s23 }
 0x313   :  { %2465 = vrot.lane.b32.xlu0 %v437_v16, %s4773_s3  ;;  %v446_v16 = vmax.f32 %v414_v47, 0.0 }
 0x315   :  { %2283 = vrot.lane.b32.xlu1 %v6088_v55, %s4775_s23 }
 0x317   :  { %2467 = vrot.lane.b32.xlu0 %v438_v27, %s4773_s3  ;;  %v8032_v27 = vld [vmem:[#allocation24_spill] sm:$0xff] }
 0x318   :  { %v415_v15 = vmul.f32 0.999995, %v8032_v27  ;;  %v8038_v27 = vld [vmem:[#allocation6_spill] sm:$0xff] }
 0x319   :  { %2285 = vrot.lane.b32.xlu1 %v5995_v51, %s4775_s23 }
 0x31a   :  { %v447_v19 = vmax.f32 %v415_v15, 0.0 }
 0x31b   :  { %2469 = vrot.lane.b32.xlu0 %v439_v11, %s4773_s3  ;;  %v448_v11 = vmax.f32 %v416_v9, 0.0 }
 0x31d   :  { %2303 = vrot.lane.b32.xlu1 %v6100_v5, %s4775_s23 }
 0x31f   :  { %2471 = vrot.lane.b32.xlu0 %v440_v38, %s4773_s3 }
 0x321   :  { %1999 = vrot.lane.b32.xlu1 %v6127_v34, %s4772_s26 }
 0x323   :  { %2473 = vrot.lane.b32.xlu0 %v441_v32, %s4773_s3  ;;  %v8035_v32 = vld [vmem:[#allocation21_spill] sm:$0xff] }
 0x325   :  { %2287 = vrot.lane.b32.xlu1 %v6127_v34, %s4775_s23 }
 0x327   :  { %2475 = vrot.lane.b32.xlu0 %v442_v18, %s4773_s3 }
 0x329   :  { %2321 = vrot.lane.b32.xlu1 %v6008_v26, %s4775_s23 }
 0x32b   :  { %2477 = vrot.lane.b32.xlu0 %v443_v50, %s4773_s3 }
 0x32d   :  { %2035 = vrot.lane.b32.xlu1 %v6022_v58, %s4772_s26 }
 0x32f   :  { %2479 = vrot.lane.b32.xlu0 %v444_v23, %s4773_s3 }
 0x331   :  { %2305 = vrot.lane.b32.xlu1 %v6019_v30, %s4775_s23 }
 0x333   :  { %2481 = vrot.lane.b32.xlu0 %v445_v57, %s4773_s3 }
 0x335   :  { %2323 = vrot.lane.b32.xlu1 %v6022_v58, %s4775_s23 }
 0x337   :  { %2483 = vrot.lane.b32.xlu0 %v446_v16, %s4773_s3 }
 0x339   :  { %2325 = vrot.lane.b32.xlu1 %v6041_v25, %s4775_s23 }
 0x33b   :  { %2485 = vrot.lane.b32.xlu0 %v447_v19, %s4773_s3  ;;  %v8039_v19 = vld [vmem:[#allocation13_spill] sm:$0xff] }
 0x33d   :  { %2329 = vrot.lane.b32.xlu1 %v6060_v42, %s4775_s23  ;;  %v8041_v42 = vld [vmem:[#allocation25_spill] sm:$0xff] }
 0x33f   :  { %2487 = vrot.lane.b32.xlu0 %v448_v11, %s4773_s3  ;;  %v6160_v2 = vpop.permute.xlu1 %2289  ;;  %v2002_v38 = vpop.permute.xlu0 %2001 }
 0x340   :  { %v6163_v39 = vmul.f32 %v2002_v38, %v8034_v22 }
 0x341   :  { %2019 = vrot.lane.b32.xlu1 %v6031_v60, %s4772_s26 }
 0x343   :  { %2161 = vrot.lane.b32.xlu0 %v6163_v39, %s4772_s26  ;;  %v2004_v1 = vpop.permute.xlu1 %2003  ;;  %v6169_v62 = vpop.permute.xlu0 %1985 }
 0x344   :  { %v6172_v18 = vmul.f32 %v2004_v1, %v8035_v32 }
 0x345   :  { %2039 = vrot.lane.b32.xlu1 %v6034_v14, %s4772_s26 }
 0x347   :  { %2163 = vrot.lane.b32.xlu0 %v6172_v18, %s4772_s26  ;;  %v6178_v10 = vpop.permute.xlu1 %2291  ;;  %v2006_v40 = vpop.permute.xlu0 %2005 }
 0x348   :  { %v6181_v0 = vmul.f32 %v2006_v40, %v8036_v56  ;;  %v8040_v40 = vld [vmem:[#allocation19_spill] sm:$0xff] }
 0x349   :  { %2043 = vrot.lane.b32.xlu1 %v6026_v41, %s4772_s26 }
 0x34b   :  { %2165 = vrot.lane.b32.xlu0 %v6181_v0, %s4772_s26  ;;  %v6187_v50 = vpop.permute.xlu1 %2293  ;;  %v2010_v23 = vpop.permute.xlu0 %2009 }
 0x34c   :  { %v6190_v59 = vmul.f32 %v2010_v23, %v8037_v17 }
 0x34d   :  { %2307 = vrot.lane.b32.xlu1 %v6031_v60, %s4775_s23 }
 0x34f   :  { %2169 = vrot.lane.b32.xlu0 %v6190_v59, %s4772_s26  ;;  %v6196_v36 = vpop.permute.xlu1 %2297  ;;  %v6198_v47 = vpop.permute.xlu0 %2273 }
 0x351   :  { %2309 = vrot.lane.b32.xlu1 %v6071_v44, %s4775_s23 }
 0x353   :  { %v1988_v57 = vpop.permute.xlu1 %1987  ;;  %v1990_v16 = vpop.permute.xlu0 %1989 }
 0x354   :  { %v6203_v15 = vmul.f32 %v1988_v57, %v8038_v27  ;;  %v6210_v11 = vmul.f32 %v1990_v16, %v8039_v19  ;;  %v8059_v19 = vld [vmem:[#allocation61_spill] sm:$0xff] }
 0x355   :  { %2313 = vrot.lane.b32.xlu1 %v6083_v52, %s4775_s23 }
 0x356   :  { %2147 = vrot.lane.b32.xlu0 %v6203_v15, %s4772_s26 }
 0x357   :  { %v2008_v21 = vpop.permute.xlu1 %2007  ;;  %v1994_v9 = vpop.permute.xlu0 %1993 }
 0x358   :  { %v6217_v23 = vmul.f32 %v1994_v9, %v8040_v40  ;;  %v6226_v25 = vmul.f32 %v2008_v21, %v8041_v42  ;;  %v8057_v40 = vld [vmem:[#allocation54_spill] sm:$0xff] }
 0x359   :  { %2327 = vrot.lane.b32.xlu1 %v6034_v14, %s4775_s23  ;;  %v8042_v14 = vld [vmem:[#allocation34_spill] sm:$0xff] }
 0x35a   :  { %2149 = vrot.lane.b32.xlu0 %v6210_v11, %s4772_s26 }
 0x35b   :  { %v2012_v38 = vpop.permute.xlu1 %2011  ;;  %v2014_v1 = vpop.permute.xlu0 %2013 }
 0x35c   :  { %v6235_v26 = vmul.f32 %v2012_v38, %v8042_v14  ;;  %v6244_v58 = vmul.f32 %v2014_v1, %v5056_v6  ;;  %v8043_v6 = vld [vmem:[#allocation10_spill] sm:$0xff] }
 0x35d   :  { %2331 = vrot.lane.b32.xlu1 %v6026_v41, %s4775_s23 }
 0x35e   :  { %2153 = vrot.lane.b32.xlu0 %v6217_v23, %s4772_s26 }
 0x35f   :  { %v6223_v57 = vpop.permute.xlu1 %2275  ;;  %v1998_v16 = vpop.permute.xlu0 %1997 }
 0x361   :  { %2333 = vrot.lane.b32.xlu1 %v6095_v3, %s4775_s23 }
 0x362   :  { %2167 = vrot.lane.b32.xlu0 %v6226_v25, %s4772_s26 }
 0x363   :  { %v6232_v9 = vpop.permute.xlu1 %2277 }
 0x365   :  { %v2034_v41 = vpop.permute.xlu0 %2033  ;;  %2023 = vrot.lane.b32.xlu1 %v6044_v37, %s4772_s26 }
 0x366   :  { %2171 = vrot.lane.b32.xlu0 %v6235_v26, %s4772_s26 }
 0x367   :  { %v6241_v21 = vpop.permute.xlu1 %2281 }
 0x369   :  { %v2018_v3 = vpop.permute.xlu0 %2017  ;;  %2027 = vrot.lane.b32.xlu1 %v6047_v24, %s4772_s26 }
 0x36a   :  { %2173 = vrot.lane.b32.xlu0 %v6244_v58, %s4772_s26 }
 0x36b   :  { %v6250_v38 = vpop.permute.xlu1 %2295 }
 0x36d   :  { %v2038_v52 = vpop.permute.xlu0 %2037  ;;  %2047 = vrot.lane.b32.xlu1 %v6050_v61, %s4772_s26 }
 0x36e   :  { %v6355_v31 = vmul.f32 %v2038_v52, %v8059_v19 }
 0x36f   :  { %v6254_v44 = vpop.permute.xlu1 %2299 }
 0x371   :  { %v2042_v30 = vpop.permute.xlu0 %2041  ;;  %2311 = vrot.lane.b32.xlu1 %v6044_v37, %s4775_s23 }
 0x373   :  { %v6258_v1 = vpop.permute.xlu1 %2301 }
 0x375   :  { %v6260_v60 = vpop.permute.xlu0 %2021  ;;  %2315 = vrot.lane.b32.xlu1 %v6047_v24, %s4775_s23  ;;  %v8045_v24 = vld [vmem:[#allocation23_spill] sm:$0xff] }
 0x376   :  { %v6283_v14 = vmul.f32 %v1998_v16, %v8045_v24  ;;  %v8047_v16 = vld [vmem:[#allocation9_spill] sm:$0xff]  ;;  %v8055_v24 = vld [vmem:[#allocation44_spill] sm:$0xff] }
 0x377   :  { %v1992_v4 = vpop.permute.xlu1 %1991  ;;  %v6304_v43 = vmul.f32 %v6169_v62, %v8047_v16  ;;  %v8061_v16 = vld [vmem:[#allocation65_spill] sm:$0xff] }
 0x378   :  { %v6265_v34 = vmul.f32 %v1992_v4, %v8043_v6  ;;  %v8053_v6 = vld [vmem:[#allocation56_spill] sm:$0xff] }
 0x379   :  { %v6267_v5 = vpop.permute.xlu0 %2025  ;;  %2317 = vrot.lane.b32.xlu1 %v6106_v13, %s4775_s23  ;;  %v6330_v45 = vmul.f32 %v2034_v41, %v8053_v6 }
 0x37a   :  { %2151 = vrot.lane.b32.xlu0 %v6265_v34, %s4772_s26 }
 0x37b   :  { %v1996_v37 = vpop.permute.xlu1 %1995 }
 0x37c   :  { %v6274_v17 = vmul.f32 %v1996_v37, %v8044_v49 }
 0x37d   :  { %v6276_v35 = vpop.permute.xlu0 %2045  ;;  %2031 = vrot.lane.b32.xlu1 %v6055_v48, %s4772_s26 }
 0x37e   :  { %2155 = vrot.lane.b32.xlu0 %v6274_v17, %s4772_s26 }
 0x37f   :  { %v2016_v4 = vpop.permute.xlu1 %2015 }
 0x380   :  { %v6294_v55 = vmul.f32 %v2016_v4, %v7949_v63 }
 0x381   :  { %v6285_v13 = vpop.permute.xlu0 %2029  ;;  %2335 = vrot.lane.b32.xlu1 %v6050_v61, %s4775_s23 }
 0x382   :  { %2157 = vrot.lane.b32.xlu0 %v6283_v14, %s4772_s26 }
 0x383   :  { %v6291_v37 = vpop.permute.xlu1 %2279 }
 0x385   :  { %v6296_v49 = vpop.permute.xlu0 %2465  ;;  %2319 = vrot.lane.b32.xlu1 %v6055_v48, %s4775_s23 }
 0x386   :  { %8046 = vst [vmem:[#allocation11_spill] sm:$0xff] %v6296_v49  ;;  %2175 = vrot.lane.b32.xlu0 %v6294_v55, %s4772_s26 }
 0x387   :  { %v6306_v61 = vpop.permute.xlu1 %2283 }
 0x389   :  { %v6308_v56 = vpop.permute.xlu0 %2467  ;;  %2145 = vrot.lane.b32.xlu1 %v6304_v43, %s4772_s26 }
 0x38a   :  { %8048 = vst [vmem:[#allocation8_spill] sm:$0xff] %v6308_v56 }
 0x38b   :  { %v6312_v4 = vpop.permute.xlu1 %2285 }
 0x38d   :  { %v6314_v63 = vpop.permute.xlu0 %2469 }
 0x38e   :  { %8049 = vst [vmem:[#allocation14_spill] sm:$0xff] %v6314_v63 }
 0x38f   :  { %v6316_v28 = vpop.permute.xlu1 %2303 }
 0x391   :  { %v6318_v48 = vpop.permute.xlu0 %2471 }
 0x392   :  { %8050 = vst [vmem:[#allocation12_spill] sm:$0xff] %v6318_v48  ;;  %v8069_v48 = vld [vmem:[#allocation47_spill] sm:$0xff] }
 0x393   :  { %v2000_v42 = vpop.permute.xlu1 %1999 }
 0x394   :  { %v6321_v22 = vmul.f32 %v2000_v42, %v8051_v20  ;;  %v6339_v42 = vmul.f32 %v2018_v3, %v8055_v24 }
 0x395   :  { %v6323_v62 = vpop.permute.xlu0 %2473 }
 0x396   :  { %8052 = vst [vmem:[#allocation17_spill] sm:$0xff] %v6323_v62  ;;  %2159 = vrot.lane.b32.xlu0 %v6321_v22, %s4772_s26 }
 0x397   :  { %v6327_v7 = vpop.permute.xlu1 %2287 }
 0x399   :  { %v6332_v32 = vpop.permute.xlu0 %2475 }
 0x39a   :  { %8054 = vst [vmem:[#allocation15_spill] sm:$0xff] %v6332_v32  ;;  %2193 = vrot.lane.b32.xlu0 %v6330_v45, %s4772_s26 }
 0x39b   :  { %v6336_v51 = vpop.permute.xlu1 %2321 }
 0x39d   :  { %v6341_v20 = vpop.permute.xlu0 %2477 }
 0x39e   :  { %8056 = vst [vmem:[#allocation20_spill] sm:$0xff] %v6341_v20  ;;  %2177 = vrot.lane.b32.xlu0 %v6339_v42, %s4772_s26 }
 0x39f   :  { %v2036_v29 = vpop.permute.xlu1 %2035 }
 0x3a0   :  { %v6346_v33 = vmul.f32 %v2036_v29, %v8057_v40  ;;  %v6364_v29 = vmul.f32 %v2042_v30, %v8061_v16  ;;  %v8068_v30 = vld [vmem:[#allocation85_spill] sm:$0xff] }
 0x3a1   :  { %v6348_v41 = vpop.permute.xlu0 %2479  ;;  %v2377_v16 = vmul.f32 %v6160_v2, %v8068_v30 }
 0x3a2   :  { %8058 = vst [vmem:[#allocation18_spill] sm:$0xff] %v6348_v41  ;;  %2195 = vrot.lane.b32.xlu0 %v6346_v33, %s4772_s26  ;;  %8062 = vst [vmem:[#allocation22_spill] sm:$0xff] %v6364_v29  ;;  %v8067_v41 = vld [vmem:[#allocation40_spill] sm:$0xff] }
 0x3a3   :  { %v6352_v6 = vpop.permute.xlu1 %2305 }
 0x3a5   :  { %v6357_v3 = vpop.permute.xlu0 %2481 }
 0x3a6   :  { %8060 = vst [vmem:[#allocation24_spill] sm:$0xff] %v6357_v3  ;;  %2197 = vrot.lane.b32.xlu0 %v6355_v31, %s4772_s26 }
 0x3a7   :  { %v6361_v24 = vpop.permute.xlu1 %2323 }
 0x3a9   :  { %v6366_v40 = vpop.permute.xlu0 %2483 }
 0x3aa   :  { %8063 = vst [vmem:[#allocation131_spill] sm:$0xff] %v6366_v40  ;;  %2201 = vrot.lane.b32.xlu0 %v6364_v29, %s4772_s26 }
 0x3ab   :  { %v6370_v12 = vpop.permute.xlu1 %2325 }
 0x3ad   :  { %v6372_v27 = vpop.permute.xlu0 %2485 }
 0x3ae   :  { %8064 = vst [vmem:[#allocation132_spill] sm:$0xff] %v6372_v27  ;;  %v6388_v27 = vmul.f32 %v6260_v60, %v8069_v48 }
 0x3af   :  { %v6374_v52 = vpop.permute.xlu1 %2329 }
 0x3b0   :  { %8065 = vst [vmem:[#allocation133_spill] sm:$0xff] %v6374_v52  ;;  %8070 = vst [vmem:[#allocation85_spill] sm:$0xff] %v6388_v27 }
 0x3b1   :  { %v6376_v19 = vpop.permute.xlu0 %2487 }
 0x3b2   :  { %8066 = vst [vmem:[#allocation134_spill] sm:$0xff] %v6376_v19 }
 0x3b3   :  { %v2020_v3 = vpop.permute.xlu1 %2019 }
 0x3b4   :  { %v6379_v20 = vmul.f32 %v2020_v3, %v8067_v41  ;;  %v8071_v41 = vld [vmem:[#allocation51_spill] sm:$0xff] }
 0x3b5   :  { %v2162_v32 = vpop.permute.xlu0 %2161  ;;  %v6395_v2 = vmul.f32 %v6267_v5, %v8071_v41  ;;  %v6419_v41 = vmul.f32 %v6276_v35, %v7972_v53  ;;  %v8083_v35 = vld [vmem:[#allocation45_spill] sm:$0xff] }
 0x3b6   :  { %v2249_v40 = vadd.f32 %v2162_v32, %v6163_v39  ;;  %2179 = vrot.lane.b32.xlu0 %v6379_v20, %s4772_s26  ;;  %v8073_v32 = vld [vmem:[#allocation57_spill] sm:$0xff] }
 0x3b7   :  { %v2040_v62 = vpop.permute.xlu1 %2039  ;;  %8072 = vst [vmem:[#allocation135_spill] sm:$0xff] %v6395_v2  ;;  %8079 = vst [vmem:[#allocation140_spill] sm:$0xff] %v6419_v41 }
 0x3b8   :  { %v2409_v63 = vadd.f32 %v2377_v16, %v2249_v40  ;;  %v6402_v30 = vmul.f32 %v2040_v62, %v8073_v32  ;;  %v8076_v40 = vld [vmem:[#allocation63_spill] sm:$0xff] }
 0x3b9   :  { %v6404_v60 = vpop.permute.xlu0 %2163 }
 0x3ba   :  { %2609 = vrot.lane.b32.xlu1 %v2409_v63, %s4775_s23  ;;  %2181 = vrot.lane.b32.xlu0 %v6388_v27, %s4772_s26  ;;  %8074 = vst [vmem:[#allocation136_spill] sm:$0xff] %v6402_v30 }
 0x3bb   :  { %v2044_v3 = vpop.permute.xlu1 %2043 }
 0x3bc   :  { %v6411_v16 = vmul.f32 %v2044_v3, %v8076_v40 }
 0x3bd   :  { %v6421_v62 = vpop.permute.xlu0 %2165 }
 0x3be   :  { %2185 = vrot.lane.b32.xlu0 %v6395_v2, %s4772_s26  ;;  %8077 = vst [vmem:[#allocation138_spill] sm:$0xff] %v6411_v16 }
 0x3bf   :  { %v6399_v39 = vpop.permute.xlu1 %2307 }
 0x3c1   :  { %v6427_v48 = vpop.permute.xlu0 %2169 }
 0x3c2   :  { %2199 = vrot.lane.b32.xlu0 %v6402_v30, %s4772_s26 }
 0x3c3   :  { %v6408_v63 = vpop.permute.xlu1 %2309 }
 0x3c4   :  { %8075 = vst [vmem:[#allocation137_spill] sm:$0xff] %v6408_v63 }
 0x3c6   :  { %2203 = vrot.lane.b32.xlu0 %v6411_v16, %s4772_s26  ;;  %v8085_v16 = vld [vmem:[#allocation50_spill] sm:$0xff] }
 0x3c7   :  { %v6415_v5 = vpop.permute.xlu1 %2313 }
 0x3c8   :  { %8078 = vst [vmem:[#allocation139_spill] sm:$0xff] %v6415_v5  ;;  %v6431_v40 = vpop.permute.xlu0 %2147  ;;  %v8099_v5 = vld [vmem:[#allocation70_spill] sm:$0xff] }
 0x3ca   :  { %2205 = vrot.lane.b32.xlu0 %v6419_v41, %s4772_s26 }
 0x3cb   :  { %v6425_v32 = vpop.permute.xlu1 %2327 }
 0x3cc   :  { %8080 = vst [vmem:[#allocation141_spill] sm:$0xff] %v6425_v32  ;;  %v6435_v49 = vpop.permute.xlu0 %2149 }
 0x3cf   :  { %v6429_v3 = vpop.permute.xlu1 %2331 }
 0x3d0   :  { %8081 = vst [vmem:[#allocation142_spill] sm:$0xff] %v6429_v3  ;;  %v6445_v29 = vpop.permute.xlu0 %2153 }
 0x3d3   :  { %v6433_v19 = vpop.permute.xlu1 %2333 }
 0x3d4   :  { %8082 = vst [vmem:[#allocation143_spill] sm:$0xff] %v6433_v19  ;;  %v6451_v19 = vmul.f32 %v6285_v13, %v7959_v54  ;;  %v8092_v54 = vld [vmem:[#allocation28_spill] sm:$0xff] }
 0x3d5   :  { %v417_v32 = vmul.f32 0.999995, %v8092_v54  ;;  %v2727_v54 = vld [vmem:[%s7585_s2 + $0x30] sm:$0xff] }
 0x3d6   :  { %8087 = vst [vmem:[#allocation146_spill] sm:$0xff] %v6451_v19 }
 0x3d7   :  { %v2024_v56 = vpop.permute.xlu1 %2023 }
 0x3d8   :  { %v6438_v53 = vmul.f32 %v2024_v56, %v8083_v35  ;;  %v6457_v35 = vpop.permute.xlu0 %2167 }
 0x3da   :  { %8084 = vst [vmem:[#allocation144_spill] sm:$0xff] %v6438_v53  ;;  %2183 = vrot.lane.b32.xlu0 %v6438_v53, %s4772_s26 }
 0x3db   :  { %v2028_v41 = vpop.permute.xlu1 %2027 }
 0x3dc   :  { %v6443_v52 = vmul.f32 %v2028_v41, %v8085_v16 }
 0x3de   :  { %8086 = vst [vmem:[#allocation145_spill] sm:$0xff] %v6443_v52  ;;  %2187 = vrot.lane.b32.xlu0 %v6443_v52, %s4772_s26  ;;  %v6466_v52 = vpop.permute.xlu0 %2171 }
 0x3df   :  { %v2048_v3 = vpop.permute.xlu1 %2047 }
 0x3e0   :  { %v6460_v41 = vmul.f32 %v2048_v3, %v7973_v46  ;;  %v2728_v3 = vld [vmem:[%s7585_s2 + $0x38] sm:$0xff] }
 0x3e1   :  { %4535 = vmatprep.subr.mxu1 %v2728_v3 }
 0x3e2   :  { %2189 = vrot.lane.b32.xlu0 %v6451_v19, %s4772_s26  ;;  %8089 = vst [vmem:[#allocation148_spill] sm:$0xff] %v6460_v41  ;;  %v6471_v19 = vpop.permute.xlu0 %2173  ;;  %4536 = vmatpush3.msra.mxu1 %v2728_v3  ;;  %v2725_v3 = vld [vmem:[%s7585_s2 + $0x20] sm:$0xff] }
 0x3e3   :  { %v6455_v56 = vpop.permute.xlu1 %2311  ;;  %4537 = vmatprep.subr.mxu1 %v2727_v54 }
 0x3e4   :  { %8088 = vst [vmem:[#allocation147_spill] sm:$0xff] %v6455_v56  ;;  %4538 = vmatpush3.msra.mxu1 %v2727_v54  ;;  %v2724_v54 = vld [vmem:[%s7585_s2 + $0x18] sm:$0xff] }
 0x3e6   :  { %2207 = vrot.lane.b32.xlu0 %v6460_v41, %s4772_s26  ;;  %v8095_v41 = vld [vmem:[#allocation26_spill] sm:$0xff] }
 0x3e7   :  { %v6464_v16 = vpop.permute.xlu1 %2315 }
 0x3e8   :  { %8090 = vst [vmem:[#allocation149_spill] sm:$0xff] %v6464_v16  ;;  %v449_v16 = vmax.f32 %v417_v32, 0.0 }
 0x3eb   :  { %v6468_v53 = vpop.permute.xlu1 %2317 }
 0x3ec   :  { %8091 = vst [vmem:[#allocation150_spill] sm:$0xff] %v6468_v53  ;;  %v418_v53 = vmul.f32 0.999995, %v8095_v41  ;;  %v6484_v30 = vpop.permute.xlu0 %2151  ;;  %v8097_v41 = vld [vmem:[#allocation32_spill] sm:$0xff] }
 0x3ed   :  { %v419_v32 = vmul.f32 0.999995, %v8097_v41 }
 0x3ef   :  { %v2032_v13 = vpop.permute.xlu1 %2031  ;;  %v451_v41 = vmax.f32 %v419_v32, 0.0 }
 0x3f0   :  { %v6474_v56 = vmul.f32 %v2032_v13, %v7960_v8  ;;  %v2726_v8 = vld [vmem:[%s7585_s2 + $0x28] sm:$0xff] }
 0x3f1   :  { %4539 = vmatprep.subr.mxu1 %v2726_v8 }
 0x3f2   :  { %8093 = vst [vmem:[#allocation28_spill] sm:$0xff] %v6474_v56  ;;  %2191 = vrot.lane.b32.xlu0 %v6474_v56, %s4772_s26  ;;  %4540 = vmatpush3.msra.mxu1 %v2726_v8  ;;  %v6499_v56 = vpop.permute.xlu0 %2155  ;;  %v2369_v8 = vmul.f32 %v6198_v47, %v8099_v5  ;;  %v2722_v47 = vld [vmem:[%s7585_s2 + $0x8] sm:$0xff] }
 0x3f3   :  { %v6481_v46 = vpop.permute.xlu1 %2335  ;;  %4541 = vmatprep.subr.mxu1 %v2725_v3 }
 0x3f4   :  { %8094 = vst [vmem:[#allocation151_spill] sm:$0xff] %v6481_v46  ;;  %v450_v46 = vmax.f32 %v418_v53, 0.0  ;;  %4542 = vmatpush3.msra.mxu1 %v2725_v3  ;;  %v8098_v53 = vld [vmem:[#allocation30_spill] sm:$0xff]  ;;  %v2250_v3 = vadd.f32 %v6404_v60, %v6172_v18  ;;  %v2721_v18 = vld [vmem:[%s7585_s2] sm:$0xff]  ;;  %v2251_v60 = vadd.f32 %v6421_v62, %v6181_v0  ;;  %v8104_v62 = vld [vmem:[#allocation39_spill] sm:$0xff] }
 0x3f5   :  { %4543 = vmatprep.subr.mxu1 %v2724_v54 }
 0x3f6   :  { %2489 = vrot.lane.b32.xlu0 %v449_v16, %s4773_s3  ;;  %4544 = vmatpush3.msra.mxu1 %v2724_v54  ;;  %v6521_v27 = vpop.permute.xlu0 %2157 }
 0x3f7   :  { %v6490_v13 = vpop.permute.xlu1 %2319 }
 0x3f8   :  { %8096 = vst [vmem:[#allocation26_spill] sm:$0xff] %v6490_v13  ;;  %v420_v13 = vmul.f32 0.999995, %v8098_v53 }
 0x3fa   :  { %2491 = vrot.lane.b32.xlu0 %v450_v46, %s4773_s3  ;;  %v2723_v46 = vld [vmem:[%s7585_s2 + $0x10] sm:$0xff]  ;;  %v452_v5 = vmax.f32 %v420_v13, 0.0  ;;  %v8102_v13 = vld [vmem:[#allocation33_spill] sm:$0xff]  ;;  %s4776_s2 = smov [#allocation2]  }
 0x3fb   :  { %v2146_v16 = vpop.permute.xlu1 %2145  ;;  %4545 = vmatprep.subr.mxu1 %v2723_v46  ;;  %s4283_s14 = sshll.u32 %s4776_s2, 4  ;;  %s4284_s14 = int_to_ptr.vmem [resolvable:$true] %s4283_s14 }
 0x3fc   :  { %v2241_v2 = vadd.f32 %v2146_v16, %v6304_v43  ;;  %4546 = vmatpush3.msra.mxu1 %v2723_v46  ;;  %v8100_v43 = vld [vmem:[#allocation35_spill] sm:$0xff]  ;;  %v8101_v16 = vld [vmem:[#allocation81_spill] sm:$0xff]  ;;  %v2253_v46 = vadd.f32 %v6427_v48, %v6190_v59  ;;  %v8106_v48 = vld [vmem:[#allocation36_spill] sm:$0xff]  ;;  %s4750_s15 = scalar_lea.vmem %s4284_s14, 512  ;;  %p4755_p1 = scmp.lt.s32.totalorder %s4284_s14, %s4284_s14 }
 0x3fd   :  { %v421_v32 = vmul.f32 0.999995, %v8100_v43  ;;  %v2378_v53 = vmul.f32 %v6178_v10, %v8101_v16  ;;  %4547 = vmatprep.subr.mxu1 %v2722_v47  ;;  %v422_v10 = vmul.f32 0.999995, %v8102_v13  ;;  %v424_v59 = vmul.f32 0.999995, %v8106_v48  ;;  %p4751_p0 = scmp.ne.s32.totalorder %s4284_s14, %s4750_s15  ;;  %p4756_p2 = scmp.lt.s32.totalorder %s4750_s15, %s4750_s15 }
 0x3fe   :  { %v2401_v63 = vadd.f32 %v2369_v8, %v2241_v2  ;;  %2493 = vrot.lane.b32.xlu0 %v451_v41, %s4773_s3  ;;  %4548 = vmatpush3.msra.mxu1 %v2722_v47  ;;  %v8103_v41 = vld [vmem:[#allocation86_spill] sm:$0xff]  ;;  %v423_v47 = vmul.f32 0.999995, %v8104_v62 }
 0x3ff   :  { %v2410_v2 = vadd.f32 %v2378_v53, %v2250_v3  ;;  %4549 = vmatprep.subr.mxu1 %v2721_v18  ;;  %v453_v54 = vmax.f32 %v421_v32, 0.0  ;;  %v6536_v3 = vpop.permute.xlu0 %2175  ;;  %v454_v0 = vmax.f32 %v422_v10, 0.0  ;;  %v456_v13 = vmax.f32 %v424_v59, 0.0  ;;  %v8109_v10 = vld [vmem:[#allocation74_spill] sm:$0xff]  ;;  %v8115_v59 = vld [vmem:[#allocation88_spill] sm:$0xff]  ;;  %p4757_p3 = por %p4756_p2, %p4755_p1 }
 0x400   :  { %2593 = vrot.lane.b32.xlu1 %v2401_v63, %s4775_s23  ;;  %4550 = vmatpush3.msra.mxu1 %v2721_v18  ;;  %v2379_v63 = vmul.f32 %v6187_v50, %v8103_v41  ;;  %v2242_v50 = vadd.f32 %v6431_v40, %v6203_v15  ;;  %v455_v53 = vmax.f32 %v423_v47, 0.0  ;;  %v8107_v18 = vld [vmem:[#allocation69_spill] sm:$0xff]  ;;  %v8108_v15 = vld [vmem:[#allocation43_spill] sm:$0xff]  ;;  %v8114_v48 = vld [vmem:[#allocation46_spill] sm:$0xff] }
 0x401   :  { %v425_v40 = vmul.f32 0.999995, %v8108_v15  ;;  %p4758_p4 = pnand %p4757_p3, %p4751_p0 }
 0x402   :  { %2495 = vrot.lane.b32.xlu0 %v452_v5, %s4773_s3  ;;  %v2411_v8 = vadd.f32 %v2379_v63, %v2251_v60  ;;  %v8105_v5 = vld [vmem:[#allocation89_spill] sm:$0xff] }
 0x403   :  { %v2381_v43 = vmul.f32 %v6196_v36, %v8105_v5  ;;  %v2243_v36 = vadd.f32 %v6435_v49, %v6210_v11  ;;  %v457_v11 = vmax.f32 %v425_v40, 0.0 }
 0x404   :  { %2611 = vrot.lane.b32.xlu1 %v2410_v2, %s4775_s23  ;;  %v2370_v2 = vmul.f32 %v6223_v57, %v8107_v18  ;;  %v2245_v57 = vadd.f32 %v6445_v29, %v6217_v23  ;;  %v8112_v23 = vld [vmem:[#allocation48_spill] sm:$0xff] }
 0x405   :  { %v2413_v32 = vadd.f32 %v2381_v43, %v2253_v46  ;;  %v8111_v46 = vld [vmem:[#allocation79_spill] sm:$0xff]  ;;  %v427_v29 = vmul.f32 0.999995, %v8112_v23  ;;  %v8113_v43 = vld [vmem:[#allocation84_spill] sm:$0xff] }
 0x406   :  { %2497 = vrot.lane.b32.xlu0 %v453_v54, %s4773_s3  ;;  %v2402_v60 = vadd.f32 %v2370_v2, %v2242_v50  ;;  %v2371_v54 = vmul.f32 %v6232_v9, %v8109_v10  ;;  %v2252_v9 = vadd.f32 %v6457_v35, %v6226_v25  ;;  %v428_v25 = vmul.f32 0.999995, %v8114_v48  ;;  %v8118_v10 = vld [vmem:[#allocation49_spill] sm:$0xff] }
 0x407   :  { %v459_v35 = vmax.f32 %v427_v29, 0.0  ;;  %v2256_v29 = vadd.f32 %v6536_v3, %v6294_v55  ;;  %v8127_v3 = vld [vmem:[#allocation87_spill] sm:$0xff] }
 0x408   :  { %2613 = vrot.lane.b32.xlu1 %v2411_v8, %s4775_s23  ;;  %v6545_v16 = vpop.permute.xlu0 %2159  ;;  %v2403_v63 = vadd.f32 %v2371_v54, %v2243_v36  ;;  %v8110_v8 = vld [vmem:[#allocation41_spill] sm:$0xff]  ;;  %v8117_v36 = vld [vmem:[#allocation91_spill] sm:$0xff]  ;;  %v430_v54 = vmul.f32 0.999995, %v8118_v10 }
 0x409   :  { %v426_v49 = vmul.f32 0.999995, %v8110_v8 }
 0x40a   :  { %2499 = vrot.lane.b32.xlu0 %v454_v0, %s4773_s3  ;;  %v2373_v0 = vmul.f32 %v6241_v21, %v8111_v46  ;;  %v2254_v21 = vadd.f32 %v6466_v52, %v6235_v26  ;;  %v8116_v26 = vld [vmem:[#allocation52_spill] sm:$0xff]  ;;  %v462_v8 = vmax.f32 %v430_v54, 0.0 }
 0x40b   :  { %v458_v5 = vmax.f32 %v426_v49, 0.0  ;;  %v429_v52 = vmul.f32 0.999995, %v8116_v26  ;;  %v8120_v49 = vld [vmem:[#allocation58_spill] sm:$0xff] }
 0x40c   :  { %2617 = vrot.lane.b32.xlu1 %v2413_v32, %s4775_s23  ;;  %v6558_v41 = vpop.permute.xlu0 %2193  ;;  %v2405_v62 = vadd.f32 %v2373_v0, %v2245_v57  ;;  %v2380_v32 = vmul.f32 %v6250_v38, %v8113_v43  ;;  %v2255_v38 = vadd.f32 %v6471_v19, %v6244_v58  ;;  %v8119_v19 = vld [vmem:[#allocation71_spill] sm:$0xff] }
 0x40d   :  { %v461_v58 = vmax.f32 %v429_v52, 0.0 }
 0x40e   :  { %2501 = vrot.lane.b32.xlu0 %v455_v53, %s4773_s3  ;;  %v2412_v50 = vadd.f32 %v2380_v32, %v2252_v9  ;;  %v2382_v53 = vmul.f32 %v6254_v44, %v8115_v59  ;;  %v2244_v44 = vadd.f32 %v6484_v30, %v6265_v34  ;;  %v431_v34 = vmul.f32 0.999995, %v8120_v49  ;;  %v8121_v30 = vld [vmem:[#allocation78_spill] sm:$0xff]  ;;  %v8123_v9 = vld [vmem:[#allocation83_spill] sm:$0xff]  ;;  %v8135_v49 = vld [vmem:[#allocation85_spill] sm:$0xff] }
 0x40f   :  { %v8124_v32 = vld [vmem:[#allocation62_spill] sm:$0xff]  ;;  %v2376_v59 = vmul.f32 %v6327_v7, %v8127_v3  ;;  %v8148_v3 = vld [vmem:[#allocation96_spill] sm:$0xff] }
 0x410   :  { %2595 = vrot.lane.b32.xlu1 %v2402_v60, %s4775_s23  ;;  %v6570_v47 = vpop.permute.xlu0 %2177  ;;  %v2414_v2 = vadd.f32 %v2382_v53, %v2254_v21  ;;  %v460_v60 = vmax.f32 %v428_v25, 0.0  ;;  %v8126_v25 = vld [vmem:[#allocation59_spill] sm:$0xff] }
 0x411   :  { %v2257_v7 = vadd.f32 %v6570_v47, %v6339_v42 }
 0x412   :  { %2503 = vrot.lane.b32.xlu0 %v456_v13, %s4773_s3  ;;  %v2383_v13 = vmul.f32 %v6258_v1, %v8117_v36  ;;  %v2246_v1 = vadd.f32 %v6499_v56, %v6274_v17  ;;  %v463_v56 = vmax.f32 %v431_v34, 0.0  ;;  %v8130_v36 = vld [vmem:[#allocation64_spill] sm:$0xff] }
 0x414   :  { %2597 = vrot.lane.b32.xlu1 %v2403_v63, %s4775_s23  ;;  %v6583_v18 = vpop.permute.xlu0 %2195  ;;  %v2415_v15 = vadd.f32 %v2383_v13, %v2255_v38  ;;  %v2372_v63 = vmul.f32 %v6291_v37, %v8119_v19  ;;  %v2247_v37 = vadd.f32 %v6521_v27, %v6283_v14  ;;  %v433_v14 = vmul.f32 0.999995, %v8124_v32  ;;  %v8125_v27 = vld [vmem:[#allocation90_spill] sm:$0xff] }
 0x415   :  { %v8128_v38 = vld [vmem:[#allocation66_spill] sm:$0xff]  ;;  %v436_v13 = vmul.f32 0.999995, %v8130_v36  ;;  %v8153_v36 = vld [vmem:[#allocation103_spill] sm:$0xff] }
 0x416   :  { %2505 = vrot.lane.b32.xlu0 %v457_v11, %s4773_s3  ;;  %v2404_v57 = vadd.f32 %v2372_v63, %v2244_v44  ;;  %v2374_v11 = vmul.f32 %v6306_v61, %v8121_v30  ;;  %v465_v55 = vmax.f32 %v433_v14, 0.0  ;;  %v8137_v30 = vld [vmem:[#allocation137_spill] sm:$0xff]  ;;  %v8144_v14 = vld [vmem:[#allocation144_spill] sm:$0xff] }
 0x417   :  { %v468_v54 = vmax.f32 %v436_v13, 0.0  ;;  %v8154_v13 = vld [vmem:[#allocation26_spill] sm:$0xff] }
 0x418   :  { %2601 = vrot.lane.b32.xlu1 %v2405_v62, %s4775_s23  ;;  %v2198_v40 = vpop.permute.xlu0 %2197  ;;  %v2406_v0 = vadd.f32 %v2374_v11, %v2246_v1  ;;  %v8122_v62 = vld [vmem:[#allocation55_spill] sm:$0xff]  ;;  %v8134_v1 = vld [vmem:[#allocation92_spill] sm:$0xff] }
 0x419   :  { %v432_v17 = vmul.f32 0.999995, %v8122_v62  ;;  %v2267_v19 = vadd.f32 %v2198_v40, %v6355_v31  ;;  %v8136_v40 = vld [vmem:[#allocation95_spill] sm:$0xff] }
 0x41a   :  { %2507 = vrot.lane.b32.xlu0 %v458_v5, %s4773_s3  ;;  %v2375_v5 = vmul.f32 %v6312_v4, %v8123_v9  ;;  %v2248_v4 = vadd.f32 %v6545_v16, %v6321_v22  ;;  %v435_v22 = vmul.f32 0.999995, %v8128_v38  ;;  %v8129_v16 = vld [vmem:[#allocation101_spill] sm:$0xff]  ;;  %v2387_v11 = vmul.f32 %v8137_v30, %v8136_v40  ;;  %v8141_v9 = vld [vmem:[#allocation136_spill] sm:$0xff] }
 0x41b   :  { %v464_v43 = vmax.f32 %v432_v17, 0.0  ;;  %v8139_v17 = vld [vmem:[#allocation97_spill] sm:$0xff] }
 0x41c   :  { %2615 = vrot.lane.b32.xlu1 %v2412_v50, %s4775_s23  ;;  %v6606_v46 = vpop.permute.xlu0 %2201  ;;  %v2407_v61 = vadd.f32 %v2375_v5, %v2247_v37  ;;  %v2384_v50 = vmul.f32 %v6316_v28, %v8125_v27  ;;  %v2408_v53 = vadd.f32 %v2376_v59, %v2248_v4  ;;  %v2265_v28 = vadd.f32 %v6558_v41, %v6330_v45  ;;  %v8131_v41 = vld [vmem:[#allocation93_spill] sm:$0xff] }
 0x41d   :  { %v467_v45 = vmax.f32 %v435_v22, 0.0  ;;  %v8149_v59 = vld [vmem:[#allocation149_spill] sm:$0xff]  ;;  %v8151_v22 = vld [vmem:[#allocation99_spill] sm:$0xff] }
 0x41e   :  { %2509 = vrot.lane.b32.xlu0 %v459_v35, %s4773_s3  ;;  %v2416_v21 = vadd.f32 %v2384_v50, %v2256_v29  ;;  %v434_v35 = vmul.f32 0.999995, %v8126_v25  ;;  %v8145_v50 = vld [vmem:[#allocation94_spill] sm:$0xff]  ;;  %v8147_v25 = vld [vmem:[#allocation145_spill] sm:$0xff] }
 0x420   :  { %2619 = vrot.lane.b32.xlu1 %v2414_v2, %s4775_s23  ;;  %v466_v2 = vmax.f32 %v434_v35, 0.0 }
 0x422   :  { %2511 = vrot.lane.b32.xlu0 %v460_v60, %s4773_s3  ;;  %v2393_v60 = vmul.f32 %v6336_v51, %v8129_v16  ;;  %v2266_v51 = vadd.f32 %v6583_v18, %v6346_v33  ;;  %v8152_v16 = vld [vmem:[#allocation150_spill] sm:$0xff] }
 0x424   :  { %2621 = vrot.lane.b32.xlu1 %v2415_v15, %s4775_s23  ;;  %v2425_v52 = vadd.f32 %v2393_v60, %v2265_v28  ;;  %v2385_v15 = vmul.f32 %v6352_v6, %v8131_v41  ;;  %v8133_v6 = vld [vmem:[#allocation102_spill] sm:$0xff]  ;;  %v2391_v60 = vmul.f32 %v8152_v16, %v8151_v22  ;;  %v8155_v41 = vld [vmem:[#allocation28_spill] sm:$0xff] }
 0x425   :  { %v2395_v63 = vmul.f32 %v6370_v12, %v8133_v6 }
 0x426   :  { %2513 = vrot.lane.b32.xlu0 %v461_v58, %s4773_s3  ;;  %v2417_v44 = vadd.f32 %v2385_v15, %v2257_v7  ;;  %v8132_v58 = vld [vmem:[#allocation98_spill] sm:$0xff] }
 0x427   :  { %v2394_v42 = vmul.f32 %v6361_v24, %v8132_v58  ;;  %v2427_v33 = vadd.f32 %v2395_v63, %v2267_v19  ;;  %v8158_v58 = vld [vmem:[#allocation133_spill] sm:$0xff]  ;;  %v8159_v19 = vld [vmem:[#allocation138_spill] sm:$0xff]  ;;  %v8160_v63 = vld [vmem:[#allocation104_spill] sm:$0xff] }
 0x428   :  { %2599 = vrot.lane.b32.xlu1 %v2404_v57, %s4775_s23  ;;  %v2180_v23 = vpop.permute.xlu0 %2179 }
 0x429   :  { %v2426_v47 = vadd.f32 %v2394_v42, %v2266_v51  ;;  %v2258_v18 = vadd.f32 %v2180_v23, %v6379_v20  ;;  %v8140_v20 = vld [vmem:[#allocation139_spill] sm:$0xff]  ;;  %v8142_v23 = vld [vmem:[#allocation100_spill] sm:$0xff] }
 0x42a   :  { %2515 = vrot.lane.b32.xlu0 %v462_v8, %s4773_s3  ;;  %v2386_v8 = vmul.f32 %v6399_v39, %v8134_v1 }
 0x42c   :  { %2603 = vrot.lane.b32.xlu1 %v2406_v0, %s4775_s23  ;;  %v2182_v48 = vpop.permute.xlu0 %2181  ;;  %v2418_v24 = vadd.f32 %v2386_v8, %v2258_v18  ;;  %v8138_v0 = vld [vmem:[#allocation135_spill] sm:$0xff]  ;;  %v2610_v1 = vpop.permute.xlu1 %2609 }
 0x42d   :  { %v2259_v34 = vadd.f32 %v2182_v48, %v8135_v49 }
 0x42e   :  { %2517 = vrot.lane.b32.xlu0 %v463_v56, %s4773_s3  ;;  %v2389_v56 = vmul.f32 %v8140_v20, %v8139_v17  ;;  %v8168_v17 = vld [vmem:[#allocation151_spill] sm:$0xff] }
 0x42f   :  { %v2419_v12 = vadd.f32 %v2387_v11, %v2259_v34  ;;  %v8163_v34 = vld [vmem:[#allocation107_spill] sm:$0xff] }
 0x430   :  { %2605 = vrot.lane.b32.xlu1 %v2407_v61, %s4775_s23  ;;  %v2186_v26 = vpop.permute.xlu0 %2185  ;;  %v8143_v61 = vld [vmem:[#allocation141_spill] sm:$0xff] }
 0x431   :  { %v2261_v37 = vadd.f32 %v2186_v26, %v8138_v0  ;;  %v2396_v29 = vmul.f32 %v8143_v61, %v8142_v23 }
 0x432   :  { %2519 = vrot.lane.b32.xlu0 %v464_v43, %s4773_s3 }
 0x433   :  { %v2421_v39 = vadd.f32 %v2389_v56, %v2261_v37  ;;  %v8166_v37 = vld [vmem:[#allocation11_spill] sm:$0xff] }
 0x434   :  { %2623 = vrot.lane.b32.xlu1 %v2416_v21, %s4775_s23  ;;  %v2200_v10 = vpop.permute.xlu0 %2199  ;;  %v8146_v21 = vld [vmem:[#allocation147_spill] sm:$0xff] }
 0x435   :  { %v2268_v5 = vadd.f32 %v2200_v10, %v8141_v9  ;;  %v2388_v4 = vmul.f32 %v8146_v21, %v8145_v50 }
 0x436   :  { %2521 = vrot.lane.b32.xlu0 %v465_v55, %s4773_s3 }
 0x437   :  { %v2428_v32 = vadd.f32 %v2396_v29, %v2268_v5  ;;  %v8169_v29 = vld [vmem:[#allocation8_spill] sm:$0xff] }
 0x438   :  { %2607 = vrot.lane.b32.xlu1 %v2408_v53, %s4775_s23  ;;  %v2204_v57 = vpop.permute.xlu0 %2203  ;;  %v2390_v53 = vmul.f32 %v8149_v59, %v8148_v3 }
 0x439   :  { %v2270_v6 = vadd.f32 %v2204_v57, %v8159_v19 }
 0x43a   :  { %2523 = vrot.lane.b32.xlu0 %v466_v2, %s4773_s3  ;;  %v8150_v2 = vld [vmem:[#allocation146_spill] sm:$0xff] }
 0x43c   :  { %2641 = vrot.lane.b32.xlu1 %v2425_v52, %s4775_s23  ;;  %v2206_v31 = vpop.permute.xlu0 %2205 }
 0x43e   :  { %2525 = vrot.lane.b32.xlu0 %v467_v45, %s4773_s3  ;;  %v2392_v45 = vmul.f32 %v8154_v13, %v8153_v36  ;;  %v8174_v36 = vld [vmem:[#allocation20_spill] sm:$0xff] }
 0x440   :  { %2625 = vrot.lane.b32.xlu1 %v2417_v44, %s4775_s23  ;;  %v8156_v44 = vld [vmem:[#allocation22_spill] sm:$0xff] }
 0x441   :  { %v2269_v51 = vadd.f32 %v6606_v46, %v8156_v44  ;;  %v8164_v46 = vld [vmem:[#allocation143_spill] sm:$0xff]  ;;  %v8175_v44 = vld [vmem:[#allocation18_spill] sm:$0xff] }
 0x442   :  { %2527 = vrot.lane.b32.xlu0 %v468_v54, %s4773_s3  ;;  %v8157_v54 = vld [vmem:[#allocation105_spill] sm:$0xff]  ;;  %v2399_v40 = vmul.f32 %v8164_v46, %v8163_v34 }
 0x443   :  { %v2397_v42 = vmul.f32 %v8158_v58, %v8157_v54 }
 0x444   :  { %2643 = vrot.lane.b32.xlu1 %v2426_v47, %s4775_s23 }
 0x445   :  { %v2429_v47 = vadd.f32 %v2397_v42, %v2269_v51  ;;  %v8177_v42 = vld [vmem:[#allocation131_spill] sm:$0xff] }
 0x448   :  { %2645 = vrot.lane.b32.xlu1 %v2427_v33, %s4775_s23  ;;  %v8161_v33 = vld [vmem:[#allocation142_spill] sm:$0xff] }
 0x449   :  { %v2398_v18 = vmul.f32 %v8161_v33, %v8160_v63 }
 0x44b   :  { %v2430_v8 = vadd.f32 %v2398_v18, %v2270_v6  ;;  %v8178_v6 = vld [vmem:[#allocation132_spill] sm:$0xff]  ;;  %v8179_v18 = vld [vmem:[#allocation134_spill] sm:$0xff] }
 0x44c   :  { %2627 = vrot.lane.b32.xlu1 %v2418_v24, %s4775_s23  ;;  %v2184_v62 = vpop.permute.xlu0 %2183  ;;  %v8162_v24 = vld [vmem:[#allocation140_spill] sm:$0xff] }
 0x44d   :  { %v2260_v27 = vadd.f32 %v2184_v62, %v8144_v14  ;;  %v2271_v49 = vadd.f32 %v2206_v31, %v8162_v24  ;;  %v8167_v62 = vld [vmem:[#allocation106_spill] sm:$0xff] }
 0x44e   :  { %v2400_v20 = vmul.f32 %v8168_v17, %v8167_v62 }
 0x44f   :  { %v2420_v48 = vadd.f32 %v2388_v4, %v2260_v27  ;;  %v2431_v11 = vadd.f32 %v2399_v40, %v2271_v49  ;;  %v8170_v27 = vld [vmem:[#allocation14_spill] sm:$0xff] }
 0x450   :  { %2629 = vrot.lane.b32.xlu1 %v2419_v12, %s4775_s23  ;;  %v2188_v43 = vpop.permute.xlu0 %2187  ;;  %v8165_v12 = vld [vmem:[#allocation148_spill] sm:$0xff] }
 0x451   :  { %v2262_v35 = vadd.f32 %v2188_v43, %v8147_v25 }
 0x453   :  { %v2422_v28 = vadd.f32 %v2390_v53, %v2262_v35  ;;  %v8171_v53 = vld [vmem:[#allocation12_spill] sm:$0xff] }
 0x454   :  { %2633 = vrot.lane.b32.xlu1 %v2421_v39, %s4775_s23  ;;  %v2190_v55 = vpop.permute.xlu0 %2189 }
 0x455   :  { %v2263_v38 = vadd.f32 %v2190_v55, %v8150_v2  ;;  %v8172_v2 = vld [vmem:[#allocation17_spill] sm:$0xff] }
 0x457   :  { %v2423_v52 = vadd.f32 %v2391_v60, %v2263_v38  ;;  %v8173_v60 = vld [vmem:[#allocation15_spill] sm:$0xff] }
 0x458   :  { %2647 = vrot.lane.b32.xlu1 %v2428_v32, %s4775_s23  ;;  %v2208_v26 = vpop.permute.xlu0 %2207 }
 0x459   :  { %v2272_v0 = vadd.f32 %v2208_v26, %v8165_v12 }
 0x45b   :  { %v2432_v56 = vadd.f32 %v2400_v20, %v2272_v0 }
 0x45c   :  { %2631 = vrot.lane.b32.xlu1 %v2420_v48, %s4775_s23 }
 0x460   :  { %2635 = vrot.lane.b32.xlu1 %v2422_v28, %s4775_s23 }
 0x464   :  { %v2192_v7 = vpop.permute.xlu0 %2191  ;;  %2637 = vrot.lane.b32.xlu1 %v2423_v52, %s4775_s23 }
 0x465   :  { %v2264_v15 = vadd.f32 %v2192_v7, %v8155_v41 }
 0x467   :  { %v2424_v10 = vadd.f32 %v2392_v45, %v2264_v15 }
 0x468   :  { %v2490_v39 = vpop.permute.xlu0 %2489 }
 0x469   :  { %2639 = vrot.lane.b32.xlu1 %v2424_v10, %s4775_s23  ;;  %v8176_v10 = vld [vmem:[#allocation24_spill] sm:$0xff] }
 0x46a   :  { %v2697_v54 = vsel %vm629_vm1, %v8176_v10, %v2610_v1 }
 0x46c   :  { %v2492_v23 = vpop.permute.xlu0 %2491 }
 0x46d   :  { %2649 = vrot.lane.b32.xlu1 %v2429_v47, %s4775_s23 }
 0x470   :  { %v2494_v32 = vpop.permute.xlu0 %2493 }
 0x471   :  { %2651 = vrot.lane.b32.xlu1 %v2430_v8, %s4775_s23 }
 0x472   :  { %v2594_v30 = vpop.permute.xlu1 %2593 }
 0x473   :  { %v2689_v57 = vsel %vm629_vm1, %v8166_v37, %v2594_v30 }
 0x474   :  { %4551 = vmatprep.mubr.msk.f32.mxu1 %vm1514_vm10, %v2689_v57  ;;  %v2496_v4 = vpop.permute.xlu0 %2495 }
 0x475   :  { %2653 = vrot.lane.b32.xlu1 %v2431_v11, %s4775_s23 }
 0x476   :  { %v2612_v31 = vpop.permute.xlu1 %2611 }
 0x477   :  { %v2698_v47 = vsel %vm629_vm1, %v8177_v42, %v2612_v31 }
 0x478   :  { %v2498_v25 = vpop.permute.xlu0 %2497 }
 0x479   :  { %2655 = vrot.lane.b32.xlu1 %v2432_v56, %s4775_s23 }
 0x47a   :  { %v2614_v9 = vpop.permute.xlu1 %2613 }
 0x47b   :  { %v2699_v63 = vsel %vm629_vm1, %v8178_v6, %v2614_v9  ;;  %v8182_v6 = vld [vmem:[#allocation9_spill] sm:$0xff] }
 0x47c   :  { %v2500_v3 = vpop.permute.xlu0 %2499 }
 0x47e   :  { %v2618_v5 = vpop.permute.xlu1 %2617 }
 0x47f   :  { %v2701_v8 = vsel %vm629_vm1, %v2490_v39, %v2618_v5 }
 0x480   :  { %v2502_v22 = vpop.permute.xlu0 %2501 }
 0x482   :  { %v2596_v61 = vpop.permute.xlu1 %2595 }
 0x483   :  { %v2690_v43 = vsel %vm629_vm1, %v8169_v29, %v2596_v61 }
 0x484   :  { %4552 = vmatmul.mubr.msk.f32.vlgmr.msra.gmra.mxu1 %vm1514_vm10, %v2690_v43  ;;  %v2504_v7 = vpop.permute.xlu0 %2503 }
 0x486   :  { %v2598_v14 = vpop.permute.xlu1 %2597 }
 0x487   :  { %v2691_v50 = vsel %vm629_vm1, %v8170_v27, %v2598_v14 }
 0x488   :  { %4554 = vmatprep.mubr.msk.f32.mxu1 %vm1514_vm10, %v2691_v50  ;;  %v2506_v41 = vpop.permute.xlu0 %2505 }
 0x48a   :  { %v2602_v21 = vpop.permute.xlu1 %2601 }
 0x48b   :  { %v2693_v38 = vsel %vm629_vm1, %v8172_v2, %v2602_v21 }
 0x48c   :  { %v2508_v19 = vpop.permute.xlu0 %2507 }
 0x48e   :  { %v2616_v48 = vpop.permute.xlu1 %2615 }
 0x48f   :  { %v2700_v1 = vsel %vm629_vm1, %v8179_v18, %v2616_v48 }
 0x490   :  { %v2510_v24 = vpop.permute.xlu0 %2509 }
 0x492   :  { %v2620_v35 = vpop.permute.xlu1 %2619 }
 0x493   :  { %v2702_v34 = vsel %vm629_vm1, %v2492_v23, %v2620_v35 }
 0x494   :  { %v2512_v30 = vpop.permute.xlu0 %2511 }
 0x496   :  { %v2622_v55 = vpop.permute.xlu1 %2621 }
 0x497   :  { %v2703_v46 = vsel %vm629_vm1, %v2494_v32, %v2622_v55 }
 0x498   :  { %v2514_v57 = vpop.permute.xlu0 %2513 }
 0x49a   :  { %v2600_v59 = vpop.permute.xlu1 %2599 }
 0x49b   :  { %v2692_v28 = vsel %vm629_vm1, %v8171_v53, %v2600_v59 }
 0x49c   :  { %4555 = vmatmul.mubr.msk.f32.gmra.mxu1 %vm1514_vm10, %v2692_v28  ;;  %v2516_v31 = vpop.permute.xlu0 %2515 }
 0x49d   :  { %4557 = vmatprep.mubr.msk.f32.mxu1 %vm1514_vm10, %v2693_v38 }
 0x49e   :  { %v2604_v16 = vpop.permute.xlu1 %2603 }
 0x49f   :  { %v2694_v26 = vsel %vm629_vm1, %v8173_v60, %v2604_v16 }
 0x4a0   :  { %4558 = vmatmul.mubr.msk.f32.gmra.mxu1 %vm1514_vm10, %v2694_v26  ;;  %v2518_v39 = vpop.permute.xlu0 %2517 }
 0x4a2   :  { %v2606_v52 = vpop.permute.xlu1 %2605 }
 0x4a3   :  { %v2695_v13 = vsel %vm629_vm1, %v8174_v36, %v2606_v52 }
 0x4a4   :  { %4560 = vmatprep.mubr.msk.f32.mxu1 %vm1514_vm10, %v2695_v13  ;;  %v2520_v29 = vpop.permute.xlu0 %2519 }
 0x4a6   :  { %v2624_v45 = vpop.permute.xlu1 %2623 }
 0x4a7   :  { %v2704_v11 = vsel %vm629_vm1, %v2496_v4, %v2624_v45 }
 0x4a8   :  { %v2522_v27 = vpop.permute.xlu0 %2521 }
 0x4aa   :  { %v2608_v15 = vpop.permute.xlu1 %2607 }
 0x4ab   :  { %v2696_v51 = vsel %vm629_vm1, %v8175_v44, %v2608_v15  ;;  %v8180_v15 = vld [vmem:[#allocation6_spill] sm:$0xff]  ;;  %v8181_v44 = vld [vmem:[#allocation73_spill] sm:$0xff] }
 0x4ac   :  { %4561 = vmatmul.mubr.msk.f32.gmra.mxu1 %vm1514_vm10, %v2696_v51  ;;  %v2524_v48 = vpop.permute.xlu0 %2523  ;;  %v3147_v51 = vmul.f32 %v8181_v44, %v8180_v15  ;;  %v8208_v44 = vld [vmem:[#allocation31_spill] sm:$0xff] }
 0x4ad   :  { %4563 = vmatprep.mubr.msk.f32.mxu1 %vm1514_vm10, %v2697_v54 }
 0x4ae   :  { %v2642_v58 = vpop.permute.xlu1 %2641 }
 0x4af   :  { %v2713_v4 = vsel %vm629_vm1, %v2514_v57, %v2642_v58 }
 0x4b0   :  { %4564 = vmatmul.mubr.msk.f32.gmra.mxu1 %vm1514_vm10, %v2698_v47  ;;  %v2526_v53 = vpop.permute.xlu0 %2525 }
 0x4b1   :  { %4566 = vmatprep.mubr.msk.f32.mxu1 %vm1514_vm10, %v2699_v63  ;;  %v8183_v63 = vld [vmem:[#allocation75_spill] sm:$0xff] }
 0x4b2   :  { %v2626_v33 = vpop.permute.xlu1 %2625 }
 0x4b3   :  { %v2705_v12 = vsel %vm629_vm1, %v2498_v25, %v2626_v33  ;;  %v3146_v33 = vmul.f32 %v8183_v63, %v8182_v6  ;;  %v8212_v6 = vld [vmem:[#allocation40_spill] sm:$0xff] }
 0x4b4   :  { %4567 = vmatmul.mubr.msk.f32.gmra.mxu1 %vm1514_vm10, %v2700_v1  ;;  %v2528_v16 = vpop.permute.xlu0 %2527  ;;  %v8213_v63 = vld [vmem:[#allocation116_spill] sm:$0xff] }
 0x4b5   :  { %4569 = vmatprep.mubr.msk.f32.mxu1 %vm1514_vm10, %v2701_v8 }
 0x4b6   :  { %v2644_v49 = vpop.permute.xlu1 %2643 }
 0x4b7   :  { %v2714_v35 = vsel %vm629_vm1, %v2516_v31, %v2644_v49  ;;  %v8186_v31 = vld [vmem:[#allocation19_spill] sm:$0xff] }
 0x4b8   :  { %4570 = vmatmul.mubr.msk.f32.gmra.mxu1 %vm1514_vm10, %v2702_v34 }
 0x4b9   :  { %4572 = vmatprep.mubr.msk.f32.mxu1 %vm1514_vm10, %v2703_v46 }
 0x4ba   :  { %v2646_v40 = vpop.permute.xlu1 %2645 }
 0x4bb   :  { %v2715_v55 = vsel %vm629_vm1, %v2518_v39, %v2646_v40 }
 0x4bc   :  { %4573 = vmatmul.mubr.msk.f32.gmra.mxu1 %vm1514_vm10, %v2704_v11 }
 0x4bd   :  { %4575 = vmatprep.mubr.msk.f32.mxu1 %vm1514_vm10, %v2705_v12 }
 0x4be   :  { %v2628_v0 = vpop.permute.xlu1 %2627 }
 0x4bf   :  { %v2706_v37 = vsel %vm629_vm1, %v2500_v3, %v2628_v0 }
 0x4c0   :  { %4576 = vmatmul.mubr.msk.f32.gmra.mxu1 %vm1514_vm10, %v2706_v37 }
 0x4c2   :  { %v2630_v62 = vpop.permute.xlu1 %2629 }
 0x4c3   :  { %v2707_v17 = vsel %vm629_vm1, %v2502_v22, %v2630_v62  ;;  %v8184_v62 = vld [vmem:[#allocation13_spill] sm:$0xff] }
 0x4c4   :  { %4578 = vmatprep.mubr.msk.f32.mxu1 %vm1514_vm10, %v2707_v17  ;;  %v8185_v17 = vld [vmem:[#allocation77_spill] sm:$0xff] }
 0x4c6   :  { %v2634_v20 = vpop.permute.xlu1 %2633 }
 0x4c7   :  { %v2709_v23 = vsel %vm629_vm1, %v2506_v41, %v2634_v20  ;;  %v3148_v20 = vmul.f32 %v8185_v17, %v8184_v62  ;;  %v8220_v17 = vld [vmem:[#allocation53_spill] sm:$0xff] }
 0x4ca   :  { %v2648_v56 = vpop.permute.xlu1 %2647 }
 0x4cb   :  { %v2716_v59 = vsel %vm629_vm1, %v2520_v29, %v2648_v56  ;;  %v8187_v56 = vld [vmem:[#allocation110_spill] sm:$0xff] }
 0x4cc   :  { %v6793_v39 = vmul.f32 %v8187_v56, %v8186_v31  ;;  %v8191_v29 = vld [vmem:[#allocation82_spill] sm:$0xff]  ;;  %v8221_v31 = vld [vmem:[#allocation7_spill] sm:$0xff] }
 0x4cd   :  { %v6869_v56 = vmul.f32 %v8221_v31, %v8220_v17  ;;  %v8233_v17 = vld [vmem:[#allocation119_spill] sm:$0xff] }
 0x4ce   :  { %v2632_v9 = vpop.permute.xlu1 %2631 }
 0x4cf   :  { %v2708_v5 = vsel %vm629_vm1, %v2504_v7, %v2632_v9  ;;  %v8188_v9 = vld [vmem:[#allocation23_spill] sm:$0xff] }
 0x4d0   :  { %4579 = vmatmul.mubr.msk.f32.gmra.mxu1 %vm1514_vm10, %v2708_v5  ;;  %v8189_v5 = vld [vmem:[#allocation118_spill] sm:$0xff] }
 0x4d1   :  { %4581 = vmatprep.mubr.msk.f32.mxu1 %vm1514_vm10, %v2709_v23  ;;  %v6797_v23 = vmul.f32 %v8189_v5, %v8188_v9  ;;  %v8222_v9 = vld [vmem:[#allocation54_spill] sm:$0xff]  ;;  %v8223_v5 = vld [vmem:[#allocation113_spill] sm:$0xff] }
 0x4d2   :  { %v2636_v61 = vpop.permute.xlu1 %2635 }
 0x4d3   :  { %v2710_v43 = vsel %vm629_vm1, %v2508_v19, %v2636_v61  ;;  %v8190_v61 = vld [vmem:[#allocation21_spill] sm:$0xff] }
 0x4d4   :  { %4582 = vmatmul.mubr.msk.f32.gmra.mxu1 %vm1514_vm10, %v2710_v43  ;;  %v6801_v43 = vmul.f32 %v8191_v29, %v8190_v61  ;;  %v6873_v61 = vmul.f32 %v8223_v5, %v8222_v9 }
 0x4d6   :  { %v2638_v32 = vpop.permute.xlu1 %2637 }
 0x4d7   :  { %v2711_v14 = vsel %vm629_vm1, %v2510_v24, %v2638_v32  ;;  %v8192_v32 = vld [vmem:[#allocation10_spill] sm:$0xff] }
 0x4d8   :  { %4584 = vmatprep.mubr.msk.f32.mxu1 %vm1514_vm10, %v2711_v14  ;;  %v8193_v14 = vld [vmem:[#allocation126_spill] sm:$0xff] }
 0x4db   :  { %v2640_v50 = vpop.permute.xlu1 %2639 }
 0x4dc   :  { %v2712_v21 = vsel %vm629_vm1, %v2512_v30, %v2640_v50  ;;  %v8194_v50 = vld [vmem:[#allocation27_spill] sm:$0xff] }
 0x4dd   :  { %4585 = vmatmul.mubr.msk.f32.gmra.mxu1 %vm1514_vm10, %v2712_v21  ;;  %v8195_v21 = vld [vmem:[#allocation80_spill] sm:$0xff] }
 0x4de   :  { %4587 = vmatprep.mubr.msk.f32.mxu1 %vm1514_vm10, %v2713_v4  ;;  %v6807_v4 = vmul.f32 %v8195_v21, %v8194_v50 }
 0x4df   :  { %v2650_v25 = vpop.permute.xlu1 %2649 }
 0x4e0   :  { %v2717_v28 = vsel %vm629_vm1, %v2522_v27, %v2650_v25  ;;  %v3149_v27 = vmul.f32 %v8193_v14, %v8192_v32  ;;  %v8197_v25 = vld [vmem:[#allocation109_spill] sm:$0xff] }
 0x4e1   :  { %4588 = vmatmul.mubr.msk.f32.gmra.mxu1 %vm1514_vm10, %v2714_v35 }
 0x4e2   :  { %4590 = vmatprep.mubr.msk.f32.mxu1 %vm1514_vm10, %v2715_v55  ;;  %v8198_v55 = vld [vmem:[#allocation29_spill] sm:$0xff] }
 0x4e3   :  { %v2652_v3 = vpop.permute.xlu1 %2651 }
 0x4e4   :  { %v2718_v38 = vsel %vm629_vm1, %v2524_v48, %v2652_v3  ;;  %v8196_v48 = vld [vmem:[#allocation25_spill] sm:$0xff]  ;;  %v8199_v3 = vld [vmem:[#allocation76_spill] sm:$0xff] }
 0x4e5   :  { %4591 = vmatmul.mubr.msk.f32.gmra.mxu1 %vm1514_vm10, %v2716_v59  ;;  %v6811_v35 = vmul.f32 %v8197_v25, %v8196_v48  ;;  %v6815_v59 = vmul.f32 %v8199_v3, %v8198_v55  ;;  %v8224_v3 = vld [vmem:[#allocation45_spill] sm:$0xff] }
 0x4e6   :  { %4593 = vmatprep.mubr.msk.f32.mxu1 %vm1514_vm10, %v2717_v28  ;;  %v8200_v28 = vld [vmem:[#allocation16_spill] sm:$0xff] }
 0x4e7   :  { %v2654_v2 = vpop.permute.xlu1 %2653 }
 0x4e8   :  { %v2719_v22 = vsel %vm629_vm1, %v2526_v53, %v2654_v2  ;;  %v8201_v2 = vld [vmem:[#allocation128_spill] sm:$0xff] }
 0x4e9   :  { %4594 = vmatmul.mubr.msk.f32.gmra.mxu1 %vm1514_vm10, %v2718_v38  ;;  %v3151_v38 = vmul.f32 %v8201_v2, %v8200_v28  ;;  %v8225_v28 = vld [vmem:[#allocation120_spill] sm:$0xff] }
 0x4ea   :  { %4596 = vmatprep.mubr.msk.f32.mxu1 %vm1514_vm10, %v2719_v22  ;;  %v8202_v22 = vld [vmem:[#allocation34_spill] sm:$0xff]  ;;  %v6882_v2 = vmul.f32 %v8225_v28, %v8224_v3 }
 0x4eb   :  { %v2656_v60 = vpop.permute.xlu1 %2655 }
 0x4ec   :  { %v2720_v26 = vsel %vm629_vm1, %v2528_v16, %v2656_v60  ;;  %v8203_v16 = vld [vmem:[#allocation108_spill] sm:$0xff] }
 0x4ed   :  { %4597 = vmatmul.mubr.msk.f32.gmra.mxu1 %vm1514_vm10, %v2720_v26  ;;  %v6823_v60 = vmul.f32 %v8203_v16, %v8202_v22  ;;  %v8204_v26 = vld [vmem:[#allocation37_spill] sm:$0xff] }
 0x544   :  { %v4553_v52 = vpop.f32.mrf.mxu1 }
 0x545   :  { %v3051_v7 = vmul.f32 0.999995, %v4553_v52  ;;  %v3217_v36 = vsel %vm854_vm2, %v4553_v52, -inf }
 0x546   :  { %v3218_v13 = vrot.slane %v3217_v36, 4  ;;  %v2891_v45 = vpop.f32.mrf.mxu1 }
 0x547   :  { %v3083_v41 = vmax.f32 %v3051_v7, 0.0  ;;  %v3050_v10 = vmul.f32 0.999995, %v2891_v45  ;;  %v3210_v54 = vsel %vm854_vm2, %v2891_v45, -inf }
 0x548   :  { %v3219_v58 = vmax.f32 %v3217_v36, %v3218_v13  ;;  %v3211_v42 = vrot.slane %v3210_v54, 4  ;;  %v8206_v36 = vld [vmem:[#allocation38_spill] sm:$0xff] }
 0x549   :  { %v3179_v47 = vadd.f32 %v3147_v51, %v3083_v41  ;;  %v3082_v19 = vmax.f32 %v3050_v10, 0.0  ;;  %v8207_v13 = vld [vmem:[#allocation130_spill] sm:$0xff]  ;;  %v8209_v51 = vld [vmem:[#allocation5_spill] sm:$0xff] }
 0x54a   :  { %v3220_v18 = vrot.slane %v3219_v58, 2  ;;  %v3212_v1 = vmax.f32 %v3210_v54, %v3211_v42  ;;  %v6838_v10 = vmul.f32 %v8209_v51, %v8208_v44  ;;  %v8210_v54 = vld [vmem:[#allocation42_spill] sm:$0xff] }
 0x54b   :  { %v3178_v8 = vadd.f32 %v3146_v33, %v3082_v19  ;;  %3852 = vrot.lane.b32.xlu1 %v3179_v47, %s4775_s23  ;;  %v6848_v33 = vmul.f32 %v8213_v63, %v8212_v6 }
 0x54c   :  { %v3221_v24 = vmax.f32 %v3219_v58, %v3220_v18  ;;  %v3213_v49 = vrot.slane %v3212_v1, 2  ;;  %v8211_v58 = vld [vmem:[#allocation117_spill] sm:$0xff]  ;;  %v8214_v18 = vld [vmem:[#allocation44_spill] sm:$0xff] }
 0x54d   :  { %3850 = vrot.lane.b32.xlu0 %v3178_v8, %s4775_s23  ;;  %v6842_v42 = vmul.f32 %v8211_v58, %v8210_v54 }
 0x54e   :  { %v3222_v34 = vrot.slane %v3221_v24, 1  ;;  %v3214_v46 = vmax.f32 %v3212_v1, %v3213_v49  ;;  %v8215_v1 = vld [vmem:[#allocation111_spill] sm:$0xff]  ;;  %v8217_v49 = vld [vmem:[#allocation125_spill] sm:$0xff] }
 0x54f   :  { %v6852_v8 = vmul.f32 %v8215_v1, %v8214_v18 }
 0x550   :  { %v3223_v40 = vmax.f32 %v3221_v24, %v3222_v34  ;;  %v3215_v30 = vrot.slane %v3214_v46, 1  ;;  %v8216_v24 = vld [vmem:[#allocation47_spill] sm:$0xff] }
 0x551   :  { %v6856_v34 = vmul.f32 %v8217_v49, %v8216_v24 }
 0x552   :  { %v3435_v11 = vsub.f32 %v4553_v52, %v3223_v40  ;;  %v3216_v12 = vmax.f32 %v3214_v46, %v3215_v30  ;;  %v8205_v52 = vld [vmem:[#allocation72_spill] sm:$0xff] }
 0x553   :  { %v6827_v7 = vmul.f32 %v8205_v52, %v8204_v26  ;;  %v8226_v26 = vld [vmem:[#allocation50_spill] sm:$0xff]  ;;  %v8227_v52 = vld [vmem:[#allocation121_spill] sm:$0xff] }
 0x554   :  { %v3468_v0 = vmul.f32 1.442695, %v3435_v11  ;;  %v3434_v37 = vsub.f32 %v2891_v45, %v3216_v12  ;;  %v6831_v45 = vmul.f32 %v8207_v13, %v8206_v36  ;;  %v8218_v11 = vld [vmem:[#allocation51_spill] sm:$0xff]  ;;  %v6891_v36 = vmul.f32 %v8227_v52, %v8226_v26  ;;  %v8228_v13 = vld [vmem:[#allocation56_spill] sm:$0xff]  ;;  %v8236_v26 = vld [vmem:[#allocation65_spill] sm:$0xff] }
 0x555   :  { %v8219_v12 = vld [vmem:[#allocation127_spill] sm:$0xff]  ;;  %v8237_v52 = vld [vmem:[#allocation124_spill] sm:$0xff] }
 0x556   :  { %4622 = vpow2.f32 %v3468_v0  ;;  %v3466_v57 = vmul.f32 1.442695, %v3434_v37  ;;  %v6863_v0 = vmul.f32 %v8219_v12, %v8218_v11  ;;  %v8230_v11 = vld [vmem:[#allocation57_spill] sm:$0xff]  ;;  %v8231_v12 = vld [vmem:[#allocation112_spill] sm:$0xff] }
 0x558   :  { %4624 = vpow2.f32 %v3466_v57 }
 0x55c   :  { %v6817_v53 = vpop.f32.mrf.mxu1 }
 0x55d   :  { %v3053_v41 = vmul.f32 0.999995, %v6817_v53  ;;  %v3231_v15 = vsel %vm854_vm2, %v6817_v53, -inf }
 0x55e   :  { %v3232_v47 = vrot.slane %v3231_v15, 4  ;;  %v6844_v19 = vpop.f32.mrf.mxu1 }
 0x55f   :  { %v3085_v46 = vmax.f32 %v3053_v41, 0.0  ;;  %v3052_v40 = vmul.f32 0.999995, %v6844_v19  ;;  %v3224_v30 = vsel %vm854_vm2, %v6844_v19, -inf  ;;  %v8229_v41 = vld [vmem:[#allocation114_spill] sm:$0xff] }
 0x560   :  { %v3233_v37 = vmax.f32 %v3231_v15, %v3232_v47  ;;  %v3225_v57 = vrot.slane %v3224_v30, 4  ;;  %v6865_v62 = vpop.f32.mrf.mxu1  ;;  %v6895_v15 = vmul.f32 %v8229_v41, %v8228_v13  ;;  %v6920_v13 = vmul.f32 %v8237_v52, %v8236_v26 }
 0x561   :  { %v3181_v29 = vadd.f32 %v3149_v27, %v3085_v46  ;;  %v3084_v32 = vmax.f32 %v3052_v40, 0.0  ;;  %v3055_v14 = vmul.f32 0.999995, %v6865_v62  ;;  %v3245_v50 = vsel %vm854_vm2, %v6865_v62, -inf }
 0x562   :  { %v3234_v21 = vrot.slane %v3233_v37, 2  ;;  %v3226_v48 = vmax.f32 %v3224_v30, %v3225_v57  ;;  %v3246_v25 = vrot.slane %v3245_v50, 4  ;;  %v6878_v55 = vpop.f32.mrf.mxu1  ;;  %v8232_v57 = vld [vmem:[#allocation61_spill] sm:$0xff] }
 0x563   :  { %v6884_v22 = vpop.eup %4622  ;;  %v3180_v16 = vadd.f32 %v3148_v20, %v3084_v32  ;;  %v3238_v27 = vsel %vm854_vm2, %v6878_v55, -inf  ;;  %3856 = vrot.lane.b32.xlu0 %v3181_v29, %s4775_s23  ;;  %v3087_v6 = vmax.f32 %v3055_v14, 0.0  ;;  %v3054_v63 = vmul.f32 0.999995, %v6878_v55  ;;  %v8234_v32 = vld [vmem:[#allocation63_spill] sm:$0xff] }
 0x564   :  { %v3537_v44 = vsel %vm854_vm2, %v6884_v22, 0.0  ;;  %v3235_v51 = vmax.f32 %v3233_v37, %v3234_v21  ;;  %v3227_v54 = vrot.slane %v3226_v48, 2  ;;  %v3247_v58 = vmax.f32 %v3245_v50, %v3246_v25  ;;  %v8235_v14 = vld [vmem:[#allocation115_spill] sm:$0xff] }
 0x565   :  { %v6899_v20 = vpop.eup %4624  ;;  %v3538_v47 = vrot.slane %v3537_v44, 4  ;;  %v3239_v18 = vrot.slane %v3238_v27, 4  ;;  %v6907_v37 = vmul.f32 %v8231_v12, %v8230_v11  ;;  %v6911_v31 = vmul.f32 %v8233_v17, %v8232_v57 }
 0x566   :  { %v3530_v1 = vsel %vm854_vm2, %v6899_v20, 0.0  ;;  %v3236_v24 = vrot.slane %v3235_v51, 1  ;;  %v3228_v49 = vmax.f32 %v3226_v48, %v3227_v54  ;;  %v3248_v46 = vrot.slane %v3247_v58, 2 }
 0x567   :  { %v3539_v40 = vadd.f32 %v3538_v47, %v3537_v44  ;;  %v3240_v30 = vmax.f32 %v3238_v27, %v3239_v18  ;;  %3854 = vrot.lane.b32.xlu0 %v3180_v16, %s4775_s23  ;;  %v6915_v50 = vmul.f32 %v8235_v14, %v8234_v32  ;;  %v3531_v21 = vrot.slane %v3530_v1, 4  ;;  %v8238_v44 = vld [vmem:[#allocation60_spill] sm:$0xff]  ;;  %v8241_v47 = vld [vmem:[#allocation122_spill] sm:$0xff] }
 0x568   :  { %v3237_v9 = vmax.f32 %v3235_v51, %v3236_v24  ;;  %v3229_v5 = vrot.slane %v3228_v49, 1  ;;  %v3249_v29 = vmax.f32 %v3247_v58, %v3248_v46  ;;  %v3183_v48 = vadd.f32 %v3151_v38, %v3087_v6  ;;  %v8239_v51 = vld [vmem:[#allocation123_spill] sm:$0xff]  ;;  %v8243_v46 = vld [vmem:[#allocation129_spill] sm:$0xff] }
 0x569   :  { %v3086_v25 = vmax.f32 %v3054_v63, 0.0  ;;  %v3241_v3 = vrot.slane %v3240_v30, 2  ;;  %v6925_v54 = vmul.f32 %v8239_v51, %v8238_v44  ;;  %v8240_v58 = vld [vmem:[#allocation67_spill] sm:$0xff]  ;;  %v3540_v6 = vrot.slane %v3539_v40, 2 }
 0x56a   :  { %v3437_v28 = vsub.f32 %v6817_v53, %v3237_v9  ;;  %v3230_v16 = vmax.f32 %v3228_v49, %v3229_v5  ;;  %v3250_v27 = vrot.slane %v3249_v29, 1  ;;  %v6929_v38 = vmul.f32 %v8241_v47, %v8240_v58  ;;  %v8242_v49 = vld [vmem:[#allocation68_spill] sm:$0xff] }
 0x56b   :  { %v3242_v41 = vmax.f32 %v3240_v30, %v3241_v3  ;;  %3860 = vrot.lane.b32.xlu0 %v3183_v48, %s4775_s23  ;;  %v6936_v30 = vmul.f32 %v8243_v46, %v8242_v49  ;;  %v6938_v11 = vadd.f32 %v3531_v21, %v3530_v1  ;;  %v3182_v12 = vadd.f32 %v6793_v39, %v3086_v25 }
 0x56c   :  { %v3472_v63 = vmul.f32 1.442695, %v3437_v28  ;;  %v3436_v53 = vsub.f32 %v6844_v19, %v3230_v16  ;;  %v3251_v18 = vmax.f32 %v3249_v29, %v3250_v27  ;;  %v6932_v24 = vpop.f32.mrf.mxu1  ;;  %v6950_v39 = vadd.f32 %v3540_v6, %v3539_v40 }
 0x56d   :  { %v3243_v57 = vrot.slane %v3242_v41, 1  ;;  %v3259_v17 = vsel %vm854_vm2, %v6932_v24, -inf  ;;  %v6956_v28 = vmul.f32 0.999995, %v6932_v24 }
 0x56e   :  { %4626 = vpow2.f32 %v3472_v63  ;;  %v3470_v9 = vmul.f32 1.442695, %v3436_v53  ;;  %v3439_v5 = vsub.f32 %v6865_v62, %v3251_v18  ;;  %v3260_v19 = vrot.slane %v3259_v17, 4  ;;  %v6944_v29 = vpop.f32.mrf.mxu1 }
 0x56f   :  { %v3244_v32 = vmax.f32 %v3242_v41, %v3243_v57  ;;  %v3056_v14 = vmul.f32 0.999995, %v6944_v29  ;;  %v3252_v1 = vsel %vm854_vm2, %v6944_v29, -inf  ;;  %3858 = vrot.lane.b32.xlu0 %v3182_v12, %s4775_s23 }
 0x570   :  { %4628 = vpow2.f32 %v3470_v9  ;;  %v3476_v21 = vmul.f32 1.442695, %v3439_v5  ;;  %v3261_v48 = vmax.f32 %v3259_v17, %v3260_v19  ;;  %v3253_v25 = vrot.slane %v3252_v1, 4  ;;  %v6952_v3 = vpop.f32.mrf.mxu1 }
 0x571   :  { %v3438_v62 = vsub.f32 %v6878_v55, %v3244_v32  ;;  %v3088_v16 = vmax.f32 %v3056_v14, 0.0  ;;  %v3059_v27 = vmul.f32 0.999995, %v6952_v3  ;;  %v3273_v40 = vsel %vm854_vm2, %v6952_v3, -inf }
 0x572   :  { %4630 = vpow2.f32 %v3476_v21  ;;  %v3262_v26 = vrot.slane %v3261_v48, 2  ;;  %v3254_v52 = vmax.f32 %v3252_v1, %v3253_v25  ;;  %v6961_v41 = vpop.f32.mrf.mxu1  ;;  %v3274_v47 = vrot.slane %v3273_v40, 4 }
 0x573   :  { %v3474_v44 = vmul.f32 1.442695, %v3438_v62  ;;  %v3184_v51 = vadd.f32 %v6797_v23, %v3088_v16  ;;  %v3091_v58 = vmax.f32 %v3059_v27, 0.0  ;;  %v3058_v63 = vmul.f32 0.999995, %v6961_v41 }
 0x574   :  { %v3263_v55 = vmax.f32 %v3261_v48, %v3262_v26  ;;  %v3255_v6 = vrot.slane %v3254_v52, 2  ;;  %v3266_v53 = vsel %vm854_vm2, %v6961_v41, -inf  ;;  %v6967_v18 = vpop.f32.mrf.mxu1  ;;  %v3275_v46 = vmax.f32 %v3273_v40, %v3274_v47 }
 0x575   :  { %4632 = vpow2.f32 %v3474_v44  ;;  %v3187_v49 = vadd.f32 %v6801_v43, %v3091_v58  ;;  %v3267_v12 = vrot.slane %v3266_v53, 4  ;;  %3862 = vrot.lane.b32.xlu0 %v3184_v51, %s4775_s23  ;;  %v3090_v17 = vmax.f32 %v3058_v63, 0.0 }
 0x576   :  { %v3264_v57 = vrot.slane %v3263_v55, 1  ;;  %v3256_v23 = vmax.f32 %v3254_v52, %v3255_v6  ;;  %v3061_v9 = vmul.f32 0.999995, %v6967_v18  ;;  %v6972_v5 = vpop.f32.mrf.mxu1  ;;  %v3276_v19 = vrot.slane %v3275_v46, 2 }
 0x577   :  { %v3268_v32 = vmax.f32 %v3266_v53, %v3267_v12  ;;  %v3287_v14 = vsel %vm854_vm2, %v6967_v18, -inf  ;;  %v3060_v1 = vmul.f32 0.999995, %v6972_v5  ;;  %3868 = vrot.lane.b32.xlu1 %v3187_v49, %s4775_s23  ;;  %v3186_v48 = vadd.f32 %v6807_v4, %v3090_v17 }
 0x578   :  { %v3265_v43 = vmax.f32 %v3263_v55, %v3264_v57  ;;  %v3257_v21 = vrot.slane %v3256_v23, 1  ;;  %v3093_v25 = vmax.f32 %v3061_v9, 0.0  ;;  %v3277_v62 = vmax.f32 %v3275_v46, %v3276_v19  ;;  %v6979_v52 = vpop.f32.mrf.mxu1 }
 0x579   :  { %v3269_v16 = vrot.slane %v3268_v32, 2  ;;  %v3288_v27 = vrot.slane %v3287_v14, 4  ;;  %v3092_v26 = vmax.f32 %v3060_v1, 0.0  ;;  %v3280_v58 = vsel %vm854_vm2, %v6972_v5, -inf  ;;  %3866 = vrot.lane.b32.xlu0 %v3186_v48, %s4775_s23 }
 0x57a   :  { %v3441_v40 = vsub.f32 %v6932_v24, %v3265_v43  ;;  %v3258_v44 = vmax.f32 %v3256_v23, %v3257_v21  ;;  %v3189_v51 = vadd.f32 %v6811_v35, %v3093_v25  ;;  %v3089_v4 = vmax.f32 %v6956_v28, 0.0  ;;  %v6995_v17 = vpop.f32.mrf.mxu1 }
 0x57b   :  { %v6986_v47 = vpop.eup %4626  ;;  %v3278_v55 = vrot.slane %v3277_v62, 1  ;;  %v3270_v6 = vmax.f32 %v3268_v32, %v3269_v16  ;;  %v3289_v63 = vmax.f32 %v3287_v14, %v3288_v27  ;;  %v3281_v46 = vrot.slane %v3280_v58, 4 }
 0x57c   :  { %v3551_v53 = vsel %vm854_vm2, %v6986_v47, 0.0  ;;  %v3480_v49 = vmul.f32 1.442695, %v3441_v40  ;;  %v3440_v24 = vsub.f32 %v6944_v29, %v3258_v44  ;;  %3872 = vrot.lane.b32.xlu1 %v3189_v51, %s4775_s23  ;;  %v3188_v19 = vadd.f32 %v6815_v59, %v3092_v26  ;;  %v7012_v26 = vpop.f32.mrf.mxu1 }
 0x57d   :  { %v6993_v35 = vpop.eup %4628  ;;  %v3279_v12 = vmax.f32 %v3277_v62, %v3278_v55  ;;  %v3271_v57 = vrot.slane %v3270_v6, 1  ;;  %v3290_v23 = vrot.slane %v3289_v63, 2  ;;  %v3282_v32 = vmax.f32 %v3280_v58, %v3281_v46 }
 0x57e   :  { %4634 = vpow2.f32 %v3480_v49  ;;  %v3478_v9 = vmul.f32 1.442695, %v3440_v24  ;;  %v3552_v29 = vrot.slane %v3551_v53, 4  ;;  %v3544_v48 = vsel %vm854_vm2, %v6993_v35, 0.0 }
 0x57f   :  { %v6999_v14 = vpop.eup %4630  ;;  %v3443_v1 = vsub.f32 %v6952_v3, %v3279_v12  ;;  %v3272_v43 = vmax.f32 %v3270_v6, %v3271_v57  ;;  %v7006_v25 = vadd.f32 %v6838_v10, %v3089_v4  ;;  %v3291_v62 = vmax.f32 %v3289_v63, %v3290_v23 }
 0x580   :  { %v3283_v16 = vrot.slane %v3282_v32, 2  ;;  %3870 = vrot.lane.b32.xlu1 %v3188_v19, %s4775_s23  ;;  %v3565_v59 = vsel %vm854_vm2, %v6999_v14, 0.0  ;;  %4636 = vpow2.f32 %v3478_v9  ;;  %v3063_v10 = vmul.f32 0.999995, %v6979_v52  ;;  %v7026_v9 = vpop.f32.mrf.mxu1 }
 0x581   :  { %v3484_v27 = vmul.f32 1.442695, %v3443_v1  ;;  %v3442_v3 = vsub.f32 %v6961_v41, %v3272_v43  ;;  %v3292_v44 = vrot.slane %v3291_v62, 1  ;;  %v3301_v58 = vsel %vm854_vm2, %v6979_v52, -inf }
 0x582   :  { %v7014_v40 = vpop.eup %4632  ;;  %v3284_v51 = vmax.f32 %v3282_v32, %v3283_v16  ;;  %v7019_v4 = vadd.f32 %v3552_v29, %v3551_v53  ;;  %v3545_v55 = vrot.slane %v3544_v48, 4  ;;  %v3566_v63 = vrot.slane %v3565_v59, 4 }
 0x583   :  { %4638 = vpow2.f32 %v3484_v27  ;;  %v3482_v6 = vmul.f32 1.442695, %v3442_v3  ;;  %v3293_v49 = vmax.f32 %v3291_v62, %v3292_v44  ;;  %v3095_v41 = vmax.f32 %v3063_v10, 0.0 }
 0x584   :  { %v3285_v24 = vrot.slane %v3284_v51, 1  ;;  %v3558_v46 = vsel %vm854_vm2, %v7014_v40, 0.0  ;;  %v3302_v12 = vrot.slane %v3301_v58, 4  ;;  %v3062_v57 = vmul.f32 0.999995, %v6995_v17 }
 0x585   :  { %v3294_v23 = vsel %vm854_vm2, %v6995_v17, -inf  ;;  %4640 = vpow2.f32 %v3482_v6  ;;  %v3445_v53 = vsub.f32 %v6967_v18, %v3293_v49  ;;  %v3191_v32 = vadd.f32 %v6823_v60, %v3095_v41 }
 0x586   :  { %v3286_v19 = vmax.f32 %v3284_v51, %v3285_v24  ;;  %v3303_v29 = vmax.f32 %v3301_v58, %v3302_v12  ;;  %v3094_v1 = vmax.f32 %v3062_v57, 0.0  ;;  %v3295_v43 = vrot.slane %v3294_v23, 4 }
 0x587   :  { %v3065_v62 = vmul.f32 0.999995, %v7012_v26  ;;  %v3488_v16 = vmul.f32 1.442695, %v3445_v53  ;;  %v3315_v3 = vsel %vm854_vm2, %v7012_v26, -inf  ;;  %3876 = vrot.lane.b32.xlu1 %v3191_v32, %s4775_s23  ;;  %v7036_v10 = vadd.f32 %v3545_v55, %v3544_v48  ;;  %v7043_v53 = vpop.f32.mrf.mxu1 }
 0x588   :  { %v3444_v27 = vsub.f32 %v6972_v5, %v3286_v19  ;;  %v3064_v44 = vmul.f32 0.999995, %v7026_v9  ;;  %v3304_v18 = vrot.slane %v3303_v29, 2  ;;  %v3190_v60 = vadd.f32 %v6827_v7, %v3094_v1 }
 0x589   :  { %v3296_v51 = vmax.f32 %v3294_v23, %v3295_v43  ;;  %4642 = vpow2.f32 %v3488_v16  ;;  %v3316_v6 = vrot.slane %v3315_v3, 4  ;;  %v3559_v5 = vrot.slane %v3558_v46, 4 }
 0x58a   :  { %v3486_v58 = vmul.f32 1.442695, %v3444_v27  ;;  %v3096_v49 = vmax.f32 %v3064_v44, 0.0  ;;  %v3305_v41 = vmax.f32 %v3303_v29, %v3304_v18  ;;  %v3308_v57 = vsel %vm854_vm2, %v7026_v9, -inf  ;;  %v7058_v18 = vpop.f32.mrf.mxu1 }
 0x58b   :  { %v7039_v24 = vpop.eup %4634  ;;  %v3297_v12 = vrot.slane %v3296_v51, 2  ;;  %v7045_v48 = vadd.f32 %v3566_v63, %v3565_v59  ;;  %v3097_v55 = vmax.f32 %v3065_v62, 0.0  ;;  %v3317_v23 = vmax.f32 %v3315_v3, %v3316_v6  ;;  %3874 = vrot.lane.b32.xlu1 %v3190_v60, %s4775_s23 }
 0x58c   :  { %8244 = vst [vmem:[#allocation32_spill] sm:$0xff] %v7039_v24  ;;  %v3579_v7 = vsel %vm854_vm2, %v7039_v24, 0.0  ;;  %4644 = vpow2.f32 %v3486_v58  ;;  %v3306_v19 = vrot.slane %v3305_v41, 1  ;;  %v3309_v1 = vrot.slane %v3308_v57, 4 }
 0x58d   :  { %v3298_v32 = vmax.f32 %v3296_v51, %v3297_v12  ;;  %v7050_v29 = vpop.eup %4636  ;;  %v3318_v43 = vrot.slane %v3317_v23, 2  ;;  %v3192_v16 = vadd.f32 %v6842_v42, %v3096_v49  ;;  %v3067_v27 = vmul.f32 0.999995, %v7043_v53 }
 0x58e   :  { %8245 = vst [vmem:[#allocation30_spill] sm:$0xff] %v7050_v29  ;;  %v3329_v59 = vsel %vm854_vm2, %v7043_v53, -inf  ;;  %v7056_v63 = vadd.f32 %v3559_v5, %v3558_v46  ;;  %v3580_v62 = vrot.slane %v3579_v7, 4  ;;  %v3307_v3 = vmax.f32 %v3305_v41, %v3306_v19 }
 0x58f   :  { %v3299_v44 = vrot.slane %v3298_v32, 1  ;;  %v3319_v51 = vmax.f32 %v3317_v23, %v3318_v43  ;;  %v3310_v58 = vmax.f32 %v3308_v57, %v3309_v1  ;;  %v3099_v6 = vmax.f32 %v3067_v27, 0.0  ;;  %3878 = vrot.lane.b32.xlu1 %v3192_v16, %s4775_s23 }
 0x590   :  { %v7060_v60 = vpop.eup %4638  ;;  %v3330_v12 = vrot.slane %v3329_v59, 4  ;;  %v3572_v42 = vsel %vm854_vm2, %v7050_v29, 0.0  ;;  %v3447_v49 = vsub.f32 %v6979_v52, %v3307_v3  ;;  %v7068_v41 = vpop.f32.mrf.mxu1  ;;  %v7071_v19 = vadd.f32 %v6831_v45, %v3097_v55 }
 0x591   :  { %8246 = vst [vmem:[#allocation70_spill] sm:$0xff] %v7060_v60  ;;  %v3593_v46 = vsel %vm854_vm2, %v7060_v60, 0.0  ;;  %v3300_v5 = vmax.f32 %v3298_v32, %v3299_v44  ;;  %v3320_v23 = vrot.slane %v3319_v51, 1  ;;  %v3311_v57 = vrot.slane %v3310_v58, 2 }
 0x592   :  { %v3195_v1 = vadd.f32 %v6848_v33, %v3099_v6  ;;  %v7074_v43 = vpop.eup %4640  ;;  %v7076_v16 = vadd.f32 %v3580_v62, %v3579_v7  ;;  %v3492_v27 = vmul.f32 1.442695, %v3447_v49  ;;  %v3331_v21 = vmax.f32 %v3329_v59, %v3330_v12  ;;  %v7081_v33 = vpop.f32.mrf.mxu1 }
 0x593   :  { %8247 = vst [vmem:[#allocation35_spill] sm:$0xff] %v7074_v43  ;;  %v3446_v28 = vsub.f32 %v6995_v17, %v3300_v5  ;;  %v3573_v24 = vrot.slane %v3572_v42, 4  ;;  %v3594_v52 = vrot.slane %v3593_v46, 4  ;;  %v3321_v32 = vmax.f32 %v3319_v51, %v3320_v23 }
 0x594   :  { %8248 = vst [vmem:[#allocation81_spill] sm:$0xff] %v7076_v16  ;;  %v3312_v3 = vmax.f32 %v3310_v58, %v3311_v57  ;;  %3884 = vrot.lane.b32.xlu1 %v3195_v1, %s4775_s23  ;;  %4646 = vpow2.f32 %v3492_v27  ;;  %v3332_v55 = vrot.slane %v3331_v21, 2  ;;  %v3066_v44 = vmul.f32 0.999995, %v7058_v18 }
 0x595   :  { %v3490_v45 = vmul.f32 1.442695, %v3446_v28  ;;  %v3586_v7 = vsel %vm854_vm2, %v7074_v43, 0.0  ;;  %v3449_v62 = vsub.f32 %v7012_v26, %v3321_v32  ;;  %v3322_v59 = vsel %vm854_vm2, %v7058_v18, -inf  ;;  %v7096_v32 = vpop.f32.mrf.mxu1 }
 0x596   :  { %v3313_v17 = vrot.slane %v3312_v3, 1  ;;  %v7088_v51 = vpop.eup %4642  ;;  %v3333_v58 = vmax.f32 %v3331_v21, %v3332_v55  ;;  %v3098_v6 = vmax.f32 %v3066_v44, 0.0  ;;  %v3323_v28 = vrot.slane %v3322_v59, 4 }
 0x597   :  { %8249 = vst [vmem:[#allocation33_spill] sm:$0xff] %v7088_v51  ;;  %4648 = vpow2.f32 %v3490_v45  ;;  %v3607_v12 = vsel %vm854_vm2, %v7088_v51, 0.0  ;;  %v3496_v49 = vmul.f32 1.442695, %v3449_v62  ;;  %v3069_v23 = vmul.f32 0.999995, %v7068_v41 }
 0x598   :  { %v3314_v5 = vmax.f32 %v3312_v3, %v3313_v17  ;;  %v7093_v57 = vadd.f32 %v3573_v24, %v3572_v42  ;;  %v3334_v26 = vrot.slane %v3333_v58, 1  ;;  %v3194_v1 = vadd.f32 %v6852_v8, %v3098_v6 }
 0x599   :  { %v3324_v27 = vmax.f32 %v3322_v59, %v3323_v28  ;;  %v7098_v16 = vpop.eup %4644  ;;  %v7100_v21 = vadd.f32 %v3594_v52, %v3593_v46  ;;  %4650 = vpow2.f32 %v3496_v49  ;;  %v3101_v55 = vmax.f32 %v3069_v23, 0.0  ;;  %v7111_v28 = vpop.f32.mrf.mxu1 }
 0x59a   :  { %8250 = vst [vmem:[#allocation86_spill] sm:$0xff] %v7098_v16  ;;  %v3448_v45 = vsub.f32 %v7026_v9, %v3314_v5  ;;  %v3587_v44 = vrot.slane %v3586_v7, 4  ;;  %v3608_v3 = vrot.slane %v3607_v12, 4  ;;  %v3335_v62 = vmax.f32 %v3333_v58, %v3334_v26  ;;  %3882 = vrot.lane.b32.xlu0 %v3194_v1, %s4775_s23 }
 0x59b   :  { %v3325_v17 = vrot.slane %v3324_v27, 2  ;;  %v3197_v8 = vadd.f32 %v6882_v2, %v3101_v55  ;;  %v3343_v42 = vsel %vm854_vm2, %v7068_v41, -inf  ;;  %v3068_v59 = vmul.f32 0.999995, %v7081_v33 }
 0x59c   :  { %v3494_v24 = vmul.f32 1.442695, %v3448_v45  ;;  %v3600_v46 = vsel %vm854_vm2, %v7098_v16, 0.0  ;;  %v3451_v9 = vsub.f32 %v7043_v53, %v3335_v62  ;;  %v3344_v6 = vrot.slane %v3343_v42, 4 }
 0x59d   :  { %v3326_v52 = vmax.f32 %v3324_v27, %v3325_v17  ;;  %v3100_v58 = vmax.f32 %v3068_v59, 0.0  ;;  %v3336_v49 = vsel %vm854_vm2, %v7081_v33, -inf  ;;  %v3071_v2 = vmul.f32 0.999995, %v7096_v32  ;;  %v7123_v16 = vpop.f32.mrf.mxu1 }
 0x59e   :  { %4652 = vpow2.f32 %v3494_v24  ;;  %v3500_v5 = vmul.f32 1.442695, %v3451_v9  ;;  %v3345_v26 = vmax.f32 %v3343_v42, %v3344_v6  ;;  %v3337_v1 = vrot.slane %v3336_v49, 4  ;;  %3888 = vrot.lane.b32.xlu0 %v3197_v8, %s4775_s23 }
 0x59f   :  { %v3327_v23 = vrot.slane %v3326_v52, 1  ;;  %v7117_v45 = vadd.f32 %v3587_v44, %v3586_v7  ;;  %v3103_v53 = vmax.f32 %v3071_v2, 0.0  ;;  %v3357_v27 = vsel %vm854_vm2, %v7096_v32, -inf }
 0x5a0   :  { %v3070_v55 = vmul.f32 0.999995, %v7111_v28  ;;  %v3346_v17 = vrot.slane %v3345_v26, 2  ;;  %v3196_v24 = vadd.f32 %v6856_v34, %v3100_v58  ;;  %v3338_v59 = vmax.f32 %v3336_v49, %v3337_v1 }
 0x5a1   :  { %v3328_v62 = vmax.f32 %v3326_v52, %v3327_v23  ;;  %v7125_v9 = vpop.eup %4646  ;;  %v3601_v42 = vrot.slane %v3600_v46, 4  ;;  %4654 = vpow2.f32 %v3500_v5  ;;  %v3358_v8 = vrot.slane %v3357_v27, 4 }
 0x5a2   :  { %8251 = vst [vmem:[#allocation39_spill] sm:$0xff] %v7125_v9  ;;  %v3350_v7 = vsel %vm854_vm2, %v7111_v28, -inf  ;;  %v7129_v44 = vadd.f32 %v3608_v3, %v3607_v12  ;;  %v3347_v2 = vmax.f32 %v3345_v26, %v3346_v17  ;;  %v3339_v52 = vrot.slane %v3338_v59, 2  ;;  %3886 = vrot.lane.b32.xlu0 %v3196_v24, %s4775_s23  ;;  %v7138_v3 = vpop.f32.mrf.mxu1 }
 0x5a3   :  { %v3450_v6 = vsub.f32 %v7058_v18, %v3328_v62  ;;  %v3199_v58 = vadd.f32 %v6891_v36, %v3103_v53  ;;  %v3359_v49 = vmax.f32 %v3357_v27, %v3358_v8  ;;  %v3102_v23 = vmax.f32 %v3070_v55, 0.0 }
 0x5a4   :  { %v7133_v34 = vpop.eup %4648  ;;  %v3351_v1 = vrot.slane %v3350_v7, 4  ;;  %v3621_v5 = vsel %vm854_vm2, %v7125_v9, 0.0  ;;  %v3348_v43 = vrot.slane %v3347_v2, 1  ;;  %v3340_v12 = vmax.f32 %v3338_v59, %v3339_v52 }
 0x5a5   :  { %8252 = vst [vmem:[#allocation89_spill] sm:$0xff] %v7133_v34  ;;  %v3498_v51 = vmul.f32 1.442695, %v3450_v6  ;;  %v7140_v18 = vadd.f32 %v3601_v42, %v3600_v46  ;;  %v3614_v26 = vsel %vm854_vm2, %v7133_v34, 0.0  ;;  %v3360_v62 = vrot.slane %v3359_v49, 2 }
 0x5a6   :  { %v3352_v17 = vmax.f32 %v3350_v7, %v3351_v1  ;;  %v7144_v24 = vpop.eup %4650  ;;  %v3349_v36 = vmax.f32 %v3347_v2, %v3348_v43  ;;  %v3341_v53 = vrot.slane %v3340_v12, 1  ;;  %v3073_v27 = vmul.f32 0.999995, %v7123_v16  ;;  %3892 = vrot.lane.b32.xlu0 %v3199_v58, %s4775_s23  ;;  %v7152_v1 = vpop.f32.mrf.mxu1 }
 0x5a7   :  { %8253 = vst [vmem:[#allocation36_spill] sm:$0xff] %v7144_v24  ;;  %4656 = vpow2.f32 %v3498_v51  ;;  %v3622_v55 = vrot.slane %v3621_v5, 4  ;;  %v3635_v59 = vsel %vm854_vm2, %v7144_v24, 0.0  ;;  %v3361_v46 = vmax.f32 %v3359_v49, %v3360_v62 }
 0x5a8   :  { %v3353_v42 = vrot.slane %v3352_v17, 2  ;;  %v3615_v8 = vrot.slane %v3614_v26, 4  ;;  %v3453_v6 = vsub.f32 %v7068_v41, %v3349_v36  ;;  %v3342_v52 = vmax.f32 %v3340_v12, %v3341_v53 }
 0x5a9   :  { %v3198_v7 = vadd.f32 %v6863_v0, %v3102_v23  ;;  %v3362_v43 = vrot.slane %v3361_v46, 1  ;;  %v3371_v2 = vsel %vm854_vm2, %v7123_v16, -inf  ;;  %v3072_v58 = vmul.f32 0.999995, %v7138_v3 }
 0x5aa   :  { %v3354_v51 = vmax.f32 %v3352_v17, %v3353_v42  ;;  %v3636_v24 = vrot.slane %v3635_v59, 4  ;;  %v3504_v49 = vmul.f32 1.442695, %v3453_v6  ;;  %v3452_v62 = vsub.f32 %v7081_v33, %v3342_v52  ;;  %v7165_v42 = vpop.f32.mrf.mxu1 }
 0x5ab   :  { %v7157_v34 = vpop.eup %4652  ;;  %v3105_v9 = vmax.f32 %v3073_v27, 0.0  ;;  %3890 = vrot.lane.b32.xlu0 %v3198_v7, %s4775_s23  ;;  %v7161_v41 = vadd.f32 %v3622_v55, %v3621_v5  ;;  %v3363_v0 = vmax.f32 %v3361_v46, %v3362_v43  ;;  %v3372_v12 = vrot.slane %v3371_v2, 4 }
 0x5ac   :  { %v3355_v23 = vrot.slane %v3354_v51, 1  ;;  %v7163_v17 = vadd.f32 %v3615_v8, %v3614_v26  ;;  %4658 = vpow2.f32 %v3504_v49  ;;  %v3502_v36 = vmul.f32 1.442695, %v3452_v62 }
 0x5ad   :  { %v3104_v53 = vmax.f32 %v3072_v58, 0.0  ;;  %v3455_v60 = vsub.f32 %v7096_v32, %v3363_v0  ;;  %v3373_v29 = vmax.f32 %v3371_v2, %v3372_v12  ;;  %v3364_v33 = vsel %vm854_vm2, %v7138_v3, -inf }
 0x5ae   :  { %v3356_v6 = vmax.f32 %v3354_v51, %v3355_v23  ;;  %v7170_v27 = vpop.eup %4654  ;;  %v7172_v5 = vadd.f32 %v3636_v24, %v3635_v59  ;;  %v3628_v26 = vsel %vm854_vm2, %v7157_v34, 0.0  ;;  %v7177_v55 = vadd.f32 %v6925_v54, %v3105_v9  ;;  %v7185_v51 = vpop.f32.mrf.mxu1 }
 0x5af   :  { %8254 = vst [vmem:[#allocation69_spill] sm:$0xff] %v7170_v27  ;;  %v3200_v46 = vadd.f32 %v6869_v56, %v3104_v53  ;;  %4660 = vpow2.f32 %v3502_v36  ;;  %v3508_v8 = vmul.f32 1.442695, %v3455_v60  ;;  %v3374_v52 = vrot.slane %v3373_v29, 2 }
 0x5b0   :  { %v3454_v32 = vsub.f32 %v7111_v28, %v3356_v6  ;;  %v3365_v7 = vrot.slane %v3364_v33, 4  ;;  %v3075_v43 = vmul.f32 0.999995, %v7152_v1  ;;  %v3385_v24 = vsel %vm854_vm2, %v7152_v1, -inf }
 0x5b1   :  { %v3074_v59 = vmul.f32 0.999995, %v7165_v42  ;;  %3894 = vrot.lane.b32.xlu0 %v3200_v46, %s4775_s23  ;;  %v3649_v56 = vsel %vm854_vm2, %v7170_v27, 0.0  ;;  %4662 = vpow2.f32 %v3508_v8  ;;  %v3375_v60 = vmax.f32 %v3373_v29, %v3374_v52  ;;  %v7196_v46 = vpop.f32.mrf.mxu1 }
 0x5b2   :  { %v3506_v54 = vmul.f32 1.442695, %v3454_v32  ;;  %v3366_v28 = vmax.f32 %v3364_v33, %v3365_v7  ;;  %v3107_v9 = vmax.f32 %v3075_v43, 0.0  ;;  %v3386_v2 = vrot.slane %v3385_v24, 4 }
 0x5b3   :  { %v3106_v58 = vmax.f32 %v3074_v59, 0.0  ;;  %v3629_v62 = vrot.slane %v3628_v26, 4  ;;  %v3376_v0 = vrot.slane %v3375_v60, 1  ;;  %v3378_v23 = vsel %vm854_vm2, %v7165_v42, -inf }
 0x5b4   :  { %v7190_v49 = vpop.eup %4656  ;;  %4664 = vpow2.f32 %v3506_v54  ;;  %v3367_v12 = vrot.slane %v3366_v28, 2  ;;  %v3203_v36 = vadd.f32 %v6873_v61, %v3107_v9  ;;  %v3387_v53 = vmax.f32 %v3385_v24, %v3386_v2 }
 0x5b5   :  { %v3077_v6 = vmul.f32 0.999995, %v7185_v51  ;;  %v3650_v29 = vrot.slane %v3649_v56, 4  ;;  %v3377_v33 = vmax.f32 %v3375_v60, %v3376_v0  ;;  %v3202_v8 = vadd.f32 %v6895_v15, %v3106_v58 }
 0x5b6   :  { %v3379_v32 = vrot.slane %v3378_v23, 4  ;;  %v3642_v52 = vsel %vm854_vm2, %v7190_v49, 0.0  ;;  %v3368_v7 = vmax.f32 %v3366_v28, %v3367_v12  ;;  %v3388_v43 = vrot.slane %v3387_v53, 2  ;;  %3900 = vrot.lane.b32.xlu1 %v3203_v36, %s4775_s23  ;;  %v7209_v28 = vpop.f32.mrf.mxu1 }
 0x5b7   :  { %v3399_v59 = vsel %vm854_vm2, %v7185_v51, -inf  ;;  %v7204_v61 = vadd.f32 %v3629_v62, %v3628_v26  ;;  %v3457_v24 = vsub.f32 %v7123_v16, %v3377_v33  ;;  %3898 = vrot.lane.b32.xlu0 %v3202_v8, %s4775_s23  ;;  %v3109_v2 = vmax.f32 %v3077_v6, 0.0 }
 0x5b8   :  { %v3380_v54 = vmax.f32 %v3378_v23, %v3379_v32  ;;  %v3400_v9 = vrot.slane %v3399_v59, 4  ;;  %v3369_v15 = vrot.slane %v3368_v7, 1  ;;  %v3389_v60 = vmax.f32 %v3387_v53, %v3388_v43 }
 0x5b9   :  { %v3076_v58 = vmul.f32 0.999995, %v7196_v46  ;;  %v7211_v0 = vpop.eup %4658  ;;  %v3643_v12 = vrot.slane %v3642_v52, 4  ;;  %v3512_v27 = vmul.f32 1.442695, %v3457_v24  ;;  %v7213_v62 = vadd.f32 %v3650_v29, %v3649_v56 }
 0x5ba   :  { %8255 = vst [vmem:[#allocation43_spill] sm:$0xff] %v7211_v0  ;;  %v3381_v36 = vrot.slane %v3380_v54, 2  ;;  %v3401_v26 = vmax.f32 %v3399_v59, %v3400_v9  ;;  %v3663_v16 = vsel %vm854_vm2, %v7211_v0, 0.0  ;;  %v3370_v23 = vmax.f32 %v3368_v7, %v3369_v15  ;;  %3880 = vrot.lane.b32.xlu1 %v7071_v19, %s4775_s23  ;;  %v7227_v59 = vpop.f32.mrf.mxu1 }
 0x5bb   :  { %v3390_v33 = vrot.slane %v3389_v60, 1  ;;  %4666 = vpow2.f32 %v3512_v27  ;;  %v3392_v8 = vsel %vm854_vm2, %v7196_v46, -inf  ;;  %3864 = vrot.lane.b32.xlu0 %v7006_v25, %s4775_s23  ;;  %v3205_v7 = vadd.f32 %v6907_v37, %v3109_v2 }
 0x5bc   :  { %v3382_v53 = vmax.f32 %v3380_v54, %v3381_v36  ;;  %v3402_v6 = vrot.slane %v3401_v26, 2  ;;  %v7223_v32 = vpop.eup %4660  ;;  %v3456_v56 = vsub.f32 %v7138_v3, %v3370_v23  ;;  %v3108_v43 = vmax.f32 %v3076_v58, 0.0 }
 0x5bd   :  { %v3391_v29 = vmax.f32 %v3389_v60, %v3390_v33  ;;  %v7229_v19 = vadd.f32 %v3643_v12, %v3642_v52  ;;  %v3664_v27 = vrot.slane %v3663_v16, 4  ;;  %v3393_v36 = vrot.slane %v3392_v8, 4 }
 0x5be   :  { %v3383_v24 = vrot.slane %v3382_v53, 1  ;;  %v3403_v54 = vmax.f32 %v3401_v26, %v3402_v6  ;;  %v7231_v9 = vpop.eup %4662  ;;  %v3510_v15 = vmul.f32 1.442695, %v3456_v56  ;;  %v3079_v0 = vmul.f32 0.999995, %v7209_v28  ;;  %3904 = vrot.lane.b32.xlu1 %v3205_v7, %s4775_s23  ;;  %v7245_v26 = vpop.f32.mrf.mxu1 }
 0x5bf   :  { %v3459_v25 = vsub.f32 %v7152_v1, %v3391_v29  ;;  %v3656_v37 = vsel %vm854_vm2, %v7223_v32, 0.0  ;;  %v3677_v3 = vsel %vm854_vm2, %v7231_v9, 0.0  ;;  %3896 = vrot.lane.b32.xlu0 %v7177_v55, %s4775_s23  ;;  %v3204_v58 = vadd.f32 %v6911_v31, %v3108_v43 }
 0x5c0   :  { %v3384_v52 = vmax.f32 %v3382_v53, %v3383_v24  ;;  %v3404_v60 = vrot.slane %v3403_v54, 1  ;;  %4668 = vpow2.f32 %v3510_v15  ;;  %v3394_v12 = vmax.f32 %v3392_v8, %v3393_v36 }
 0x5c1   :  { %v7242_v2 = vpop.eup %4664  ;;  %v3516_v1 = vmul.f32 1.442695, %v3459_v25  ;;  %v7247_v23 = vadd.f32 %v3664_v27, %v3663_v16  ;;  %v3111_v56 = vmax.f32 %v3079_v0, 0.0  ;;  %v3657_v53 = vrot.slane %v3656_v37, 4  ;;  %v7258_v27 = vpop.f32.mrf.mxu1 }
 0x5c2   :  { %v3458_v33 = vsub.f32 %v7165_v42, %v3384_v52  ;;  %v3405_v6 = vmax.f32 %v3403_v54, %v3404_v60  ;;  %v3678_v29 = vrot.slane %v3677_v3, 4  ;;  %v3670_v55 = vsel %vm854_vm2, %v7242_v2, 0.0  ;;  %3902 = vrot.lane.b32.xlu1 %v3204_v58, %s4775_s23 }
 0x5c3   :  { %v3395_v7 = vrot.slane %v3394_v12, 2  ;;  %4670 = vpow2.f32 %v3516_v1  ;;  %v3413_v16 = vsel %vm854_vm2, %v7209_v28, -inf  ;;  %v3207_v42 = vadd.f32 %v6915_v50, %v3111_v56 }
 0x5c4   :  { %v3514_v24 = vmul.f32 1.442695, %v3458_v33  ;;  %v3461_v31 = vsub.f32 %v7185_v51, %v3405_v6  ;;  %v3414_v43 = vrot.slane %v3413_v16, 4  ;;  %v3078_v0 = vmul.f32 0.999995, %v7227_v59 }
 0x5c5   :  { %v3396_v8 = vmax.f32 %v3394_v12, %v3395_v7  ;;  %v3406_v15 = vsel %vm854_vm2, %v7227_v59, -inf  ;;  %v3081_v25 = vmul.f32 0.999995, %v7245_v26  ;;  %v7264_v1 = vadd.f32 %v3657_v53, %v3656_v37 }
 0x5c6   :  { %4672 = vpow2.f32 %v3514_v24  ;;  %v3520_v54 = vmul.f32 1.442695, %v3461_v31  ;;  %v3415_v51 = vmax.f32 %v3413_v16, %v3414_v43  ;;  %v3110_v52 = vmax.f32 %v3078_v0, 0.0  ;;  %3908 = vrot.lane.b32.xlu1 %v3207_v42, %s4775_s23 }
 0x5c7   :  { %v3397_v36 = vrot.slane %v3396_v8, 1  ;;  %v3407_v60 = vrot.slane %v3406_v15, 4  ;;  %v3427_v50 = vsel %vm854_vm2, %v7245_v26, -inf  ;;  %v3080_v58 = vmul.f32 0.999995, %v7258_v27 }
 0x5c8   :  { %4674 = vpow2.f32 %v3520_v54  ;;  %v7269_v12 = vpop.eup %4666  ;;  %v3416_v6 = vrot.slane %v3415_v51, 2  ;;  %v3206_v56 = vadd.f32 %v6920_v13, %v3110_v52  ;;  %v7272_v24 = vadd.f32 %v3678_v29, %v3677_v3 }
 0x5c9   :  { %v3398_v33 = vmax.f32 %v3396_v8, %v3397_v36  ;;  %v3408_v7 = vmax.f32 %v3406_v15, %v3407_v60  ;;  %v3671_v31 = vrot.slane %v3670_v55, 4  ;;  %v3428_v16 = vrot.slane %v3427_v50, 4 }
 0x5ca   :  { %v3112_v42 = vmax.f32 %v3080_v58, 0.0  ;;  %v3417_v53 = vmax.f32 %v3415_v51, %v3416_v6  ;;  %v3113_v0 = vmax.f32 %v3081_v25, 0.0  ;;  %3906 = vrot.lane.b32.xlu1 %v3206_v56, %s4775_s23  ;;  %v3691_v54 = vsel %vm854_vm2, %v7269_v12, 0.0 }
 0x5cb   :  { %v3460_v37 = vsub.f32 %v7196_v46, %v3398_v33  ;;  %v3409_v43 = vrot.slane %v3408_v7, 2  ;;  %v3429_v8 = vmax.f32 %v3427_v50, %v3428_v16  ;;  %v3420_v13 = vsel %vm854_vm2, %v7258_v27, -inf }
 0x5cc   :  { %v8256_v3 = vrot.slane %v6950_v39, 1  ;;  %v3418_v36 = vrot.slane %v3417_v53, 1  ;;  %v3208_v46 = vadd.f32 %v6936_v30, %v3112_v42  ;;  %v3421_v60 = vrot.slane %v3420_v13, 4 }
 0x5cd   :  { %v3518_v15 = vmul.f32 1.442695, %v3460_v37  ;;  %v3410_v52 = vmax.f32 %v3408_v7, %v3409_v43  ;;  %v7284_v51 = vpop.eup %4668  ;;  %v3430_v25 = vrot.slane %v3429_v8, 2  ;;  %v8257_v50 = vrot.slane %v6938_v11, 2 }
 0x5ce   :  { %v3543_v29 = vadd.f32 %v8256_v3, %v6950_v39  ;;  %v7289_v33 = vadd.f32 %v3671_v31, %v3670_v55  ;;  %v3684_v6 = vsel %vm854_vm2, %v7284_v51, 0.0  ;;  %v3419_v39 = vmax.f32 %v3417_v53, %v3418_v36  ;;  %3910 = vrot.lane.b32.xlu1 %v3208_v46, %s4775_s23 }
 0x5cf   :  { %v3534_v58 = vadd.f32 %v8257_v50, %v6938_v11  ;;  %v3411_v56 = vrot.slane %v3410_v52, 1  ;;  %v3209_v30 = vadd.f32 %v6929_v38, %v3113_v0  ;;  %v3431_v7 = vmax.f32 %v3429_v8, %v3430_v25 }
 0x5d0   :  { %4676 = vrcp.f32 %v3543_v29  ;;  %v3422_v16 = vmax.f32 %v3420_v13, %v3421_v60  ;;  %v7295_v37 = vpop.eup %4670  ;;  %v3692_v43 = vrot.slane %v3691_v54, 4  ;;  %v3463_v3 = vsub.f32 %v7209_v28, %v3419_v39 }
 0x5d1   :  { %v3535_v42 = vrot.slane %v3534_v58, 1  ;;  %v3412_v11 = vmax.f32 %v3410_v52, %v3411_v56  ;;  %v3554_v55 = vrot.slane %v7019_v4, 2  ;;  %v3685_v31 = vrot.slane %v3684_v6, 4  ;;  %v7315_v56 = vpop.permute.xlu0 %3850 }
 0x5d2   :  { %4678 = vpow2.f32 %v3518_v15  ;;  %v3432_v29 = vrot.slane %v3431_v7, 1  ;;  %v3423_v53 = vrot.slane %v3422_v16, 2  ;;  %v3524_v46 = vmul.f32 1.442695, %v3463_v3  ;;  %3912 = vrot.lane.b32.xlu1 %v3209_v30, %s4775_s23 }
 0x5d3   :  { %v7299_v36 = vpop.eup %4672  ;;  %v3462_v38 = vsub.f32 %v7227_v59, %v3412_v11  ;;  %v3536_v0 = vadd.f32 %v3535_v42, %v3534_v58  ;;  %v3555_v8 = vadd.f32 %v3554_v55, %v7019_v4  ;;  %v3705_v28 = vsel %vm854_vm2, %v7295_v37, 0.0 }
 0x5d4   :  { %v3698_v13 = vsel %vm854_vm2, %v7299_v36, 0.0  ;;  %v3433_v52 = vmax.f32 %v3431_v7, %v3432_v29  ;;  %v3424_v15 = vmax.f32 %v3422_v16, %v3423_v53  ;;  %v7310_v60 = vadd.f32 %v3692_v43, %v3691_v54 }
 0x5d5   :  { %v7308_v25 = vpop.eup %4674  ;;  %4680 = vpow2.f32 %v3524_v46  ;;  %v3522_v50 = vmul.f32 1.442695, %v3462_v38  ;;  %v3556_v59 = vrot.slane %v3555_v8, 1  ;;  %v7312_v58 = vadd.f32 %v3685_v31, %v3684_v6  ;;  %v7324_v31 = vpop.permute.xlu0 %3856 }
 0x5d6   :  { %v3465_v39 = vsub.f32 %v7245_v26, %v3433_v52  ;;  %v3425_v4 = vrot.slane %v3424_v15, 1  ;;  %4682 = vrcp.f32 %v3536_v0  ;;  %v3706_v30 = vrot.slane %v3705_v28, 4  ;;  %v3853_v38 = vpop.permute.xlu1 %3852 }
 0x5d7   :  { %v3699_v42 = vrot.slane %v3698_v13, 4  ;;  %4684 = vpow2.f32 %v3522_v50  ;;  %v3557_v7 = vadd.f32 %v3556_v59, %v3555_v8  ;;  %v3547_v54 = vrot.slane %v7036_v10, 2 }
 0x5d8   :  { %v3528_v16 = vmul.f32 1.442695, %v3465_v39  ;;  %v3426_v3 = vmax.f32 %v3424_v15, %v3425_v4  ;;  %v3568_v43 = vrot.slane %v7045_v48, 2  ;;  %v3719_v6 = vsel %vm854_vm2, %v7308_v25, 0.0 }
 0x5d9   :  { %4686 = vrcp.f32 %v3557_v7  ;;  %v3561_v26 = vrot.slane %v7056_v63, 2  ;;  %v3575_v11 = vrot.slane %v7093_v57, 2  ;;  %v3548_v29 = vadd.f32 %v3547_v54, %v7036_v10 }
 0x5da   :  { %4688 = vpow2.f32 %v3528_v16  ;;  %v3464_v55 = vsub.f32 %v7258_v27, %v3426_v3  ;;  %v3569_v53 = vadd.f32 %v3568_v43, %v7045_v48  ;;  %v3596_v52 = vrot.slane %v7100_v21, 2 }
 0x5db   :  { %v3562_v0 = vadd.f32 %v3561_v26, %v7056_v63  ;;  %v3576_v8 = vadd.f32 %v3575_v11, %v7093_v57  ;;  %v3589_v15 = vrot.slane %v7117_v45, 2  ;;  %v3549_v27 = vrot.slane %v3548_v29, 1 }
 0x5dc   :  { %v3526_v50 = vmul.f32 1.442695, %v3464_v55  ;;  %v3570_v39 = vrot.slane %v3569_v53, 1  ;;  %v7333_v4 = vadd.f32 %v3706_v30, %v3705_v28  ;;  %v3597_v48 = vadd.f32 %v3596_v52, %v7100_v21  ;;  %v7341_v28 = vpop.permute.xlu0 %3854 }
 0x5dd   :  { %v4677_v46 = vpop.eup %4676  ;;  %v3563_v10 = vrot.slane %v3562_v0, 1  ;;  %v3577_v7 = vrot.slane %v3576_v8, 1  ;;  %v3720_v16 = vrot.slane %v3719_v6, 4  ;;  %v3550_v3 = vadd.f32 %v3549_v27, %v3548_v29 }
 0x5de   :  { %v3787_v59 = vmul.f32 %v4677_v46, %v6884_v22  ;;  %4690 = vpow2.f32 %v3526_v50  ;;  %v3571_v54 = vadd.f32 %v3570_v39, %v3569_v53  ;;  %v3598_v11 = vrot.slane %v3597_v48, 1 }
 0x5df   :  { %v7336_v57 = vpop.eup %4678  ;;  %v3564_v43 = vadd.f32 %v3563_v10, %v3562_v0  ;;  %v3578_v26 = vadd.f32 %v3577_v7, %v3576_v8  ;;  %v7338_v55 = vadd.f32 %v3699_v42, %v3698_v13  ;;  %4692 = vrcp.f32 %v3550_v3 }
 0x5e0   :  { %v3947_v63 = vmul.f32 %v3853_v38, %v3787_v59  ;;  %8258 = vst [vmem:[#allocation74_spill] sm:$0xff] %v7336_v57  ;;  %v3590_v30 = vadd.f32 %v3589_v15, %v7117_v45  ;;  %4694 = vrcp.f32 %v3571_v54  ;;  %v3599_v46 = vadd.f32 %v3598_v11, %v3597_v48  ;;  %v3861_v3 = vpop.permute.xlu0 %3860 }
 0x5e1   :  { %v3610_v29 = vrot.slane %v7129_v44, 2  ;;  %v7347_v53 = vadd.f32 %v3720_v16, %v3719_v6  ;;  %4696 = vrcp.f32 %v3564_v43  ;;  %v3603_v13 = vrot.slane %v7140_v18, 2 }
 0x5e2   :  { %v3985_v22 = vsel %vm854_vm2, %v3947_v63, 0.0  ;;  %v7345_v38 = vpop.eup %4680  ;;  %v3591_v0 = vrot.slane %v3590_v30, 1  ;;  %v3712_v8 = vsel %vm854_vm2, %v7336_v57, 0.0  ;;  %4698 = vrcp.f32 %v3578_v26 }
 0x5e3   :  { %v3986_v21 = vrot.slane %v3985_v22, 4  ;;  %8259 = vst [vmem:[#allocation41_spill] sm:$0xff] %v7345_v38  ;;  %v4683_v42 = vpop.eup %4682  ;;  %v3611_v45 = vadd.f32 %v3610_v29, %v7129_v44  ;;  %4700 = vrcp.f32 %v3599_v46  ;;  %v3624_v6 = vrot.slane %v7161_v41, 2 }
 0x5e4   :  { %v7353_v15 = vpop.eup %4684  ;;  %v3786_v50 = vmul.f32 %v4683_v42, %v6899_v20  ;;  %v3592_v59 = vadd.f32 %v3591_v0, %v3590_v30  ;;  %v3733_v27 = vsel %vm854_vm2, %v7345_v38, 0.0  ;;  %v3604_v7 = vadd.f32 %v3603_v13, %v7140_v18 }
 0x5e5   :  { %v3987_v52 = vadd.f32 %v3986_v21, %v3985_v22  ;;  %8260 = vst [vmem:[#allocation79_spill] sm:$0xff] %v7353_v15  ;;  %v3612_v10 = vrot.slane %v3611_v45, 1  ;;  %v3713_v16 = vrot.slane %v3712_v8, 4  ;;  %v3726_v44 = vsel %vm854_vm2, %v7353_v15, 0.0 }
 0x5e6   :  { %v4687_v48 = vpop.eup %4686  ;;  %v3946_v63 = vmul.f32 %v7315_v56, %v3786_v50  ;;  %4702 = vrcp.f32 %v3592_v59  ;;  %v3605_v11 = vrot.slane %v3604_v7, 1  ;;  %v3734_v22 = vrot.slane %v3733_v27, 4 }
 0x5e7   :  { %v3988_v39 = vrot.slane %v3987_v52, 2  ;;  %v7363_v20 = vpop.eup %4688  ;;  %v3789_v43 = vmul.f32 %v4687_v48, %v6986_v47  ;;  %v3613_v26 = vadd.f32 %v3612_v10, %v3611_v45  ;;  %v3625_v21 = vadd.f32 %v3624_v6, %v7161_v41  ;;  %v3859_v10 = vpop.permute.xlu0 %3858 }
 0x5e8   :  { %8261 = vst [vmem:[#allocation48_spill] sm:$0xff] %v7363_v20  ;;  %v3747_v18 = vsel %vm854_vm2, %v7363_v20, 0.0  ;;  %v3978_v30 = vsel %vm854_vm2, %v3946_v63, 0.0  ;;  %v3727_v46 = vrot.slane %v3726_v44, 4  ;;  %v3606_v42 = vadd.f32 %v3605_v11, %v3604_v7 }
 0x5e9   :  { %v3989_v54 = vadd.f32 %v3988_v39, %v3987_v52  ;;  %v3748_v29 = vrot.slane %v3747_v18, 4  ;;  %v3979_v56 = vrot.slane %v3978_v30, 4  ;;  %v3949_v0 = vmul.f32 %v7324_v31, %v3789_v43 }
 0x5ea   :  { %4704 = vrcp.f32 %v3613_v26  ;;  %v3626_v52 = vrot.slane %v3625_v21, 1  ;;  %v7373_v45 = vadd.f32 %v3713_v16, %v3712_v8  ;;  %v3617_v39 = vrot.slane %v7163_v17, 2  ;;  %v3869_v16 = vpop.permute.xlu1 %3868 }
 0x5eb   :  { %v3990_v13 = vrot.slane %v3989_v54, 1  ;;  %v7371_v47 = vpop.eup %4690  ;;  %v3980_v50 = vadd.f32 %v3979_v56, %v3978_v30  ;;  %v3999_v59 = vsel %vm854_vm2, %v3949_v0, 0.0  ;;  %4706 = vrcp.f32 %v3606_v42 }
 0x5ec   :  { %8262 = vst [vmem:[#allocation84_spill] sm:$0xff] %v7371_v47  ;;  %v3740_v41 = vsel %vm854_vm2, %v7371_v47, 0.0  ;;  %v4000_v6 = vrot.slane %v3999_v59, 4  ;;  %v3627_v31 = vadd.f32 %v3626_v52, %v3625_v21  ;;  %v4693_v48 = vpop.eup %4692  ;;  %v7379_v63 = vadd.f32 %v3734_v22, %v3733_v27 }
 0x5ed   :  { %v7381_v7 = vadd.f32 %v3727_v46, %v3726_v44  ;;  %v7383_v43 = vadd.f32 %v3748_v29, %v3747_v18  ;;  %v3981_v8 = vrot.slane %v3980_v50, 2  ;;  %v4695_v26 = vpop.eup %4694  ;;  %v3741_v11 = vrot.slane %v3740_v41, 4  ;;  %v3863_v29 = vpop.permute.xlu0 %3862 }
 0x5ee   :  { %v3991_v30 = vadd.f32 %v3990_v13, %v3989_v54  ;;  %v4001_v56 = vadd.f32 %v4000_v6, %v3999_v59  ;;  %v3788_v0 = vmul.f32 %v4693_v48, %v6993_v35  ;;  %v4697_v20 = vpop.eup %4696  ;;  %v3791_v42 = vmul.f32 %v4695_v26, %v6999_v14  ;;  %v8264_v35 = vld [vmem:[#allocation30_spill] sm:$0xff] }
 0x5ef   :  { %8263 = vst [vmem:[#allocation46_spill] sm:$0xff] %v7383_v43  ;;  %v3982_v47 = vadd.f32 %v3981_v8, %v3980_v50  ;;  %v3618_v21 = vadd.f32 %v3617_v39, %v7163_v17  ;;  %v4699_v44 = vpop.eup %4698  ;;  %v3790_v46 = vmul.f32 %v4697_v20, %v7014_v40  ;;  %4708 = vrcp.f32 %v3627_v31  ;;  %v8265_v6 = vld [vmem:[#allocation70_spill] sm:$0xff]  ;;  %v3873_v31 = vpop.permute.xlu1 %3872 }
 0x5f0   :  { %v4002_v22 = vrot.slane %v4001_v56, 2  ;;  %v3948_v18 = vmul.f32 %v7341_v28, %v3788_v0  ;;  %v4701_v54 = vpop.eup %4700  ;;  %v3951_v52 = vmul.f32 %v3861_v3, %v3791_v42  ;;  %v3792_v59 = vmul.f32 %v4699_v44, %v8264_v35 }
 0x5f1   :  { %v3983_v13 = vrot.slane %v3982_v47, 1  ;;  %v7393_v14 = vadd.f32 %v3741_v11, %v3740_v41  ;;  %v3950_v39 = vmul.f32 %v3859_v10, %v3790_v46  ;;  %v3795_v48 = vmul.f32 %v4701_v54, %v8265_v6  ;;  %v3867_v54 = vpop.permute.xlu0 %3866 }
 0x5f2   :  { %v3992_v17 = vsel %vm854_vm2, %v3948_v18, 0.0  ;;  %v4013_v40 = vsel %vm854_vm2, %v3951_v52, 0.0  ;;  %v3952_v20 = vmul.f32 %v3863_v29, %v3792_v59  ;;  %v4003_v0 = vadd.f32 %v4002_v22, %v4001_v56  ;;  %v8266_v22 = vld [vmem:[#allocation35_spill] sm:$0xff] }
 0x5f3   :  { %v4703_v8 = vpop.eup %4702  ;;  %v3984_v28 = vadd.f32 %v3983_v13, %v3982_v47  ;;  %v3993_v26 = vrot.slane %v3992_v17, 4  ;;  %v4014_v3 = vrot.slane %v4013_v40, 4  ;;  %v4006_v42 = vsel %vm854_vm2, %v3950_v39, 0.0  ;;  %v3871_v50 = vpop.permute.xlu1 %3870 }
 0x5f4   :  { %v3955_v44 = vmul.f32 %v3869_v16, %v3795_v48  ;;  %v4007_v35 = vrot.slane %v4006_v42, 4  ;;  %v4020_v10 = vsel %vm854_vm2, %v3952_v20, 0.0  ;;  %v3619_v13 = vrot.slane %v3618_v21, 1 }
 0x5f5   :  { %v4234_v41 = vsel %vm1335_vm3, %v3991_v30, %v3984_v28  ;;  %v3994_v11 = vadd.f32 %v3993_v26, %v3992_v17  ;;  %v4015_v18 = vadd.f32 %v4014_v3, %v4013_v40  ;;  %v4021_v46 = vrot.slane %v4020_v10, 4  ;;  %v8267_v30 = vld [vmem:[#allocation33_spill] sm:$0xff] }
 0x5f6   :  { %v4041_v47 = vsel %vm854_vm2, %v3955_v44, 0.0  ;;  %v4008_v59 = vadd.f32 %v4007_v35, %v4006_v42  ;;  %v3794_v6 = vmul.f32 %v4703_v8, %v8266_v22  ;;  %v4004_v39 = vrot.slane %v4003_v0, 1 }
 0x5f7   :  { %v4705_v52 = vpop.eup %4704  ;;  %v3995_v29 = vrot.slane %v3994_v11, 2  ;;  %v4042_v56 = vrot.slane %v4041_v47, 4  ;;  %v4016_v16 = vrot.slane %v4015_v18, 2  ;;  %v4022_v48 = vadd.f32 %v4021_v46, %v4020_v10  ;;  %v8268_v46 = vld [vmem:[#allocation86_spill] sm:$0xff] }
 0x5f8   :  { %v3797_v17 = vmul.f32 %v4705_v52, %v8267_v30  ;;  %v4707_v28 = vpop.eup %4706  ;;  %v4009_v20 = vrot.slane %v4008_v59, 2  ;;  %v3954_v3 = vmul.f32 %v3867_v54, %v3794_v6  ;;  %v3620_v38 = vadd.f32 %v3619_v13, %v3618_v21 }
 0x5f9   :  { %v3996_v26 = vadd.f32 %v3995_v29, %v3994_v11  ;;  %v4043_v40 = vadd.f32 %v4042_v56, %v4041_v47  ;;  %v4017_v44 = vadd.f32 %v4016_v16, %v4015_v18  ;;  %v4023_v27 = vrot.slane %v4022_v48, 2 }
 0x5fa   :  { %v3957_v15 = vmul.f32 %v3873_v31, %v3797_v17  ;;  %v4010_v42 = vadd.f32 %v4009_v20, %v4008_v59  ;;  %v4034_v8 = vsel %vm854_vm2, %v3954_v3, 0.0  ;;  %v3796_v52 = vmul.f32 %v4707_v28, %v8268_v46  ;;  %v8270_v28 = vld [vmem:[#allocation39_spill] sm:$0xff] }
 0x5fb   :  { %v3997_v57 = vrot.slane %v3996_v26, 1  ;;  %v4044_v35 = vrot.slane %v4043_v40, 2  ;;  %v4018_v22 = vrot.slane %v4017_v44, 1  ;;  %v4035_v43 = vrot.slane %v4034_v8, 4 }
 0x5fc   :  { %v4055_v10 = vsel %vm854_vm2, %v3957_v15, 0.0  ;;  %v4709_v11 = vpop.eup %4708  ;;  %v7407_v47 = vadd.f32 %v4023_v27, %v4022_v48  ;;  %v3743_v31 = vrot.slane %v7393_v14, 2  ;;  %v3956_v13 = vmul.f32 %v3871_v50, %v3796_v52 }
 0x5fd   :  { %v3998_v29 = vadd.f32 %v3997_v57, %v3996_v26  ;;  %v4045_v54 = vadd.f32 %v4044_v35, %v4043_v40  ;;  %v4056_v18 = vrot.slane %v4055_v10, 4  ;;  %v4036_v21 = vadd.f32 %v4035_v43, %v4034_v8  ;;  %v3877_v57 = vpop.permute.xlu1 %3876 }
 0x5fe   :  { %v8269_v59 = vrot.slane %v7229_v19, 2  ;;  %v7413_v6 = vadd.f32 %v4004_v39, %v4003_v0  ;;  %v4011_v16 = vrot.slane %v4010_v42, 1  ;;  %v7418_v27 = vadd.f32 %v4018_v22, %v4017_v44 }
 0x5ff   :  { %v7416_v15 = vsel %vm1337_vm4, %v3998_v29, %v4234_v41  ;;  %v4046_v30 = vrot.slane %v4045_v54, 1  ;;  %v4037_v48 = vrot.slane %v4036_v21, 2  ;;  %v4048_v17 = vsel %vm854_vm2, %v3956_v13, 0.0 }
 0x600   :  { %v3646_v56 = vadd.f32 %v8269_v59, %v7229_v19  ;;  %v3799_v43 = vmul.f32 %v4709_v11, %v8270_v28  ;;  %v4025_v50 = vrot.slane %v7407_v47, 1  ;;  %v4057_v26 = vadd.f32 %v4056_v18, %v4055_v10 }
 0x601   :  { %v4049_v20 = vrot.slane %v4048_v17, 4  ;;  %4710 = vrcp.f32 %v3620_v38  ;;  %v4038_v19 = vadd.f32 %v4037_v48, %v4036_v21  ;;  %v8271_v41 = vrot.slane %v7204_v61, 2 }
 0x602   :  { %v3959_v0 = vmul.f32 %v3877_v57, %v3799_v43  ;;  %v3647_v39 = vrot.slane %v3646_v56, 1  ;;  %v4047_v3 = vadd.f32 %v4046_v30, %v4045_v54  ;;  %v3652_v35 = vrot.slane %v7213_v62, 2 }
 0x603   :  { %v3632_v40 = vadd.f32 %v8271_v41, %v7204_v61  ;;  %v4050_v44 = vadd.f32 %v4049_v20, %v4048_v17  ;;  %v3666_v8 = vrot.slane %v7247_v23, 2  ;;  %v4039_v22 = vrot.slane %v4038_v19, 1 }
 0x604   :  { %v4069_v46 = vsel %vm854_vm2, %v3959_v0, 0.0  ;;  %v3648_v52 = vadd.f32 %v3647_v39, %v3646_v56  ;;  %v4058_v11 = vrot.slane %v4057_v26, 2  ;;  %v3653_v18 = vadd.f32 %v3652_v35, %v7213_v62 }
 0x605   :  { %v3633_v10 = vrot.slane %v3632_v40, 1  ;;  %v4051_v38 = vrot.slane %v4050_v44, 2  ;;  %v4070_v29 = vrot.slane %v4069_v46, 4  ;;  %v4040_v21 = vadd.f32 %v4039_v22, %v4038_v19 }
 0x606   :  { %4712 = vrcp.f32 %v3648_v52  ;;  %v3667_v61 = vadd.f32 %v3666_v8, %v7247_v23  ;;  %v7431_v54 = vadd.f32 %v4011_v16, %v4010_v42  ;;  %v3654_v57 = vrot.slane %v3653_v18, 1 }
 0x607   :  { %v3634_v13 = vadd.f32 %v3633_v10, %v3632_v40  ;;  %v4052_v59 = vadd.f32 %v4051_v38, %v4050_v44  ;;  %v4071_v30 = vadd.f32 %v4070_v29, %v4069_v46  ;;  %v4241_v48 = vsel %vm1335_vm3, %v4047_v3, %v4040_v21  ;;  %v3875_v40 = vpop.permute.xlu1 %3874 }
 0x608   :  { %v3668_v56 = vrot.slane %v3667_v61, 1  ;;  %v3659_v17 = vrot.slane %v7264_v1, 2  ;;  %v4059_v28 = vadd.f32 %v4058_v11, %v4057_v26  ;;  %v3655_v20 = vadd.f32 %v3654_v57, %v3653_v18  ;;  %v8272_v18 = vld [vmem:[#allocation89_spill] sm:$0xff] }
 0x609   :  { %4714 = vrcp.f32 %v3634_v13  ;;  %v4053_v43 = vrot.slane %v4052_v59, 1  ;;  %v3680_v62 = vrot.slane %v7272_v24, 2  ;;  %v3673_v23 = vrot.slane %v7289_v33, 2 }
 0x60a   :  { %v3669_v19 = vadd.f32 %v3668_v56, %v3667_v61  ;;  %v3660_v0 = vadd.f32 %v3659_v17, %v7264_v1  ;;  %v3687_v42 = vrot.slane %v7312_v58, 2  ;;  %v4072_v39 = vrot.slane %v4071_v30, 2 }
 0x60b   :  { %v4054_v16 = vadd.f32 %v4053_v43, %v4052_v59  ;;  %4716 = vrcp.f32 %v3655_v20  ;;  %v3681_v41 = vadd.f32 %v3680_v62, %v7272_v24  ;;  %v3674_v26 = vadd.f32 %v3673_v23, %v7289_v33  ;;  %v3879_v43 = vpop.permute.xlu1 %3878 }
 0x60c   :  { %4718 = vrcp.f32 %v3669_v19  ;;  %v3661_v3 = vrot.slane %v3660_v0, 1  ;;  %v3688_v44 = vadd.f32 %v3687_v42, %v7312_v58  ;;  %v4060_v35 = vrot.slane %v4059_v28, 1  ;;  %v3883_v1 = vpop.permute.xlu0 %3882 }
 0x60d   :  { %v7443_v8 = vsel %vm1337_vm4, %v4054_v16, %v4241_v48  ;;  %v3682_v22 = vrot.slane %v3681_v41, 1  ;;  %v3708_v46 = vrot.slane %v7333_v4, 2  ;;  %v3675_v11 = vrot.slane %v3674_v26, 1 }
 0x60e   :  { %v4711_v52 = vpop.eup %4710  ;;  %v3662_v10 = vadd.f32 %v3661_v3, %v3660_v0  ;;  %v3689_v38 = vrot.slane %v3688_v44, 1  ;;  %v3701_v24 = vrot.slane %v7338_v55, 2  ;;  %v4073_v29 = vadd.f32 %v4072_v39, %v4071_v30  ;;  %v8273_v30 = vld [vmem:[#allocation81_spill] sm:$0xff] }
 0x60f   :  { %v3798_v21 = vmul.f32 %v4711_v52, %v8272_v18  ;;  %v3683_v33 = vadd.f32 %v3682_v22, %v3681_v41  ;;  %v3709_v58 = vadd.f32 %v3708_v46, %v7333_v4  ;;  %v3676_v13 = vadd.f32 %v3675_v11, %v3674_v26  ;;  %v3885_v18 = vpop.permute.xlu1 %3884 }
 0x610   :  { %4720 = vrcp.f32 %v3662_v10  ;;  %v3690_v61 = vadd.f32 %v3689_v38, %v3688_v44  ;;  %v3702_v59 = vadd.f32 %v3701_v24, %v7338_v55  ;;  %v3889_v48 = vpop.permute.xlu0 %3888  ;;  %v3638_v17 = vrot.slane %v7172_v5, 2 }
 0x611   :  { %v3958_v57 = vmul.f32 %v3875_v40, %v3798_v21  ;;  %4722 = vrcp.f32 %v3683_v33  ;;  %v3710_v56 = vrot.slane %v3709_v58, 1  ;;  %v3582_v62 = vrot.slane %v8273_v30, 2 }
 0x612   :  { %4724 = vrcp.f32 %v3676_v13  ;;  %v3703_v20 = vrot.slane %v3702_v59, 1  ;;  %v3722_v19 = vrot.slane %v7347_v53, 2  ;;  %v3639_v55 = vadd.f32 %v3638_v17, %v7172_v5 }
 0x613   :  { %v4713_v0 = vpop.eup %4712  ;;  %v4062_v4 = vsel %vm854_vm2, %v3958_v57, 0.0  ;;  %4726 = vrcp.f32 %v3690_v61  ;;  %v3711_v23 = vadd.f32 %v3710_v56, %v3709_v58  ;;  %v7458_v42 = vadd.f32 %v4025_v50, %v7407_v47  ;;  %v8275_v57 = vld [vmem:[#allocation43_spill] sm:$0xff] }
 0x614   :  { %v4063_v16 = vrot.slane %v4062_v4, 4  ;;  %v3802_v39 = vmul.f32 %v4713_v0, %v7190_v49  ;;  %v3583_v41 = vadd.f32 %v3582_v62, %v8273_v30  ;;  %v7462_v3 = vadd.f32 %v4060_v35, %v4059_v28  ;;  %v3887_v26 = vpop.permute.xlu0 %3886 }
 0x615   :  { %v3704_v44 = vadd.f32 %v3703_v20, %v3702_v59  ;;  %v3640_v22 = vrot.slane %v3639_v55, 1  ;;  %v3723_v46 = vadd.f32 %v3722_v19, %v7347_v53  ;;  %v4074_v52 = vrot.slane %v4073_v29, 1  ;;  %v8274_v53 = vld [vmem:[#allocation69_spill] sm:$0xff] }
 0x616   :  { %v4715_v40 = vpop.eup %4714  ;;  %v4064_v5 = vadd.f32 %v4063_v16, %v4062_v4  ;;  %v3962_v10 = vmul.f32 %v3883_v1, %v3802_v39  ;;  %4728 = vrcp.f32 %v3711_v23  ;;  %v3584_v47 = vrot.slane %v3583_v41, 1 }
 0x617   :  { %v3800_v11 = vmul.f32 %v4715_v40, %v7157_v34  ;;  %v3724_v50 = vrot.slane %v3723_v46, 1  ;;  %v3694_v49 = vrot.slane %v7310_v60, 2  ;;  %v3641_v21 = vadd.f32 %v3640_v22, %v3639_v55 }
 0x618   :  { %v4717_v38 = vpop.eup %4716  ;;  %v4065_v24 = vrot.slane %v4064_v5, 2  ;;  %v4090_v28 = vsel %vm854_vm2, %v3962_v10, 0.0  ;;  %v3893_v61 = vpop.permute.xlu0 %3892  ;;  %4730 = vrcp.f32 %v3704_v44  ;;  %v3585_v1 = vadd.f32 %v3584_v47, %v3583_v41 }
 0x619   :  { %v3960_v35 = vmul.f32 %v3879_v43, %v3800_v11  ;;  %v4719_v33 = vpop.eup %4718  ;;  %v4091_v58 = vrot.slane %v4090_v28, 4  ;;  %v3803_v13 = vmul.f32 %v4717_v38, %v8274_v53  ;;  %v7469_v34 = vadd.f32 %v4074_v52, %v4073_v29 }
 0x61a   :  { %v3805_v56 = vmul.f32 %v4719_v33, %v8275_v57  ;;  %v3725_v17 = vadd.f32 %v3724_v50, %v3723_v46  ;;  %v3695_v43 = vadd.f32 %v3694_v49, %v7310_v60  ;;  %v7474_v19 = vadd.f32 %v4065_v24, %v4064_v5 }
 0x61b   :  { %v4076_v59 = vsel %vm854_vm2, %v3960_v35, 0.0  ;;  %v4092_v20 = vadd.f32 %v4091_v58, %v4090_v28  ;;  %v3963_v62 = vmul.f32 %v3885_v18, %v3803_v13  ;;  %4732 = vrcp.f32 %v3641_v21 }
 0x61c   :  { %v4077_v30 = vrot.slane %v4076_v59, 4  ;;  %v3965_v0 = vmul.f32 %v3889_v48, %v3805_v56  ;;  %v3715_v4 = vrot.slane %v7373_v45, 2  ;;  %4734 = vrcp.f32 %v3585_v1 }
 0x61d   :  { %v4721_v23 = vpop.eup %4720  ;;  %v4093_v55 = vrot.slane %v4092_v20, 2  ;;  %v4097_v16 = vsel %vm854_vm2, %v3963_v62, 0.0  ;;  %v3891_v39 = vpop.permute.xlu0 %3890  ;;  %4736 = vrcp.f32 %v3725_v17  ;;  %v4067_v11 = vrot.slane %v7474_v19, 1 }
 0x61e   :  { %v4078_v29 = vadd.f32 %v4077_v30, %v4076_v59  ;;  %v4723_v41 = vpop.eup %4722  ;;  %v4098_v40 = vrot.slane %v4097_v16, 4  ;;  %v4111_v44 = vsel %vm854_vm2, %v3965_v0, 0.0  ;;  %v3804_v22 = vmul.f32 %v4721_v23, %v7223_v32 }
 0x61f   :  { %v4725_v60 = vpop.eup %4724  ;;  %v4094_v46 = vadd.f32 %v4093_v55, %v4092_v20  ;;  %v4112_v52 = vrot.slane %v4111_v44, 4  ;;  %v3807_v5 = vmul.f32 %v4723_v41, %v7231_v9  ;;  %v3696_v35 = vrot.slane %v3695_v43, 1 }
 0x620   :  { %v4079_v48 = vrot.slane %v4078_v29, 2  ;;  %v4727_v10 = vpop.eup %4726  ;;  %v4099_v47 = vadd.f32 %v4098_v40, %v4097_v16  ;;  %v3964_v50 = vmul.f32 %v3887_v26, %v3804_v22  ;;  %v3806_v49 = vmul.f32 %v4725_v60, %v7242_v2 }
 0x621   :  { %v4095_v38 = vrot.slane %v4094_v46, 1  ;;  %v4113_v24 = vadd.f32 %v4112_v52, %v4111_v44  ;;  %v3967_v28 = vmul.f32 %v3893_v61, %v3807_v5  ;;  %v3808_v33 = vmul.f32 %v4727_v10, %v7284_v51 }
 0x622   :  { %v4100_v18 = vrot.slane %v4099_v47, 2  ;;  %v4104_v32 = vsel %vm854_vm2, %v3964_v50, 0.0  ;;  %v3966_v21 = vmul.f32 %v3891_v39, %v3806_v49  ;;  %v4080_v58 = vadd.f32 %v4079_v48, %v4078_v29 }
 0x623   :  { %v4114_v53 = vrot.slane %v4113_v24, 2  ;;  %v4105_v9 = vrot.slane %v4104_v32, 4  ;;  %v3895_v13 = vpop.permute.xlu0 %3894  ;;  %v7486_v1 = vadd.f32 %v3715_v4, %v7373_v45  ;;  %v4729_v26 = vpop.eup %4728  ;;  %v4125_v2 = vsel %vm854_vm2, %v3967_v28, 0.0 }
 0x624   :  { %v4101_v59 = vadd.f32 %v4100_v18, %v4099_v47  ;;  %v4118_v61 = vsel %vm854_vm2, %v3966_v21, 0.0  ;;  %v3968_v57 = vmul.f32 %v3895_v13, %v3808_v33  ;;  %v4126_v20 = vrot.slane %v4125_v2, 4  ;;  %v8276_v33 = vld [vmem:[#allocation36_spill] sm:$0xff] }
 0x625   :  { %v4115_v56 = vadd.f32 %v4114_v53, %v4113_v24  ;;  %v4106_v17 = vadd.f32 %v4105_v9, %v4104_v32  ;;  %v3697_v30 = vadd.f32 %v3696_v35, %v3695_v43  ;;  %v4731_v62 = vpop.eup %4730  ;;  %v4096_v51 = vadd.f32 %v4095_v38, %v4094_v46 }
 0x626   :  { %v4102_v0 = vrot.slane %v4101_v59, 1  ;;  %v4119_v23 = vrot.slane %v4118_v61, 4  ;;  %v4132_v55 = vsel %vm854_vm2, %v3968_v57, 0.0  ;;  %v4081_v29 = vrot.slane %v4080_v58, 1 }
 0x627   :  { %v4107_v45 = vrot.slane %v4106_v17, 2  ;;  %v4127_v4 = vadd.f32 %v4126_v20, %v4125_v2  ;;  %v4133_v16 = vrot.slane %v4132_v55, 4  ;;  %v4116_v41 = vrot.slane %v4115_v56, 1 }
 0x628   :  { %v4103_v39 = vadd.f32 %v4102_v0, %v4101_v59  ;;  %v4120_v40 = vadd.f32 %v4119_v23, %v4118_v61  ;;  %v3811_v44 = vmul.f32 %v4729_v26, %v7295_v37  ;;  %v4733_v22 = vpop.eup %4732  ;;  %v3901_v43 = vpop.permute.xlu1 %3900  ;;  %v3810_v46 = vmul.f32 %v4731_v62, %v7299_v36 }
 0x629   :  { %v4108_v60 = vadd.f32 %v4107_v45, %v4106_v17  ;;  %v4128_v48 = vrot.slane %v4127_v4, 2  ;;  %v4134_v52 = vadd.f32 %v4133_v16, %v4132_v55  ;;  %v4735_v5 = vpop.eup %4734  ;;  %v7494_v10 = vadd.f32 %v4067_v11, %v7474_v19  ;;  %v3899_v38 = vpop.permute.xlu0 %3898 }
 0x62a   :  { %v4248_v47 = vsel %vm1335_vm3, %v4103_v39, %v4096_v51  ;;  %v4121_v50 = vrot.slane %v4120_v40, 2  ;;  %v3971_v49 = vmul.f32 %v3901_v43, %v3811_v44  ;;  %v4737_v24 = vpop.eup %4736  ;;  %v7497_v28 = vadd.f32 %v4081_v29, %v4080_v58  ;;  %v8277_v58 = vld [vmem:[#allocation32_spill] sm:$0xff] }
 0x62b   :  { %v4109_v37 = vrot.slane %v4108_v60, 1  ;;  %v4129_v35 = vadd.f32 %v4128_v48, %v4127_v4  ;;  %v3970_v18 = vmul.f32 %v3899_v38, %v3810_v46  ;;  %v4135_v32 = vrot.slane %v4134_v52, 2 }
 0x62c   :  { %v4153_v21 = vsel %vm854_vm2, %v3971_v49, 0.0  ;;  %v3801_v36 = vmul.f32 %v4733_v22, %v8276_v33  ;;  %4738 = vrcp.f32 %v3697_v30  ;;  %v7501_v53 = vadd.f32 %v4116_v41, %v4115_v56  ;;  %v3881_v13 = vpop.permute.xlu1 %3880 }
 0x62d   :  { %v4110_v19 = vadd.f32 %v4109_v37, %v4108_v60  ;;  %v4122_v11 = vadd.f32 %v4121_v50, %v4120_v40  ;;  %v4154_v9 = vrot.slane %v4153_v21, 4  ;;  %v4146_v26 = vsel %vm854_vm2, %v3970_v18, 0.0  ;;  %v3865_v61 = vpop.permute.xlu0 %3864 }
 0x62e   :  { %v3961_v59 = vmul.f32 %v3881_v13, %v3801_v36  ;;  %v3793_v2 = vmul.f32 %v4735_v5, %v8277_v58  ;;  %v3717_v57 = vrot.slane %v7486_v1, 1  ;;  %v4130_v20 = vrot.slane %v4129_v35, 1 }
 0x62f   :  { %v7507_v17 = vsel %vm1337_vm4, %v4110_v19, %v4248_v47  ;;  %v4155_v62 = vadd.f32 %v4154_v9, %v4153_v21  ;;  %v3813_v56 = vmul.f32 %v4737_v24, %v7308_v25  ;;  %v4136_v30 = vadd.f32 %v4135_v32, %v4134_v52 }
 0x630   :  { %v4147_v51 = vrot.slane %v4146_v26, 4  ;;  %v4083_v0 = vsel %vm854_vm2, %v3961_v59, 0.0  ;;  %v3953_v23 = vmul.f32 %v3865_v61, %v3793_v2  ;;  %v4123_v55 = vrot.slane %v4122_v11, 1  ;;  %v3905_v4 = vpop.permute.xlu1 %3904 }
 0x631   :  { %v4156_v29 = vrot.slane %v4155_v62, 2  ;;  %v4084_v45 = vrot.slane %v4083_v0, 4  ;;  %v3718_v16 = vadd.f32 %v3717_v57, %v7486_v1  ;;  %v3973_v40 = vmul.f32 %v3905_v4, %v3813_v56 }
 0x632   :  { %v4148_v39 = vadd.f32 %v4147_v51, %v4146_v26  ;;  %v4027_v41 = vsel %vm854_vm2, %v3953_v23, 0.0  ;;  %v3736_v44 = vrot.slane %v7379_v63, 2  ;;  %v4131_v48 = vadd.f32 %v4130_v20, %v4129_v35 }
 0x633   :  { %v4157_v22 = vadd.f32 %v4156_v29, %v4155_v62  ;;  %v4085_v60 = vadd.f32 %v4084_v45, %v4083_v0  ;;  %v4028_v25 = vrot.slane %v4027_v41, 4  ;;  %4740 = vrcp.f32 %v3718_v16  ;;  %v8278_v45 = vld [vmem:[#allocation46_spill] sm:$0xff] }
 0x634   :  { %v4149_v52 = vrot.slane %v4148_v39, 2  ;;  %v3737_v43 = vadd.f32 %v3736_v44, %v7379_v63  ;;  %v3729_v46 = vrot.slane %v7381_v7, 2  ;;  %v4137_v5 = vrot.slane %v4136_v30, 1  ;;  %v3903_v20 = vpop.permute.xlu1 %3902  ;;  %v8279_v44 = vld [vmem:[#allocation74_spill] sm:$0xff] }
 0x635   :  { %v4158_v47 = vrot.slane %v4157_v22, 1  ;;  %v4086_v50 = vrot.slane %v4085_v60, 2  ;;  %v4029_v1 = vadd.f32 %v4028_v25, %v4027_v41  ;;  %v4243_v37 = vsel %vm1339_vm5, %v7462_v3, %v7443_v8 }
 0x636   :  { %v4150_v49 = vadd.f32 %v4149_v52, %v4148_v39  ;;  %v3738_v38 = vrot.slane %v3737_v43, 1  ;;  %v3730_v24 = vadd.f32 %v3729_v46, %v7381_v7  ;;  %v4124_v18 = vadd.f32 %v4123_v55, %v4122_v11  ;;  %v3897_v7 = vpop.permute.xlu0 %3896 }
 0x637   :  { %v4087_v32 = vadd.f32 %v4086_v50, %v4085_v60  ;;  %v4030_v35 = vrot.slane %v4029_v1, 2  ;;  %v4167_v21 = vsel %vm854_vm2, %v3973_v40, 0.0  ;;  %v4244_v19 = vsel %vm1341_vm6, %v7494_v10, %v4243_v37 }
 0x638   :  { %v4151_v63 = vrot.slane %v4150_v49, 1  ;;  %v3739_v33 = vadd.f32 %v3738_v38, %v3737_v43  ;;  %v3731_v36 = vrot.slane %v3730_v24, 1  ;;  %v4159_v13 = vadd.f32 %v4158_v47, %v4157_v22  ;;  %v3909_v60 = vpop.permute.xlu1 %3908 }
 0x639   :  { %v4739_v9 = vpop.eup %4738  ;;  %v4088_v26 = vrot.slane %v4087_v32, 1  ;;  %v4031_v59 = vadd.f32 %v4030_v35, %v4029_v1  ;;  %v4245_v58 = vsel %vm1343_vm7, %v7469_v34, %v4244_v19  ;;  %v4168_v57 = vrot.slane %v4167_v21, 4 }
 0x63a   :  { %v4152_v8 = vadd.f32 %v4151_v63, %v4150_v49  ;;  %v3809_v3 = vmul.f32 %v4739_v9, %v7269_v12  ;;  %4742 = vrcp.f32 %v3739_v33  ;;  %v3732_v11 = vadd.f32 %v3731_v36, %v3730_v24  ;;  %v8281_v33 = vld [vmem:[#allocation79_spill] sm:$0xff] }
 0x63b   :  { %v4089_v2 = vadd.f32 %v4088_v26, %v4087_v32  ;;  %v4032_v61 = vrot.slane %v4031_v59, 1  ;;  %v4246_v10 = vsel %vm1345_vm8, %v7497_v28, %v4245_v58  ;;  %v3744_v34 = vadd.f32 %v3743_v31, %v7393_v14 }
 0x63c   :  { %v7529_v62 = vsel %vm1335_vm3, %v4159_v13, %v4152_v8  ;;  %v3969_v56 = vmul.f32 %v3897_v7, %v3809_v3  ;;  %4744 = vrcp.f32 %v3732_v11  ;;  %v4138_v51 = vadd.f32 %v4137_v5, %v4136_v30  ;;  %v3907_v38 = vpop.permute.xlu1 %3906 }
 0x63d   :  { %v4033_v12 = vadd.f32 %v4032_v61, %v4031_v59  ;;  %v4247_v0 = vsel %vm1347_vm9, %v4089_v2, %v4246_v10  ;;  %v4236_v23 = vsel %vm1339_vm5, %v7413_v6, %v7416_v15  ;;  %v3745_v28 = vrot.slane %v3744_v34, 1 }
 0x63e   :  { %v4139_v55 = vsel %vm854_vm2, %v3969_v56, 0.0  ;;  %4264 = vrot.lane.b32.xlu1 %v4247_v0, %s4772_s26  ;;  %v4237_v29 = vsel %vm1341_vm6, %v7431_v54, %v4236_v23  ;;  %v3750_v4 = vrot.slane %v8278_v45, 2  ;;  %v4169_v16 = vadd.f32 %v4168_v57, %v4167_v21 }
 0x63f   :  { %v4140_v14 = vrot.slane %v4139_v55, 4  ;;  %v4238_v31 = vsel %vm1343_vm7, %v7418_v27, %v4237_v29  ;;  %v4250_v30 = vsel %vm1339_vm5, %v7501_v53, %v7507_v17  ;;  %v3746_v15 = vadd.f32 %v3745_v28, %v3744_v34 }
 0x640   :  { %v4741_v6 = vpop.eup %4740  ;;  %v4239_v39 = vsel %vm1345_vm8, %v7458_v42, %v4238_v31  ;;  %v3751_v41 = vadd.f32 %v3750_v4, %v8278_v45  ;;  %v4251_v54 = vsel %vm1341_vm6, %v4124_v18, %v4250_v30  ;;  %v4170_v46 = vrot.slane %v4169_v16, 2  ;;  %v3911_v58 = vpop.permute.xlu1 %3910 }
 0x641   :  { %v4141_v40 = vadd.f32 %v4140_v14, %v4139_v55  ;;  %v3812_v22 = vmul.f32 %v4741_v6, %v8279_v44  ;;  %v4240_v25 = vsel %vm1347_vm9, %v4033_v12, %v4239_v39  ;;  %v4252_v27 = vsel %vm1343_vm7, %v4131_v48, %v4251_v54  ;;  %v8280_v48 = vld [vmem:[#allocation41_spill] sm:$0xff] }
 0x642   :  { %4746 = vrcp.f32 %v3746_v15  ;;  %4262 = vrot.lane.b32.xlu0 %v4240_v25, %s4772_s26  ;;  %v3752_v53 = vrot.slane %v3751_v41, 1  ;;  %v4253_v17 = vsel %vm1345_vm8, %v4138_v51, %v4252_v27  ;;  %v4171_v32 = vadd.f32 %v4170_v46, %v4169_v16  ;;  %v8283_v16 = vld [vmem:[#allocation48_spill] sm:$0xff] }
 0x643   :  { %v4142_v52 = vrot.slane %v4141_v40, 2  ;;  %v3972_v42 = vmul.f32 %v3903_v20, %v3812_v22  ;;  %v8282_v20 = vld [vmem:[#allocation84_spill] sm:$0xff] }
 0x644   :  { %v3753_v43 = vadd.f32 %v3752_v53, %v3751_v41  ;;  %v4172_v59 = vrot.slane %v4171_v32, 1  ;;  %v3913_v29 = vpop.permute.xlu1 %3912 }
 0x645   :  { %v4143_v5 = vadd.f32 %v4142_v52, %v4141_v40  ;;  %v4160_v47 = vsel %vm854_vm2, %v3972_v42, 0.0 }
 0x646   :  { %v4161_v50 = vrot.slane %v4160_v47, 4  ;;  %4748 = vrcp.f32 %v3753_v43  ;;  %v4173_v56 = vadd.f32 %v4172_v59, %v4171_v32 }
 0x647   :  { %v4743_v1 = vpop.eup %4742  ;;  %v4144_v49 = vrot.slane %v4143_v5, 1 }
 0x648   :  { %v4162_v24 = vadd.f32 %v4161_v50, %v4160_v47  ;;  %v3815_v37 = vmul.f32 %v4743_v1, %v8280_v48 }
 0x649   :  { %v4745_v18 = vpop.eup %4744  ;;  %v4145_v35 = vadd.f32 %v4144_v49, %v4143_v5 }
 0x64a   :  { %v4163_v21 = vrot.slane %v4162_v24, 2  ;;  %v3975_v63 = vmul.f32 %v3909_v60, %v3815_v37  ;;  %v3814_v36 = vmul.f32 %v4745_v18, %v8281_v33 }
 0x64b   :  { %v4254_v19 = vsel %vm1347_vm9, %v4145_v35, %v4253_v17 }
 0x64c   :  { %v4164_v9 = vadd.f32 %v4163_v21, %v4162_v24  ;;  %v4181_v13 = vsel %vm854_vm2, %v3975_v63, 0.0  ;;  %v3974_v26 = vmul.f32 %v3907_v38, %v3814_v36  ;;  %4266 = vrot.lane.b32.xlu0 %v4254_v19, %s4772_s26 }
 0x64d   :  { %v4182_v7 = vrot.slane %v4181_v13, 4 }
 0x64e   :  { %v4165_v8 = vrot.slane %v4164_v9, 1  ;;  %v4174_v3 = vsel %vm854_vm2, %v3974_v26, 0.0 }
 0x64f   :  { %v4747_v11 = vpop.eup %4746  ;;  %v4183_v2 = vadd.f32 %v4182_v7, %v4181_v13  ;;  %v4175_v61 = vrot.slane %v4174_v3, 4 }
 0x650   :  { %v4166_v57 = vadd.f32 %v4165_v8, %v4164_v9  ;;  %v3816_v10 = vmul.f32 %v4747_v11, %v8282_v20 }
 0x651   :  { %v4184_v34 = vrot.slane %v4183_v2, 2  ;;  %v4176_v51 = vadd.f32 %v4175_v61, %v4174_v3 }
 0x652   :  { %v4256_v12 = vsel %vm1337_vm4, %v4166_v57, %v7529_v62  ;;  %v3976_v0 = vmul.f32 %v3911_v58, %v3816_v10 }
 0x653   :  { %v4749_v23 = vpop.eup %4748  ;;  %v4185_v55 = vadd.f32 %v4184_v34, %v4183_v2  ;;  %v4177_v28 = vrot.slane %v4176_v51, 2  ;;  %v4257_v45 = vsel %vm1339_vm5, %v4173_v56, %v4256_v12 }
 0x654   :  { %v4188_v4 = vsel %vm854_vm2, %v3976_v0, 0.0  ;;  %v3817_v14 = vmul.f32 %v4749_v23, %v8283_v16 }
 0x655   :  { %v4178_v31 = vadd.f32 %v4177_v28, %v4176_v51  ;;  %v4189_v30 = vrot.slane %v4188_v4, 4  ;;  %v4186_v6 = vrot.slane %v4185_v55, 1 }
 0x656   :  { %v3977_v15 = vmul.f32 %v3913_v29, %v3817_v14 }
 0x657   :  { %v4179_v39 = vrot.slane %v4178_v31, 1  ;;  %v4190_v41 = vadd.f32 %v4189_v30, %v4188_v4  ;;  %v4187_v22 = vadd.f32 %v4186_v6, %v4185_v55 }
 0x658   :  { %v4195_v54 = vsel %vm854_vm2, %v3977_v15, 0.0 }
 0x659   :  { %v4180_v62 = vadd.f32 %v4179_v39, %v4178_v31  ;;  %v4191_v40 = vrot.slane %v4190_v41, 2  ;;  %v4196_v44 = vrot.slane %v4195_v54, 4 }
 0x65b   :  { %v4192_v60 = vadd.f32 %v4191_v40, %v4190_v41  ;;  %v4197_v25 = vadd.f32 %v4196_v44, %v4195_v54  ;;  %v4258_v27 = vsel %vm1341_vm6, %v4180_v62, %v4257_v45 }
 0x65c   :  { %v4259_v53 = vsel %vm1343_vm7, %v4187_v22, %v4258_v27 }
 0x65d   :  { %v4193_v17 = vrot.slane %v4192_v60, 1  ;;  %v4198_v52 = vrot.slane %v4197_v25, 2 }
 0x65f   :  { %v4194_v42 = vadd.f32 %v4193_v17, %v4192_v60  ;;  %v4199_v43 = vadd.f32 %v4198_v52, %v4197_v25 }
 0x661   :  { %v4200_v46 = vrot.slane %v4199_v43, 1  ;;  %v4260_v5 = vsel %vm1345_vm8, %v4194_v42, %v4259_v53 }
 0x663   :  { %v4201_v47 = vadd.f32 %v4200_v46, %v4199_v43 }
 0x665   :  { %v4261_v50 = vsel %vm1347_vm9, %v4201_v47, %v4260_v5 }
 0x666   :  { %4268 = vrot.lane.b32.xlu1 %v4261_v50, %s4772_s26 }
 0x6b0   :  { %v4265_v1 = vpop.permute.xlu1 %4264 }
 0x6b1   :  { %4275 = vst.msk [vmem:[#allocation2 + $0x8] sm:$0xff] %vm629_vm1, %v4265_v1 }
 0x6b4   :  { %v4263_v49 = vpop.permute.xlu0 %4262 }
 0x6b5   :  { %4274 = vst.msk [vmem:[#allocation2] sm:$0xff] %vm629_vm1, %v4263_v49 }
 0x6be   :  { %v4267_v38 = vpop.permute.xlu0 %4266 }
 0x6bf   :  { %4276 = vst.msk [vmem:[#allocation2 + $0x10] sm:$0xff] %vm629_vm1, %v4267_v38 }
 0x6d8   :  { %v4269_v24 = vpop.permute.xlu1 %4268 }
 0x6d9   :  { %4277 = vst.msk [vmem:[#allocation2 + $0x18] sm:$0xff] %vm629_vm1, %v4269_v24 }
 0x6da   :  { %4761 = shalt.err (!%p4758_p4)
}
 0x6db   :  { %s4777_s26 = smov 128   ;;  %s4778_s16 = smov 8  }
 0x6dc   :  { %4289 = dma.vmem_to_hbm [thread:$0]  %s4284_s14, 512, %s7587_s4, [#allocation3], %s4777_s26, %s4777_s26, %s4778_s16  }
 0x6dd   :  { %4770 = dma.done.wait [#allocation3], 512  }
 0x6de   :  { %4771 = vsyncadd [#allocation3], 4294966784 }
 0x6df   :  { %4293 = vsyncpa [#allocation3], 1 }

</bundles_post_ra>
